<compile_context>
chip_gen: v7x
topology: tpu7x:2x2x1
jax: 0.10.0
libtpu: 0.0.40
codegen_flags: <defaults>
</compile_context>

<pallas_src>
import numpy as np
import jax
import jax.numpy as jnp
from jax.experimental import pallas as pl
from jax.experimental.pallas import tpu as pltpu


W0 = 6.0          # Morlet nondimensional frequency constant
TT = 128          # time tile (lane width)
WG = 4            # wavelets per in-kernel dot (N chunk = 2*WG*128 = 1024 lanes)


# -----------------------------------------------------------------------------
# Morlet wavelet bank (host-side NumPy; mirrors CWT.__init__)
# -----------------------------------------------------------------------------
def _fourier_period(s):
    return 4.0 * np.pi * s / (W0 + np.sqrt(2.0 + W0 * W0))


def _morlet_time(t, s):
    x = t / s
    out = np.exp(1j * W0 * x) - np.exp(-0.5 * W0 ** 2)   # "complete" Morlet
    return out * np.exp(-0.5 * x ** 2) * np.pi ** (-0.25)


def build_wavelet_bank(dj, dt, fmin, fmax, signal_length):
    # minimum scale s0 with fourier_period(s0) == 2*dt (closed form of fsolve)
    s0 = 2.0 * dt * (W0 + np.sqrt(2.0 + W0 * W0)) / (4.0 * np.pi)
    # optimal scales (Torrence & Compo eq. 9-10)
    J = int(1.0 / dj * np.log2(signal_length * dt / s0))
    scales = s0 * 2.0 ** (dj * np.arange(0, J + 1))
    freqs = 1.0 / _fourier_period(scales)
    if fmin:
        freqs = freqs[freqs >= fmin]
        scales = scales[: len(freqs)]
    if fmax:
        freqs2 = freqs[freqs <= fmax]
        scales = scales[len(scales) - len(freqs2):]
    filters = []
    for s in scales:
        M = 10.0 * s / dt
        t = np.arange((-M + 1) / 2.0, (M + 1) / 2.0) * dt
        if len(t) % 2 == 0:
            t = t[:-1]
        norm = (dt / s) ** 0.5
        filt = norm * _morlet_time(t, s)
        filters.append(np.conj(filt[::-1]))
    filter_len = filters[-1].shape[0]
    padded = []
    for f in filters:
        pad = (filter_len - f.shape[0]) // 2
        padded.append(np.pad(f, (pad, pad)))
    bank = np.stack(padded)          # (W, L) complex
    return bank.real.astype(np.float32), bank.imag.astype(np.float32)


# -----------------------------------------------------------------------------
# Host-side banded (Toeplitz) expansion, real/imag pair-interleaved per wavelet
# -----------------------------------------------------------------------------
def _build_banded_weights(k_real, k_imag, Wp, nj):
    """wt[kk, (2*w + s)*TT + u] = k_s[w, kk - u] for 0 <= kk-u < L, else 0
       (s = 0 real, 1 imag; wavelet index zero-padded to Wp)."""
    W, L = k_real.shape
    K = nj * TT
    kk = np.arange(K)[:, None]                            # (K, 1)
    u = np.arange(TT)[None, :]                            # (1, TT)
    l_idx = kk - u                                        # (K, TT)
    valid = (l_idx >= 0) & (l_idx < L)
    l_safe = np.where(valid, l_idx, 0)
    vmask = valid.astype(np.float32)
    band_r = k_real[:, l_safe] * vmask                    # (W, K, TT)
    band_i = k_imag[:, l_safe] * vmask
    wt = np.zeros((K, Wp, 2, TT), np.float32)
    wt[:, :W, 0, :] = np.transpose(band_r, (1, 0, 2))
    wt[:, :W, 1, :] = np.transpose(band_i, (1, 0, 2))
    return wt.reshape(K, 2 * Wp * TT)


def _vmem_limit_bytes():
    phys = 128 * 1024 * 1024
    try:
        info = pltpu.get_tpu_info()
        phys = int(getattr(info, "vmem_capacity_bytes", phys))
    except Exception:
        pass
    # ~half of physical VMEM: 32 MiB on v7x (64 MiB/TC), 64 MiB on v5e/v6e.
    return int(min(96 * 1024 * 1024, max(32 * 1024 * 1024, phys // 2)))


# -----------------------------------------------------------------------------
# Pallas kernel: one (R*TB, nj*TT) bf16 slab x resident banded bank -> magnitude
# -----------------------------------------------------------------------------
def _cwt_kernel(x_ref, wt_ref, o_ref):
    # x_ref : (1, M, K)        bf16   M = R*TB stacked (row, time-tile) windows
    # wt_ref: (K, 2*Wp*TT)     bf16   banded bank, [re_w | im_w] interleaved per w
    # o_ref : (Wp, 1, M, TT)   f32    per-wavelet magnitude
    Wp = o_ref.shape[0]
    tt = o_ref.shape[3]
    xm = x_ref[0]                                          # (M, K) bf16 LHS slab
    for g in range(Wp // WG):                              # N chunked to 2*WG*TT lanes
        cols = slice(g * 2 * WG * tt, (g + 1) * 2 * WG * tt)
        acc = jnp.dot(xm, wt_ref[:, cols],                 # bf16 x bf16 -> f32 acc
                      preferred_element_type=jnp.float32)
        for i in range(WG):                                # pure lane slices (no relayout)
            re = acc[:, (2 * i) * tt:(2 * i + 1) * tt]
            im = acc[:, (2 * i + 1) * tt:(2 * i + 2) * tt]
            o_ref[g * WG + i, 0] = jnp.sqrt(re * re + im * im)


def cwt_forward(x, k_real, k_imag):
    """x: (B, C, T) float32 -> (B, C, W, T) float32 magnitude CWT."""
    B, C, T = x.shape
    k_real = np.asarray(k_real, np.float32)
    k_imag = np.asarray(k_imag, np.float32)
    W, L = k_real.shape

    Wp = -(-W // 8) * 8                     # wavelet count padded to sublane multiple
    nj = (TT + L - 2) // TT + 1             # 128-chunks spanned by one output tile
    K = nj * TT                             # fused MXU K depth (256 here)
    nT = -(-T // TT)                        # output time tiles
    pad_l = (L - 1) // 2                    # conv2d_same left pad (stride=1, dil=1)
    BC = B * C

    # ---- fill the MXU M dim with (rows x time tiles) that share the weights ----
    R, TB = 8, 1
    while R * TB < 128 and TB < nT:
        TB *= 2
    while R * TB < 128 and R < -(-BC // 8) * 8:
        R *= 2
    while R * TB < 256 and nT % (TB * 2) == 0 and TB * 2 <= nT:
        TB *= 2

    nTp = -(-nT // TB) * TB                 # time tiles padded to a multiple of TB
    BCp = -(-BC // R) * R                   # rows padded to a multiple of R
    nb_r, nb_t = BCp // R, nTp // TB
    G = nb_r * nb_t                         # flattened (row-block, time-block) grid
    M = R * TB
    Tpp = (nTp + nj - 1) * TT               # lane-aligned padded input length

    # ---- host/XLA-side layout plumbing (keeps the kernel relayout-free) ----
    wt = jnp.asarray(_build_banded_weights(k_real, k_imag, Wp, nj)).astype(jnp.bfloat16)

    xp = jnp.pad(x.reshape(BC, T).astype(jnp.float32),
                 ((0, BCp - BC), (pad_l, Tpp - T - pad_l))).astype(jnp.bfloat16)
    # overlapping nj*TT windows per output time tile (nj is small, ~2)
    win = jnp.concatenate(
        [xp[:, j * TT:(j + nTp) * TT].reshape(BCp, nTp, TT) for j in range(nj)],
        axis=-1)                                             # (BCp, nTp, K)
    # pre-arrange so each grid step sees one contiguous (M, K) LHS slab
    win = win.reshape(nb_r, R, nb_t, TB, K)
    win = jnp.transpose(win, (0, 2, 1, 3, 4)).reshape(G, M, K)

    out = pl.pallas_call(
        _cwt_kernel,
        out_shape=jax.ShapeDtypeStruct((Wp, G, M, TT), jnp.float32),
        grid=(G,),
        in_specs=[
            pl.BlockSpec((1, M, K), lambda g: (g, 0, 0)),            # LHS slab
            pl.BlockSpec((K, 2 * Wp * TT), lambda g: (0, 0)),        # resident bank
        ],
        out_specs=pl.BlockSpec((Wp, 1, M, TT), lambda g: (0, g, 0, 0)),
        compiler_params=pltpu.CompilerParams(
            dimension_semantics=("parallel",),
            vmem_limit_bytes=_vmem_limit_bytes()),
    )(win, wt)

    # (Wp, G, M, TT) -> (B, C, W, T)
    out = out.reshape(Wp, nb_r, nb_t, R, TB, TT)
    out = jnp.transpose(out, (1, 3, 0, 2, 4, 5))             # (nb_r, R, Wp, nb_t, TB, TT)
    out = out.reshape(BCp, Wp, nTp * TT)[:BC, :W, :T]
    return out.reshape(B, C, W, T)


# -----------------------------------------------------------------------------
# Pure-NumPy float64 reference (for correctness check)
# -----------------------------------------------------------------------------
def cwt_reference(x, k_real, k_imag):
    x = np.asarray(x, np.float64)
    kr = np.asarray(k_real, np.float64)
    ki = np.asarray(k_imag, np.float64)
    B, C, T = x.shape
    W, L = kr.shape
    pad_l = (L - 1) // 2
    xp = np.pad(x, ((0, 0), (0, 0), (pad_l, L - 1 - pad_l)))
    cols = np.stack([xp[:, :, l:l + T] for l in range(L)], axis=2)   # (B, C, L, T)
    r = np.einsum("wl,bclt->bcwt", kr, cols)
    i = np.einsum("wl,bclt->bcwt", ki, cols)
    return np.sqrt(r * r + i * i)


if __name__ == "__main__":
    # Small, deterministic configuration consistent with the module's __init__.
    dj = 0.125
    dt = 1.0 / 200
    fmin, fmax = 20, 50
    signal_length = 128   # time
    signal_channels = 4   # channels
    batch = 2

    k_real_np, k_imag_np = build_wavelet_bank(dj, dt, fmin, fmax, signal_length)

    key = jax.random.PRNGKey(0)
    x = jax.random.normal(
        key, (batch, signal_channels, signal_length), dtype=jnp.float32)

    out = cwt_forward(x, k_real_np, k_imag_np)
    out = jax.block_until_ready(out)

    assert out.shape == (batch, signal_channels,
                         k_real_np.shape[0], signal_length), out.shape

    ref = cwt_reference(np.asarray(x), k_real_np, k_imag_np)
    # bf16 MXU inputs with f32 accumulation: relative accuracy ~1e-3..1e-2.
    np.testing.assert_allclose(np.asarray(out), ref, rtol=2e-2, atol=2e-2)
    print("KERNEL_OK")
</pallas_src>

<mosaic_0001>
module attributes {stable_mosaic.version = 11 : i64} {
  func.func @_cwt_kernel(%arg0: i32, %arg1: memref<1x8x256xbf16, #tpu.memory_space<vmem>>, %arg2: memref<256x4096xbf16, #tpu.memory_space<vmem>>, %arg3: memref<16x1x8x128xf32, #tpu.memory_space<vmem>>) attributes {dimension_semantics = [#tpu.dimension_semantics<parallel>], iteration_bounds = array<i64: 1>, scalar_prefetch = 0 : i64, scratch_operands = 0 : i64, tpu.core_type = #tpu.core_type<tc>, window_params = [{transform_indices = @transform_0, window_bounds = array<i64: 1, 8, 256>}, {pipeline_mode = #tpu.pipeline_mode<synchronous>, transform_indices = @transform_1, window_bounds = array<i64: 256, 4096>}, {transform_indices = @transform_2, window_bounds = array<i64: 16, 1, 8, 128>}]} {
    %c0 = arith.constant 0 : index
    %c0_0 = arith.constant 0 : index
    %c0_1 = arith.constant 0 : index
    %0 = vector.load %arg1[%c0, %c0_0, %c0_1] : memref<1x8x256xbf16, #tpu.memory_space<vmem>>, vector<1x8x256xbf16>
    %1 = vector.shape_cast %0 : vector<1x8x256xbf16> to vector<8x256xbf16>
    %c0_2 = arith.constant 0 : index
    %c0_3 = arith.constant 0 : index
    %2 = vector.load %arg2[%c0_2, %c0_3] : memref<256x4096xbf16, #tpu.memory_space<vmem>>, vector<256x1024xbf16>
    %cst = arith.constant dense<0.000000e+00> : vector<8x1024xf32>
    %3 = tpu.matmul %1, %2, %cst {dimension_numbers = #tpu.dot_dimension_numbers<[1], [0], [0], [1], [0, 0, 1, 1], [], []>} : vector<8x256xbf16>, vector<256x1024xbf16>, vector<8x1024xf32> -> vector<8x1024xf32>
    %4 = vector.extract_strided_slice %3 {offsets = [0, 0], sizes = [8, 128], strides = [1, 1]} : vector<8x1024xf32> to vector<8x128xf32>
    %5 = vector.extract_strided_slice %3 {offsets = [0, 128], sizes = [8, 128], strides = [1, 1]} : vector<8x1024xf32> to vector<8x128xf32>
    %6 = arith.mulf %4, %4 : vector<8x128xf32>
    %7 = arith.mulf %5, %5 : vector<8x128xf32>
    %8 = arith.addf %6, %7 : vector<8x128xf32>
    %9 = math.sqrt %8 : vector<8x128xf32>
    %c0_4 = arith.constant 0 : index
    %c0_5 = arith.constant 0 : index
    %c0_6 = arith.constant 0 : index
    %c0_7 = arith.constant 0 : index
    %10 = vector.load %arg3[%c0_4, %c0_5, %c0_6, %c0_7] : memref<16x1x8x128xf32, #tpu.memory_space<vmem>>, vector<1x1x8x128xf32>
    %11 = vector.shape_cast %10 : vector<1x1x8x128xf32> to vector<8x128xf32>
    %12 = vector.shape_cast %9 : vector<8x128xf32> to vector<1x1x8x128xf32>
    tpu.vector_store %arg3[%c0_4, %c0_5, %c0_6, %c0_7], %12 {strides = array<i32>} : memref<16x1x8x128xf32, #tpu.memory_space<vmem>>, vector<1x1x8x128xf32>,
    %13 = vector.extract_strided_slice %3 {offsets = [0, 256], sizes = [8, 128], strides = [1, 1]} : vector<8x1024xf32> to vector<8x128xf32>
    %14 = vector.extract_strided_slice %3 {offsets = [0, 384], sizes = [8, 128], strides = [1, 1]} : vector<8x1024xf32> to vector<8x128xf32>
    %15 = arith.mulf %13, %13 : vector<8x128xf32>
    %16 = arith.mulf %14, %14 : vector<8x128xf32>
    %17 = arith.addf %15, %16 : vector<8x128xf32>
    %18 = math.sqrt %17 : vector<8x128xf32>
    %c1 = arith.constant 1 : index
    %c0_8 = arith.constant 0 : index
    %c0_9 = arith.constant 0 : index
    %c0_10 = arith.constant 0 : index
    %19 = vector.load %arg3[%c1, %c0_8, %c0_9, %c0_10] : memref<16x1x8x128xf32, #tpu.memory_space<vmem>>, vector<1x1x8x128xf32>
    %20 = vector.shape_cast %19 : vector<1x1x8x128xf32> to vector<8x128xf32>
    %21 = vector.shape_cast %18 : vector<8x128xf32> to vector<1x1x8x128xf32>
    tpu.vector_store %arg3[%c1, %c0_8, %c0_9, %c0_10], %21 {strides = array<i32>} : memref<16x1x8x128xf32, #tpu.memory_space<vmem>>, vector<1x1x8x128xf32>,
    %22 = vector.extract_strided_slice %3 {offsets = [0, 512], sizes = [8, 128], strides = [1, 1]} : vector<8x1024xf32> to vector<8x128xf32>
    %23 = vector.extract_strided_slice %3 {offsets = [0, 640], sizes = [8, 128], strides = [1, 1]} : vector<8x1024xf32> to vector<8x128xf32>
    %24 = arith.mulf %22, %22 : vector<8x128xf32>
    %25 = arith.mulf %23, %23 : vector<8x128xf32>
    %26 = arith.addf %24, %25 : vector<8x128xf32>
    %27 = math.sqrt %26 : vector<8x128xf32>
    %c2 = arith.constant 2 : index
    %c0_11 = arith.constant 0 : index
    %c0_12 = arith.constant 0 : index
    %c0_13 = arith.constant 0 : index
    %28 = vector.load %arg3[%c2, %c0_11, %c0_12, %c0_13] : memref<16x1x8x128xf32, #tpu.memory_space<vmem>>, vector<1x1x8x128xf32>
    %29 = vector.shape_cast %28 : vector<1x1x8x128xf32> to vector<8x128xf32>
    %30 = vector.shape_cast %27 : vector<8x128xf32> to vector<1x1x8x128xf32>
    tpu.vector_store %arg3[%c2, %c0_11, %c0_12, %c0_13], %30 {strides = array<i32>} : memref<16x1x8x128xf32, #tpu.memory_space<vmem>>, vector<1x1x8x128xf32>,
    %31 = vector.extract_strided_slice %3 {offsets = [0, 768], sizes = [8, 128], strides = [1, 1]} : vector<8x1024xf32> to vector<8x128xf32>
    %32 = vector.extract_strided_slice %3 {offsets = [0, 896], sizes = [8, 128], strides = [1, 1]} : vector<8x1024xf32> to vector<8x128xf32>
    %33 = arith.mulf %31, %31 : vector<8x128xf32>
    %34 = arith.mulf %32, %32 : vector<8x128xf32>
    %35 = arith.addf %33, %34 : vector<8x128xf32>
    %36 = math.sqrt %35 : vector<8x128xf32>
    %c3 = arith.constant 3 : index
    %c0_14 = arith.constant 0 : index
    %c0_15 = arith.constant 0 : index
    %c0_16 = arith.constant 0 : index
    %37 = vector.load %arg3[%c3, %c0_14, %c0_15, %c0_16] : memref<16x1x8x128xf32, #tpu.memory_space<vmem>>, vector<1x1x8x128xf32>
    %38 = vector.shape_cast %37 : vector<1x1x8x128xf32> to vector<8x128xf32>
    %39 = vector.shape_cast %36 : vector<8x128xf32> to vector<1x1x8x128xf32>
    tpu.vector_store %arg3[%c3, %c0_14, %c0_15, %c0_16], %39 {strides = array<i32>} : memref<16x1x8x128xf32, #tpu.memory_space<vmem>>, vector<1x1x8x128xf32>,
    %c0_17 = arith.constant 0 : index
    %c1024 = arith.constant 1024 : index
    %40 = vector.load %arg2[%c0_17, %c1024] : memref<256x4096xbf16, #tpu.memory_space<vmem>>, vector<256x1024xbf16>
    %cst_18 = arith.constant dense<0.000000e+00> : vector<8x1024xf32>
    %41 = tpu.matmul %1, %40, %cst_18 {dimension_numbers = #tpu.dot_dimension_numbers<[1], [0], [0], [1], [0, 0, 1, 1], [], []>} : vector<8x256xbf16>, vector<256x1024xbf16>, vector<8x1024xf32> -> vector<8x1024xf32>
    %42 = vector.extract_strided_slice %41 {offsets = [0, 0], sizes = [8, 128], strides = [1, 1]} : vector<8x1024xf32> to vector<8x128xf32>
    %43 = vector.extract_strided_slice %41 {offsets = [0, 128], sizes = [8, 128], strides = [1, 1]} : vector<8x1024xf32> to vector<8x128xf32>
    %44 = arith.mulf %42, %42 : vector<8x128xf32>
    %45 = arith.mulf %43, %43 : vector<8x128xf32>
    %46 = arith.addf %44, %45 : vector<8x128xf32>
    %47 = math.sqrt %46 : vector<8x128xf32>
    %c4 = arith.constant 4 : index
    %c0_19 = arith.constant 0 : index
    %c0_20 = arith.constant 0 : index
    %c0_21 = arith.constant 0 : index
    %48 = vector.load %arg3[%c4, %c0_19, %c0_20, %c0_21] : memref<16x1x8x128xf32, #tpu.memory_space<vmem>>, vector<1x1x8x128xf32>
    %49 = vector.shape_cast %48 : vector<1x1x8x128xf32> to vector<8x128xf32>
    %50 = vector.shape_cast %47 : vector<8x128xf32> to vector<1x1x8x128xf32>
    tpu.vector_store %arg3[%c4, %c0_19, %c0_20, %c0_21], %50 {strides = array<i32>} : memref<16x1x8x128xf32, #tpu.memory_space<vmem>>, vector<1x1x8x128xf32>,
    %51 = vector.extract_strided_slice %41 {offsets = [0, 256], sizes = [8, 128], strides = [1, 1]} : vector<8x1024xf32> to vector<8x128xf32>
    %52 = vector.extract_strided_slice %41 {offsets = [0, 384], sizes = [8, 128], strides = [1, 1]} : vector<8x1024xf32> to vector<8x128xf32>
    %53 = arith.mulf %51, %51 : vector<8x128xf32>
    %54 = arith.mulf %52, %52 : vector<8x128xf32>
    %55 = arith.addf %53, %54 : vector<8x128xf32>
    %56 = math.sqrt %55 : vector<8x128xf32>
    %c5 = arith.constant 5 : index
    %c0_22 = arith.constant 0 : index
    %c0_23 = arith.constant 0 : index
    %c0_24 = arith.constant 0 : index
    %57 = vector.load %arg3[%c5, %c0_22, %c0_23, %c0_24] : memref<16x1x8x128xf32, #tpu.memory_space<vmem>>, vector<1x1x8x128xf32>
    %58 = vector.shape_cast %57 : vector<1x1x8x128xf32> to vector<8x128xf32>
    %59 = vector.shape_cast %56 : vector<8x128xf32> to vector<1x1x8x128xf32>
    tpu.vector_store %arg3[%c5, %c0_22, %c0_23, %c0_24], %59 {strides = array<i32>} : memref<16x1x8x128xf32, #tpu.memory_space<vmem>>, vector<1x1x8x128xf32>,
    %60 = vector.extract_strided_slice %41 {offsets = [0, 512], sizes = [8, 128], strides = [1, 1]} : vector<8x1024xf32> to vector<8x128xf32>
    %61 = vector.extract_strided_slice %41 {offsets = [0, 640], sizes = [8, 128], strides = [1, 1]} : vector<8x1024xf32> to vector<8x128xf32>
    %62 = arith.mulf %60, %60 : vector<8x128xf32>
    %63 = arith.mulf %61, %61 : vector<8x128xf32>
    %64 = arith.addf %62, %63 : vector<8x128xf32>
    %65 = math.sqrt %64 : vector<8x128xf32>
    %c6 = arith.constant 6 : index
    %c0_25 = arith.constant 0 : index
    %c0_26 = arith.constant 0 : index
    %c0_27 = arith.constant 0 : index
    %66 = vector.load %arg3[%c6, %c0_25, %c0_26, %c0_27] : memref<16x1x8x128xf32, #tpu.memory_space<vmem>>, vector<1x1x8x128xf32>
    %67 = vector.shape_cast %66 : vector<1x1x8x128xf32> to vector<8x128xf32>
    %68 = vector.shape_cast %65 : vector<8x128xf32> to vector<1x1x8x128xf32>
    tpu.vector_store %arg3[%c6, %c0_25, %c0_26, %c0_27], %68 {strides = array<i32>} : memref<16x1x8x128xf32, #tpu.memory_space<vmem>>, vector<1x1x8x128xf32>,
    %69 = vector.extract_strided_slice %41 {offsets = [0, 768], sizes = [8, 128], strides = [1, 1]} : vector<8x1024xf32> to vector<8x128xf32>
    %70 = vector.extract_strided_slice %41 {offsets = [0, 896], sizes = [8, 128], strides = [1, 1]} : vector<8x1024xf32> to vector<8x128xf32>
    %71 = arith.mulf %69, %69 : vector<8x128xf32>
    %72 = arith.mulf %70, %70 : vector<8x128xf32>
    %73 = arith.addf %71, %72 : vector<8x128xf32>
    %74 = math.sqrt %73 : vector<8x128xf32>
    %c7 = arith.constant 7 : index
    %c0_28 = arith.constant 0 : index
    %c0_29 = arith.constant 0 : index
    %c0_30 = arith.constant 0 : index
    %75 = vector.load %arg3[%c7, %c0_28, %c0_29, %c0_30] : memref<16x1x8x128xf32, #tpu.memory_space<vmem>>, vector<1x1x8x128xf32>
    %76 = vector.shape_cast %75 : vector<1x1x8x128xf32> to vector<8x128xf32>
    %77 = vector.shape_cast %74 : vector<8x128xf32> to vector<1x1x8x128xf32>
    tpu.vector_store %arg3[%c7, %c0_28, %c0_29, %c0_30], %77 {strides = array<i32>} : memref<16x1x8x128xf32, #tpu.memory_space<vmem>>, vector<1x1x8x128xf32>,
    %c0_31 = arith.constant 0 : index
    %c2048 = arith.constant 2048 : index
    %78 = vector.load %arg2[%c0_31, %c2048] : memref<256x4096xbf16, #tpu.memory_space<vmem>>, vector<256x1024xbf16>
    %cst_32 = arith.constant dense<0.000000e+00> : vector<8x1024xf32>
    %79 = tpu.matmul %1, %78, %cst_32 {dimension_numbers = #tpu.dot_dimension_numbers<[1], [0], [0], [1], [0, 0, 1, 1], [], []>} : vector<8x256xbf16>, vector<256x1024xbf16>, vector<8x1024xf32> -> vector<8x1024xf32>
    %80 = vector.extract_strided_slice %79 {offsets = [0, 0], sizes = [8, 128], strides = [1, 1]} : vector<8x1024xf32> to vector<8x128xf32>
    %81 = vector.extract_strided_slice %79 {offsets = [0, 128], sizes = [8, 128], strides = [1, 1]} : vector<8x1024xf32> to vector<8x128xf32>
    %82 = arith.mulf %80, %80 : vector<8x128xf32>
    %83 = arith.mulf %81, %81 : vector<8x128xf32>
    %84 = arith.addf %82, %83 : vector<8x128xf32>
    %85 = math.sqrt %84 : vector<8x128xf32>
    %c8 = arith.constant 8 : index
    %c0_33 = arith.constant 0 : index
    %c0_34 = arith.constant 0 : index
    %c0_35 = arith.constant 0 : index
    %86 = vector.load %arg3[%c8, %c0_33, %c0_34, %c0_35] : memref<16x1x8x128xf32, #tpu.memory_space<vmem>>, vector<1x1x8x128xf32>
    %87 = vector.shape_cast %86 : vector<1x1x8x128xf32> to vector<8x128xf32>
    %88 = vector.shape_cast %85 : vector<8x128xf32> to vector<1x1x8x128xf32>
    tpu.vector_store %arg3[%c8, %c0_33, %c0_34, %c0_35], %88 {strides = array<i32>} : memref<16x1x8x128xf32, #tpu.memory_space<vmem>>, vector<1x1x8x128xf32>,
    %89 = vector.extract_strided_slice %79 {offsets = [0, 256], sizes = [8, 128], strides = [1, 1]} : vector<8x1024xf32> to vector<8x128xf32>
    %90 = vector.extract_strided_slice %79 {offsets = [0, 384], sizes = [8, 128], strides = [1, 1]} : vector<8x1024xf32> to vector<8x128xf32>
    %91 = arith.mulf %89, %89 : vector<8x128xf32>
    %92 = arith.mulf %90, %90 : vector<8x128xf32>
    %93 = arith.addf %91, %92 : vector<8x128xf32>
    %94 = math.sqrt %93 : vector<8x128xf32>
    %c9 = arith.constant 9 : index
    %c0_36 = arith.constant 0 : index
    %c0_37 = arith.constant 0 : index
    %c0_38 = arith.constant 0 : index
    %95 = vector.load %arg3[%c9, %c0_36, %c0_37, %c0_38] : memref<16x1x8x128xf32, #tpu.memory_space<vmem>>, vector<1x1x8x128xf32>
    %96 = vector.shape_cast %95 : vector<1x1x8x128xf32> to vector<8x128xf32>
    %97 = vector.shape_cast %94 : vector<8x128xf32> to vector<1x1x8x128xf32>
    tpu.vector_store %arg3[%c9, %c0_36, %c0_37, %c0_38], %97 {strides = array<i32>} : memref<16x1x8x128xf32, #tpu.memory_space<vmem>>, vector<1x1x8x128xf32>,
    %98 = vector.extract_strided_slice %79 {offsets = [0, 512], sizes = [8, 128], strides = [1, 1]} : vector<8x1024xf32> to vector<8x128xf32>
    %99 = vector.extract_strided_slice %79 {offsets = [0, 640], sizes = [8, 128], strides = [1, 1]} : vector<8x1024xf32> to vector<8x128xf32>
    %100 = arith.mulf %98, %98 : vector<8x128xf32>
    %101 = arith.mulf %99, %99 : vector<8x128xf32>
    %102 = arith.addf %100, %101 : vector<8x128xf32>
    %103 = math.sqrt %102 : vector<8x128xf32>
    %c10 = arith.constant 10 : index
    %c0_39 = arith.constant 0 : index
    %c0_40 = arith.constant 0 : index
    %c0_41 = arith.constant 0 : index
    %104 = vector.load %arg3[%c10, %c0_39, %c0_40, %c0_41] : memref<16x1x8x128xf32, #tpu.memory_space<vmem>>, vector<1x1x8x128xf32>
    %105 = vector.shape_cast %104 : vector<1x1x8x128xf32> to vector<8x128xf32>
    %106 = vector.shape_cast %103 : vector<8x128xf32> to vector<1x1x8x128xf32>
    tpu.vector_store %arg3[%c10, %c0_39, %c0_40, %c0_41], %106 {strides = array<i32>} : memref<16x1x8x128xf32, #tpu.memory_space<vmem>>, vector<1x1x8x128xf32>,
    %107 = vector.extract_strided_slice %79 {offsets = [0, 768], sizes = [8, 128], strides = [1, 1]} : vector<8x1024xf32> to vector<8x128xf32>
    %108 = vector.extract_strided_slice %79 {offsets = [0, 896], sizes = [8, 128], strides = [1, 1]} : vector<8x1024xf32> to vector<8x128xf32>
    %109 = arith.mulf %107, %107 : vector<8x128xf32>
    %110 = arith.mulf %108, %108 : vector<8x128xf32>
    %111 = arith.addf %109, %110 : vector<8x128xf32>
    %112 = math.sqrt %111 : vector<8x128xf32>
    %c11 = arith.constant 11 : index
    %c0_42 = arith.constant 0 : index
    %c0_43 = arith.constant 0 : index
    %c0_44 = arith.constant 0 : index
    %113 = vector.load %arg3[%c11, %c0_42, %c0_43, %c0_44] : memref<16x1x8x128xf32, #tpu.memory_space<vmem>>, vector<1x1x8x128xf32>
    %114 = vector.shape_cast %113 : vector<1x1x8x128xf32> to vector<8x128xf32>
    %115 = vector.shape_cast %112 : vector<8x128xf32> to vector<1x1x8x128xf32>
    tpu.vector_store %arg3[%c11, %c0_42, %c0_43, %c0_44], %115 {strides = array<i32>} : memref<16x1x8x128xf32, #tpu.memory_space<vmem>>, vector<1x1x8x128xf32>,
    %c0_45 = arith.constant 0 : index
    %c3072 = arith.constant 3072 : index
    %116 = vector.load %arg2[%c0_45, %c3072] : memref<256x4096xbf16, #tpu.memory_space<vmem>>, vector<256x1024xbf16>
    %cst_46 = arith.constant dense<0.000000e+00> : vector<8x1024xf32>
    %117 = tpu.matmul %1, %116, %cst_46 {dimension_numbers = #tpu.dot_dimension_numbers<[1], [0], [0], [1], [0, 0, 1, 1], [], []>} : vector<8x256xbf16>, vector<256x1024xbf16>, vector<8x1024xf32> -> vector<8x1024xf32>
    %118 = vector.extract_strided_slice %117 {offsets = [0, 0], sizes = [8, 128], strides = [1, 1]} : vector<8x1024xf32> to vector<8x128xf32>
    %119 = vector.extract_strided_slice %117 {offsets = [0, 128], sizes = [8, 128], strides = [1, 1]} : vector<8x1024xf32> to vector<8x128xf32>
    %120 = arith.mulf %118, %118 : vector<8x128xf32>
    %121 = arith.mulf %119, %119 : vector<8x128xf32>
    %122 = arith.addf %120, %121 : vector<8x128xf32>
    %123 = math.sqrt %122 : vector<8x128xf32>
    %c12 = arith.constant 12 : index
    %c0_47 = arith.constant 0 : index
    %c0_48 = arith.constant 0 : index
    %c0_49 = arith.constant 0 : index
    %124 = vector.load %arg3[%c12, %c0_47, %c0_48, %c0_49] : memref<16x1x8x128xf32, #tpu.memory_space<vmem>>, vector<1x1x8x128xf32>
    %125 = vector.shape_cast %124 : vector<1x1x8x128xf32> to vector<8x128xf32>
    %126 = vector.shape_cast %123 : vector<8x128xf32> to vector<1x1x8x128xf32>
    tpu.vector_store %arg3[%c12, %c0_47, %c0_48, %c0_49], %126 {strides = array<i32>} : memref<16x1x8x128xf32, #tpu.memory_space<vmem>>, vector<1x1x8x128xf32>,
    %127 = vector.extract_strided_slice %117 {offsets = [0, 256], sizes = [8, 128], strides = [1, 1]} : vector<8x1024xf32> to vector<8x128xf32>
    %128 = vector.extract_strided_slice %117 {offsets = [0, 384], sizes = [8, 128], strides = [1, 1]} : vector<8x1024xf32> to vector<8x128xf32>
    %129 = arith.mulf %127, %127 : vector<8x128xf32>
    %130 = arith.mulf %128, %128 : vector<8x128xf32>
    %131 = arith.addf %129, %130 : vector<8x128xf32>
    %132 = math.sqrt %131 : vector<8x128xf32>
    %c13 = arith.constant 13 : index
    %c0_50 = arith.constant 0 : index
    %c0_51 = arith.constant 0 : index
    %c0_52 = arith.constant 0 : index
    %133 = vector.load %arg3[%c13, %c0_50, %c0_51, %c0_52] : memref<16x1x8x128xf32, #tpu.memory_space<vmem>>, vector<1x1x8x128xf32>
    %134 = vector.shape_cast %133 : vector<1x1x8x128xf32> to vector<8x128xf32>
    %135 = vector.shape_cast %132 : vector<8x128xf32> to vector<1x1x8x128xf32>
    tpu.vector_store %arg3[%c13, %c0_50, %c0_51, %c0_52], %135 {strides = array<i32>} : memref<16x1x8x128xf32, #tpu.memory_space<vmem>>, vector<1x1x8x128xf32>,
    %136 = vector.extract_strided_slice %117 {offsets = [0, 512], sizes = [8, 128], strides = [1, 1]} : vector<8x1024xf32> to vector<8x128xf32>
    %137 = vector.extract_strided_slice %117 {offsets = [0, 640], sizes = [8, 128], strides = [1, 1]} : vector<8x1024xf32> to vector<8x128xf32>
    %138 = arith.mulf %136, %136 : vector<8x128xf32>
    %139 = arith.mulf %137, %137 : vector<8x128xf32>
    %140 = arith.addf %138, %139 : vector<8x128xf32>
    %141 = math.sqrt %140 : vector<8x128xf32>
    %c14 = arith.constant 14 : index
    %c0_53 = arith.constant 0 : index
    %c0_54 = arith.constant 0 : index
    %c0_55 = arith.constant 0 : index
    %142 = vector.load %arg3[%c14, %c0_53, %c0_54, %c0_55] : memref<16x1x8x128xf32, #tpu.memory_space<vmem>>, vector<1x1x8x128xf32>
    %143 = vector.shape_cast %142 : vector<1x1x8x128xf32> to vector<8x128xf32>
    %144 = vector.shape_cast %141 : vector<8x128xf32> to vector<1x1x8x128xf32>
    tpu.vector_store %arg3[%c14, %c0_53, %c0_54, %c0_55], %144 {strides = array<i32>} : memref<16x1x8x128xf32, #tpu.memory_space<vmem>>, vector<1x1x8x128xf32>,
    %145 = vector.extract_strided_slice %117 {offsets = [0, 768], sizes = [8, 128], strides = [1, 1]} : vector<8x1024xf32> to vector<8x128xf32>
    %146 = vector.extract_strided_slice %117 {offsets = [0, 896], sizes = [8, 128], strides = [1, 1]} : vector<8x1024xf32> to vector<8x128xf32>
    %147 = arith.mulf %145, %145 : vector<8x128xf32>
    %148 = arith.mulf %146, %146 : vector<8x128xf32>
    %149 = arith.addf %147, %148 : vector<8x128xf32>
    %150 = math.sqrt %149 : vector<8x128xf32>
    %c15 = arith.constant 15 : index
    %c0_56 = arith.constant 0 : index
    %c0_57 = arith.constant 0 : index
    %c0_58 = arith.constant 0 : index
    %151 = vector.load %arg3[%c15, %c0_56, %c0_57, %c0_58] : memref<16x1x8x128xf32, #tpu.memory_space<vmem>>, vector<1x1x8x128xf32>
    %152 = vector.shape_cast %151 : vector<1x1x8x128xf32> to vector<8x128xf32>
    %153 = vector.shape_cast %150 : vector<8x128xf32> to vector<1x1x8x128xf32>
    tpu.vector_store %arg3[%c15, %c0_56, %c0_57, %c0_58], %153 {strides = array<i32>} : memref<16x1x8x128xf32, #tpu.memory_space<vmem>>, vector<1x1x8x128xf32>,
    return
  }
  func.func @transform_0(%arg0: i32) -> (i32, i32, i32) {
    %c0_i32 = arith.constant 0 : i32
    %c0_i32_0 = arith.constant 0 : i32
    %c0_i32_1 = arith.constant 0 : i32
    return %arg0, %c0_i32, %c0_i32_0 : i32, i32, i32
  }
  func.func @transform_1(%arg0: i32) -> (i32, i32) {
    %c0_i32 = arith.constant 0 : i32
    %c0_i32_0 = arith.constant 0 : i32
    %c0_i32_1 = arith.constant 0 : i32
    return %c0_i32, %c0_i32_0 : i32, i32
  }
  func.func @transform_2(%arg0: i32) -> (i32, i32, i32, i32) {
    %c0_i32 = arith.constant 0 : i32
    %c0_i32_0 = arith.constant 0 : i32
    %c0_i32_1 = arith.constant 0 : i32
    %c0_i32_2 = arith.constant 0 : i32
    return %c0_i32, %arg0, %c0_i32_0, %c0_i32_1 : i32, i32, i32, i32
  }
}

</mosaic_0001>

<bundles_post_ra>
// kernel: tpu_custom_call.1
= control target key start
LH: loop header
LB: loop body
LE: loop exit
PB: predicated region body
PF: predicated region fallthrough
CT: control target
= control target key end

     0   :  { %7 = vsyncpa [#allocation3], 0  ;;  %s4782_s0 = inlined_call_operand.hbm [shape: bf16[1,8,256], index: 0, kind: input, shape index: {}]   ;;  %s4783_s1 = inlined_call_operand.hbm [shape: bf16[256,4096], index: 1, kind: input, shape index: {}]   ;;  %s4784_s2 = inlined_call_operand.hbm [shape: f32[16,1,8,128], index: 2, kind: output, shape index: {}]  }
   0x1   :  { %8 = vsyncpa [#allocation6], 0 }
   0x2   :  { %9 = vsyncpa [#allocation4], 0  ;;  %s4609_s9 = smov [#allocation2]   ;;  %s4610_s11 = smov [#allocation5]  }
   0x3   :  { %s16_s10 = sshll.u32 %s4609_s9, 4  ;;  %s25_s12 = sshll.u32 %s4610_s11, 4  ;;  %s17_s10 = int_to_ptr.vmem [resolvable:$true] %s16_s10  ;;  %s4630_s12 = int_to_ptr.vmem [resolvable:$true] %s25_s12 }
   0x4   :  { %s4537_s15 = scalar_lea.hbm %s4782_s0, 128 }
   0x5   :  { %p4538_p0 = scmp.ne.s32.totalorder %s4782_s0, %s4537_s15  ;;  %p4541_p1 = scmp.lt.u32.totalorder %s4537_s15, %s4782_s0 }
   0x7   :  { %p4543_p2 = pnand %p4541_p1, %p4538_p0 }
   0x9   :  { %4546 = shalt.err (!%p4543_p2)
}
   0xa   :  { %s4547_s20 = scalar_lea.vmem %s17_s10, 128  ;;  %p4552_p4 = scmp.lt.s32.totalorder %s17_s10, %s17_s10 }
   0xb   :  { %p4548_p3 = scmp.ne.s32.totalorder %s17_s10, %s4547_s20  ;;  %p4553_p5 = scmp.lt.s32.totalorder %s4547_s20, %s4547_s20 }
   0xd   :  { %p4554_p6 = por %p4553_p5, %p4552_p4 }
   0xf   :  { %p4555_p7 = pnand %p4554_p6, %p4548_p3 }
  0x11   :  { %4558 = shalt.err (!%p4555_p7)
}
  0x12   :  { %19 = dma.hbm_to_vmem [thread:$0]  %s4782_s0, 128, %s17_s10, [#allocation3]  }
  0x13   :  { %s4559_s25 = scalar_lea.hbm %s4783_s1, 65536 }
  0x14   :  { %p4560_p8 = scmp.ne.s32.totalorder %s4783_s1, %s4559_s25  ;;  %p4563_p9 = scmp.lt.u32.totalorder %s4559_s25, %s4783_s1 }
  0x16   :  { %p4565_p10 = pnand %p4563_p9, %p4560_p8 }
  0x18   :  { %4568 = shalt.err (!%p4565_p10)
}
  0x19   :  { %s4569_s30 = scalar_lea.vmem %s4630_s12, 65536  ;;  %p4574_p12 = scmp.lt.s32.totalorder %s4630_s12, %s4630_s12 }
  0x1a   :  { %p4570_p11 = scmp.ne.s32.totalorder %s4630_s12, %s4569_s30  ;;  %p4575_p13 = scmp.lt.s32.totalorder %s4569_s30, %s4569_s30 }
  0x1c   :  { %p4576_p0 = por %p4575_p13, %p4574_p12 }
  0x1e   :  { %p4577_p1 = pnand %p4576_p0, %p4570_p11 }
  0x20   :  { %4580 = shalt.err (!%p4577_p1)
}
  0x21   :  { %s4611_s0 = smov 2048   ;;  %s4612_s3 = smov 128  }
  0x22   :  { %31 = dma.hbm_to_vmem [thread:$0]  %s4783_s1, 65536, %s4630_s12, [#allocation6], %s4611_s0, %s4611_s0, %s4612_s3  }
  0x23   :  { %4603 = dma.done.wait [#allocation3], 128  }
  0x24   :  { %4604 = vsyncadd [#allocation3], 4294967168 }
  0x25   :  { %4605 = dma.done.wait [#allocation6], 65536  }
  0x26   :  { %4606 = vsyncadd [#allocation6], 4294901760  ;;  %v39_v0 = vld [vmem:[#allocation5] sm:$0xff]  ;;  %v40_v2 = vld [vmem:[#allocation5 + $0x8] sm:$0xff]  ;;  %s4613_s1 = smov [#allocation7]  }
  0x27   :  { %v43_v1 = vld [vmem:[#allocation5 + $0x80] sm:$0xff]  ;;  %v44_v4 = vld [vmem:[#allocation5 + $0x88] sm:$0xff]  ;;  %v4662_v53 = vld [vmem:[#allocation2] sm:$0xff]  ;;  %s3970_s6 = sshll.u32 %s4613_s1, 4  ;;  %s3971_s6 = int_to_ptr.vmem [resolvable:$true] %s3970_s6 }
  0x28   :  { %v3986_v3 = vcombine.high %v39_v0, %v43_v1  ;;  %v3985_v5 = vcombine.low %v39_v0, %v43_v1  ;;  %v47_v6 = vld [vmem:[#allocation5 + $0x100] sm:$0xff]  ;;  %v3988_v8 = vcombine.high %v40_v2, %v44_v4  ;;  %v3987_v9 = vcombine.low %v40_v2, %v44_v4  ;;  %v48_v11 = vld [vmem:[#allocation5 + $0x108] sm:$0xff]  ;;  %s4581_s7 = scalar_lea.vmem %s3971_s6, 2048  ;;  %p4586_p3 = scmp.lt.s32.totalorder %s3971_s6, %s3971_s6 }
  0x29   :  { %v51_v7 = vld [vmem:[#allocation5 + $0x180] sm:$0xff]  ;;  %v52_v12 = vld [vmem:[#allocation5 + $0x188] sm:$0xff]  ;;  %v4666_v57 = vcombine.high %v4662_v53, %v4662_v53  ;;  %p4582_p2 = scmp.ne.s32.totalorder %s3971_s6, %s4581_s7  ;;  %p4587_p4 = scmp.lt.s32.totalorder %s4581_s7, %s4581_s7 }
  0x2a   :  { %v3994_v10 = vcombine.high %v47_v6, %v51_v7  ;;  %v55_v13 = vld [vmem:[#allocation5 + $0x200] sm:$0xff]  ;;  %814 = vmatprep.subr.bf16.mxu0 %v3986_v3  ;;  %v3996_v14 = vcombine.high %v48_v11, %v52_v12  ;;  %v56_v16 = vld [vmem:[#allocation5 + $0x208] sm:$0xff]  ;;  %855 = vmatprep.subr.bf16.mxu1 %v3988_v8  ;;  %v3993_v18 = vcombine.low %v47_v6, %v51_v7 }
  0x2b   :  { %v59_v15 = vld [vmem:[#allocation5 + $0x280] sm:$0xff]  ;;  %v60_v17 = vld [vmem:[#allocation5 + $0x288] sm:$0xff]  ;;  %815 = vmatpush1.bf16.msra.mxu0 %v3985_v5  ;;  %856 = vmatpush1.bf16.msra.mxu1 %v3987_v9  ;;  %v3995_v19 = vcombine.low %v48_v11, %v52_v12  ;;  %p4588_p5 = por %p4587_p4, %p4586_p3 }
  0x2c   :  { %816 = vmatprep.subr.bf16.mxu0 %v3994_v10  ;;  %v4002_v20 = vcombine.high %v55_v13, %v59_v15  ;;  %857 = vmatprep.subr.bf16.mxu1 %v3996_v14  ;;  %v4004_v21 = vcombine.high %v56_v16, %v60_v17  ;;  %v63_v22 = vld [vmem:[#allocation5 + $0x300] sm:$0xff]  ;;  %v64_v24 = vld [vmem:[#allocation5 + $0x308] sm:$0xff]  ;;  %v4001_v26 = vcombine.low %v55_v13, %v59_v15 }
  0x2d   :  { %v67_v23 = vld [vmem:[#allocation5 + $0x380] sm:$0xff]  ;;  %v68_v25 = vld [vmem:[#allocation5 + $0x388] sm:$0xff]  ;;  %v4003_v27 = vcombine.low %v56_v16, %v60_v17  ;;  %846 = vmatprep.mubr.bf16.mxu0 %v4666_v57  ;;  %887 = vmatprep.mubr.bf16.mxu1 %v4666_v57  ;;  %p4589_p6 = pnand %p4588_p5, %p4582_p2 }
  0x2e   :  { %v4010_v28 = vcombine.high %v63_v22, %v67_v23  ;;  %v4012_v29 = vcombine.high %v64_v24, %v68_v25  ;;  %v71_v30 = vld [vmem:[#allocation5 + $0x400] sm:$0xff]  ;;  %v72_v32 = vld [vmem:[#allocation5 + $0x408] sm:$0xff]  ;;  %v4009_v34 = vcombine.low %v63_v22, %v67_v23  ;;  %v4011_v35 = vcombine.low %v64_v24, %v68_v25 }
  0x2f   :  { %817 = vmatpush1.bf16.msra.mxu0 %v3993_v18  ;;  %858 = vmatpush1.bf16.msra.mxu1 %v3995_v19  ;;  %v75_v31 = vld [vmem:[#allocation5 + $0x480] sm:$0xff]  ;;  %v76_v33 = vld [vmem:[#allocation5 + $0x488] sm:$0xff] }
  0x30   :  { %818 = vmatprep.subr.bf16.mxu0 %v4002_v20  ;;  %859 = vmatprep.subr.bf16.mxu1 %v4004_v21  ;;  %v4018_v36 = vcombine.high %v71_v30, %v75_v31  ;;  %v4020_v37 = vcombine.high %v72_v32, %v76_v33  ;;  %v79_v38 = vld [vmem:[#allocation5 + $0x500] sm:$0xff]  ;;  %v80_v40 = vld [vmem:[#allocation5 + $0x508] sm:$0xff]  ;;  %v4017_v42 = vcombine.low %v71_v30, %v75_v31 }
  0x31   :  { %v83_v39 = vld [vmem:[#allocation5 + $0x580] sm:$0xff]  ;;  %v84_v41 = vld [vmem:[#allocation5 + $0x588] sm:$0xff]  ;;  %v4019_v43 = vcombine.low %v72_v32, %v76_v33 }
  0x32   :  { %v4026_v44 = vcombine.high %v79_v38, %v83_v39  ;;  %v4028_v45 = vcombine.high %v80_v40, %v84_v41  ;;  %v87_v46 = vld [vmem:[#allocation5 + $0x600] sm:$0xff]  ;;  %v88_v48 = vld [vmem:[#allocation5 + $0x608] sm:$0xff]  ;;  %v4025_v50 = vcombine.low %v79_v38, %v83_v39  ;;  %v4027_v51 = vcombine.low %v80_v40, %v84_v41 }
  0x33   :  { %819 = vmatpush1.bf16.msra.mxu0 %v4001_v26  ;;  %860 = vmatpush1.bf16.msra.mxu1 %v4003_v27  ;;  %v91_v47 = vld [vmem:[#allocation5 + $0x680] sm:$0xff]  ;;  %v92_v49 = vld [vmem:[#allocation5 + $0x688] sm:$0xff] }
  0x34   :  { %820 = vmatprep.subr.bf16.mxu0 %v4010_v28  ;;  %861 = vmatprep.subr.bf16.mxu1 %v4012_v29  ;;  %v4034_v52 = vcombine.high %v87_v46, %v91_v47  ;;  %v4036_v54 = vcombine.high %v88_v48, %v92_v49  ;;  %v95_v55 = vld [vmem:[#allocation5 + $0x700] sm:$0xff]  ;;  %v96_v58 = vld [vmem:[#allocation5 + $0x708] sm:$0xff]  ;;  %v4033_v60 = vcombine.low %v87_v46, %v91_v47 }
  0x35   :  { %v99_v56 = vld [vmem:[#allocation5 + $0x780] sm:$0xff]  ;;  %v100_v59 = vld [vmem:[#allocation5 + $0x788] sm:$0xff]  ;;  %v4035_v61 = vcombine.low %v88_v48, %v92_v49 }
  0x36   :  { %v4042_v62 = vcombine.high %v95_v55, %v99_v56  ;;  %v4044_v63 = vcombine.high %v96_v58, %v100_v59  ;;  %v103_v0 = vld [vmem:[#allocation5 + $0x800] sm:$0xff]  ;;  %v104_v2 = vld [vmem:[#allocation5 + $0x808] sm:$0xff]  ;;  %v4041_v4 = vcombine.low %v95_v55, %v99_v56  ;;  %v4043_v5 = vcombine.low %v96_v58, %v100_v59 }
  0x37   :  { %821 = vmatpush1.bf16.msra.mxu0 %v4009_v34  ;;  %862 = vmatpush1.bf16.msra.mxu1 %v4011_v35  ;;  %v107_v1 = vld [vmem:[#allocation5 + $0x880] sm:$0xff]  ;;  %v108_v3 = vld [vmem:[#allocation5 + $0x888] sm:$0xff] }
  0x38   :  { %822 = vmatprep.subr.bf16.mxu0 %v4018_v36  ;;  %863 = vmatprep.subr.bf16.mxu1 %v4020_v37  ;;  %v4050_v6 = vcombine.high %v103_v0, %v107_v1  ;;  %v4052_v7 = vcombine.high %v104_v2, %v108_v3  ;;  %v111_v8 = vld [vmem:[#allocation5 + $0x900] sm:$0xff]  ;;  %v112_v10 = vld [vmem:[#allocation5 + $0x908] sm:$0xff]  ;;  %v4049_v12 = vcombine.low %v103_v0, %v107_v1 }
  0x39   :  { %v115_v9 = vld [vmem:[#allocation5 + $0x980] sm:$0xff]  ;;  %v116_v11 = vld [vmem:[#allocation5 + $0x988] sm:$0xff]  ;;  %v4051_v13 = vcombine.low %v104_v2, %v108_v3  ;;  %v41_v2 = vld [vmem:[#allocation5 + $0x10] sm:$0xff] }
  0x3a   :  { %v4058_v14 = vcombine.high %v111_v8, %v115_v9  ;;  %v4060_v15 = vcombine.high %v112_v10, %v116_v11  ;;  %v119_v16 = vld [vmem:[#allocation5 + $0xa00] sm:$0xff]  ;;  %v120_v18 = vld [vmem:[#allocation5 + $0xa08] sm:$0xff]  ;;  %v4057_v20 = vcombine.low %v111_v8, %v115_v9  ;;  %v4059_v21 = vcombine.low %v112_v10, %v116_v11  ;;  %v45_v3 = vld [vmem:[#allocation5 + $0x90] sm:$0xff] }
  0x3b   :  { %823 = vmatpush1.bf16.msra.mxu0 %v4017_v42  ;;  %864 = vmatpush1.bf16.msra.mxu1 %v4019_v43  ;;  %v123_v17 = vld [vmem:[#allocation5 + $0xa80] sm:$0xff]  ;;  %v124_v19 = vld [vmem:[#allocation5 + $0xa88] sm:$0xff]  ;;  %v3990_v8 = vcombine.high %v41_v2, %v45_v3  ;;  %v49_v10 = vld [vmem:[#allocation5 + $0x110] sm:$0xff] }
  0x3c   :  { %824 = vmatprep.subr.bf16.mxu0 %v4026_v44  ;;  %865 = vmatprep.subr.bf16.mxu1 %v4028_v45  ;;  %v4066_v22 = vcombine.high %v119_v16, %v123_v17  ;;  %v4068_v23 = vcombine.high %v120_v18, %v124_v19  ;;  %v127_v24 = vld [vmem:[#allocation5 + $0xb00] sm:$0xff]  ;;  %v128_v26 = vld [vmem:[#allocation5 + $0xb08] sm:$0xff]  ;;  %v4065_v28 = vcombine.low %v119_v16, %v123_v17  ;;  %v53_v11 = vld [vmem:[#allocation5 + $0x190] sm:$0xff] }
  0x3d   :  { %v131_v25 = vld [vmem:[#allocation5 + $0xb80] sm:$0xff]  ;;  %v132_v27 = vld [vmem:[#allocation5 + $0xb88] sm:$0xff]  ;;  %v4067_v29 = vcombine.low %v120_v18, %v124_v19  ;;  %v3998_v17 = vcombine.high %v49_v10, %v53_v11  ;;  %v57_v19 = vld [vmem:[#allocation5 + $0x210] sm:$0xff] }
  0x3e   :  { %v4074_v30 = vcombine.high %v127_v24, %v131_v25  ;;  %v4076_v31 = vcombine.high %v128_v26, %v132_v27  ;;  %v135_v32 = vld [vmem:[#allocation5 + $0xc00] sm:$0xff]  ;;  %v136_v34 = vld [vmem:[#allocation5 + $0xc08] sm:$0xff]  ;;  %v4073_v36 = vcombine.low %v127_v24, %v131_v25  ;;  %v4075_v37 = vcombine.low %v128_v26, %v132_v27  ;;  %v65_v26 = vld [vmem:[#allocation5 + $0x310] sm:$0xff] }
  0x3f   :  { %825 = vmatpush1.bf16.msra.mxu0 %v4025_v50  ;;  %866 = vmatpush1.bf16.msra.mxu1 %v4027_v51  ;;  %v139_v33 = vld [vmem:[#allocation5 + $0xc80] sm:$0xff]  ;;  %v140_v35 = vld [vmem:[#allocation5 + $0xc88] sm:$0xff]  ;;  %v69_v27 = vld [vmem:[#allocation5 + $0x390] sm:$0xff] }
  0x40   :  { %826 = vmatprep.subr.bf16.mxu0 %v4034_v52  ;;  %867 = vmatprep.subr.bf16.mxu1 %v4036_v54  ;;  %v4082_v38 = vcombine.high %v135_v32, %v139_v33  ;;  %v4084_v39 = vcombine.high %v136_v34, %v140_v35  ;;  %v143_v40 = vld [vmem:[#allocation5 + $0xd00] sm:$0xff]  ;;  %v144_v42 = vld [vmem:[#allocation5 + $0xd08] sm:$0xff]  ;;  %v4081_v44 = vcombine.low %v135_v32, %v139_v33 }
  0x41   :  { %v147_v41 = vld [vmem:[#allocation5 + $0xd80] sm:$0xff]  ;;  %v148_v43 = vld [vmem:[#allocation5 + $0xd88] sm:$0xff]  ;;  %v4083_v45 = vcombine.low %v136_v34, %v140_v35  ;;  %v4014_v32 = vcombine.high %v65_v26, %v69_v27  ;;  %v73_v34 = vld [vmem:[#allocation5 + $0x410] sm:$0xff] }
  0x42   :  { %v4090_v46 = vcombine.high %v143_v40, %v147_v41  ;;  %v4092_v47 = vcombine.high %v144_v42, %v148_v43  ;;  %v151_v48 = vld [vmem:[#allocation5 + $0xe00] sm:$0xff]  ;;  %v152_v50 = vld [vmem:[#allocation5 + $0xe08] sm:$0xff]  ;;  %v4089_v52 = vcombine.low %v143_v40, %v147_v41  ;;  %v4091_v54 = vcombine.low %v144_v42, %v148_v43  ;;  %v77_v35 = vld [vmem:[#allocation5 + $0x490] sm:$0xff] }
  0x43   :  { %827 = vmatpush1.bf16.msra.mxu0 %v4033_v60  ;;  %868 = vmatpush1.bf16.msra.mxu1 %v4035_v61  ;;  %v155_v49 = vld [vmem:[#allocation5 + $0xe80] sm:$0xff]  ;;  %v156_v51 = vld [vmem:[#allocation5 + $0xe88] sm:$0xff]  ;;  %v4022_v40 = vcombine.high %v73_v34, %v77_v35  ;;  %v81_v42 = vld [vmem:[#allocation5 + $0x510] sm:$0xff] }
  0x44   :  { %828 = vmatprep.subr.bf16.mxu0 %v4042_v62  ;;  %869 = vmatprep.subr.bf16.mxu1 %v4044_v63  ;;  %v4098_v55 = vcombine.high %v151_v48, %v155_v49  ;;  %v4100_v56 = vcombine.high %v152_v50, %v156_v51  ;;  %v159_v58 = vld [vmem:[#allocation5 + $0xf00] sm:$0xff]  ;;  %v160_v60 = vld [vmem:[#allocation5 + $0xf08] sm:$0xff]  ;;  %v4097_v62 = vcombine.low %v151_v48, %v155_v49  ;;  %v85_v43 = vld [vmem:[#allocation5 + $0x590] sm:$0xff] }
  0x45   :  { %v163_v59 = vld [vmem:[#allocation5 + $0xf80] sm:$0xff]  ;;  %v164_v61 = vld [vmem:[#allocation5 + $0xf88] sm:$0xff]  ;;  %v4099_v63 = vcombine.low %v152_v50, %v156_v51  ;;  %v4030_v48 = vcombine.high %v81_v42, %v85_v43  ;;  %v89_v50 = vld [vmem:[#allocation5 + $0x610] sm:$0xff] }
  0x46   :  { %v4106_v0 = vcombine.high %v159_v58, %v163_v59  ;;  %v4108_v1 = vcombine.high %v160_v60, %v164_v61  ;;  %v93_v51 = vld [vmem:[#allocation5 + $0x690] sm:$0xff] }
  0x47   :  { %829 = vmatpush1.bf16.msra.mxu0 %v4041_v4  ;;  %870 = vmatpush1.bf16.msra.mxu1 %v4043_v5  ;;  %v42_v4 = vld [vmem:[#allocation5 + $0x18] sm:$0xff] }
  0x48   :  { %830 = vmatprep.subr.bf16.mxu0 %v4050_v6  ;;  %871 = vmatprep.subr.bf16.mxu1 %v4052_v7  ;;  %v46_v5 = vld [vmem:[#allocation5 + $0x98] sm:$0xff]  ;;  %v4105_v6 = vcombine.low %v159_v58, %v163_v59  ;;  %v4107_v7 = vcombine.low %v160_v60, %v164_v61  ;;  %v4038_v58 = vcombine.high %v89_v50, %v93_v51  ;;  %v97_v60 = vld [vmem:[#allocation5 + $0x710] sm:$0xff] }
  0x49   :  { %v3992_v9 = vcombine.high %v42_v4, %v46_v5  ;;  %v3991_v16 = vcombine.low %v42_v4, %v46_v5  ;;  %v101_v61 = vld [vmem:[#allocation5 + $0x790] sm:$0xff] }
  0x4a   :  { %v105_v4 = vld [vmem:[#allocation5 + $0x810] sm:$0xff] }
  0x4b   :  { %831 = vmatpush1.bf16.msra.mxu0 %v4049_v12  ;;  %872 = vmatpush1.bf16.msra.mxu1 %v4051_v13  ;;  %v4672_v12 = vcombine.low %v4662_v53, %v4662_v53  ;;  %v50_v13 = vld [vmem:[#allocation5 + $0x118] sm:$0xff]  ;;  %v3997_v53 = vcombine.low %v49_v10, %v53_v11  ;;  %v109_v5 = vld [vmem:[#allocation5 + $0x890] sm:$0xff] }
  0x4c   :  { %832 = vmatprep.subr.bf16.mxu0 %v4058_v14  ;;  %873 = vmatprep.subr.bf16.mxu1 %v4060_v15  ;;  %v54_v14 = vld [vmem:[#allocation5 + $0x198] sm:$0xff]  ;;  %v3989_v15 = vcombine.low %v41_v2, %v45_v3  ;;  %v4046_v2 = vcombine.high %v97_v60, %v101_v61  ;;  %v4054_v10 = vcombine.high %v105_v4, %v109_v5 }
  0x4d   :  { %v4000_v18 = vcombine.high %v50_v13, %v54_v14 }
  0x4f   :  { %833 = vmatpush1.bf16.msra.mxu0 %v4057_v20  ;;  %874 = vmatpush1.bf16.msra.mxu1 %v4059_v21  ;;  %v61_v20 = vld [vmem:[#allocation5 + $0x290] sm:$0xff]  ;;  %v58_v21 = vld [vmem:[#allocation5 + $0x218] sm:$0xff] }
  0x50   :  { %834 = vmatprep.subr.bf16.mxu0 %v4066_v22  ;;  %875 = vmatprep.subr.bf16.mxu1 %v4068_v23  ;;  %v62_v22 = vld [vmem:[#allocation5 + $0x298] sm:$0xff]  ;;  %v3999_v23 = vcombine.low %v50_v13, %v54_v14  ;;  %v4006_v24 = vcombine.high %v57_v19, %v61_v20  ;;  %v113_v13 = vld [vmem:[#allocation5 + $0x910] sm:$0xff] }
  0x51   :  { %v4008_v25 = vcombine.high %v58_v21, %v62_v22  ;;  %v117_v14 = vld [vmem:[#allocation5 + $0x990] sm:$0xff] }
  0x53   :  { %835 = vmatpush1.bf16.msra.mxu0 %v4065_v28  ;;  %876 = vmatpush1.bf16.msra.mxu1 %v4067_v29  ;;  %v66_v28 = vld [vmem:[#allocation5 + $0x318] sm:$0xff] }
  0x54   :  { %836 = vmatprep.subr.bf16.mxu0 %v4074_v30  ;;  %877 = vmatprep.subr.bf16.mxu1 %v4076_v31  ;;  %v70_v29 = vld [vmem:[#allocation5 + $0x398] sm:$0xff]  ;;  %v4005_v30 = vcombine.low %v57_v19, %v61_v20  ;;  %v4007_v31 = vcombine.low %v58_v21, %v62_v22  ;;  %v4062_v19 = vcombine.high %v113_v13, %v117_v14  ;;  %v121_v21 = vld [vmem:[#allocation5 + $0xa10] sm:$0xff] }
  0x55   :  { %v4016_v33 = vcombine.high %v66_v28, %v70_v29  ;;  %v125_v22 = vld [vmem:[#allocation5 + $0xa90] sm:$0xff] }
  0x57   :  { %837 = vmatpush1.bf16.msra.mxu0 %v4073_v36  ;;  %878 = vmatpush1.bf16.msra.mxu1 %v4075_v37  ;;  %v74_v36 = vld [vmem:[#allocation5 + $0x418] sm:$0xff] }
  0x58   :  { %838 = vmatprep.subr.bf16.mxu0 %v4082_v38  ;;  %879 = vmatprep.subr.bf16.mxu1 %v4084_v39  ;;  %v78_v37 = vld [vmem:[#allocation5 + $0x498] sm:$0xff]  ;;  %v4013_v38 = vcombine.low %v65_v26, %v69_v27  ;;  %v4015_v39 = vcombine.low %v66_v28, %v70_v29  ;;  %v4070_v26 = vcombine.high %v121_v21, %v125_v22  ;;  %v129_v28 = vld [vmem:[#allocation5 + $0xb10] sm:$0xff] }
  0x59   :  { %v4024_v41 = vcombine.high %v74_v36, %v78_v37  ;;  %v133_v29 = vld [vmem:[#allocation5 + $0xb90] sm:$0xff] }
  0x5b   :  { %839 = vmatpush1.bf16.msra.mxu0 %v4081_v44  ;;  %880 = vmatpush1.bf16.msra.mxu1 %v4083_v45  ;;  %v82_v44 = vld [vmem:[#allocation5 + $0x518] sm:$0xff] }
  0x5c   :  { %840 = vmatprep.subr.bf16.mxu0 %v4090_v46  ;;  %881 = vmatprep.subr.bf16.mxu1 %v4092_v47  ;;  %v86_v45 = vld [vmem:[#allocation5 + $0x598] sm:$0xff]  ;;  %v4021_v46 = vcombine.low %v73_v34, %v77_v35  ;;  %v4023_v47 = vcombine.low %v74_v36, %v78_v37  ;;  %v4078_v34 = vcombine.high %v129_v28, %v133_v29  ;;  %v137_v36 = vld [vmem:[#allocation5 + $0xc10] sm:$0xff] }
  0x5d   :  { %v4032_v49 = vcombine.high %v82_v44, %v86_v45  ;;  %v141_v37 = vld [vmem:[#allocation5 + $0xc90] sm:$0xff] }
  0x5f   :  { %841 = vmatpush1.bf16.msra.mxu0 %v4089_v52  ;;  %882 = vmatpush1.bf16.msra.mxu1 %v4091_v54  ;;  %v90_v52 = vld [vmem:[#allocation5 + $0x618] sm:$0xff] }
  0x60   :  { %842 = vmatprep.subr.bf16.mxu0 %v4098_v55  ;;  %883 = vmatprep.subr.bf16.mxu1 %v4100_v56  ;;  %v94_v54 = vld [vmem:[#allocation5 + $0x698] sm:$0xff]  ;;  %v4029_v55 = vcombine.low %v81_v42, %v85_v43  ;;  %v4031_v56 = vcombine.low %v82_v44, %v86_v45  ;;  %v4086_v42 = vcombine.high %v137_v36, %v141_v37  ;;  %v145_v44 = vld [vmem:[#allocation5 + $0xd10] sm:$0xff] }
  0x61   :  { %v4040_v59 = vcombine.high %v90_v52, %v94_v54  ;;  %v149_v45 = vld [vmem:[#allocation5 + $0xd90] sm:$0xff] }
  0x63   :  { %843 = vmatpush1.bf16.msra.mxu0 %v4097_v62  ;;  %884 = vmatpush1.bf16.msra.mxu1 %v4099_v63  ;;  %v98_v62 = vld [vmem:[#allocation5 + $0x718] sm:$0xff] }
  0x64   :  { %844 = vmatprep.subr.bf16.mxu0 %v4106_v0  ;;  %885 = vmatprep.subr.bf16.mxu1 %v4108_v1  ;;  %v102_v63 = vld [vmem:[#allocation5 + $0x798] sm:$0xff]  ;;  %v4037_v0 = vcombine.low %v89_v50, %v93_v51  ;;  %v4039_v1 = vcombine.low %v90_v52, %v94_v54  ;;  %v4094_v50 = vcombine.high %v145_v44, %v149_v45  ;;  %v153_v52 = vld [vmem:[#allocation5 + $0xe10] sm:$0xff] }
  0x65   :  { %v4048_v3 = vcombine.high %v98_v62, %v102_v63  ;;  %v157_v54 = vld [vmem:[#allocation5 + $0xe90] sm:$0xff] }
  0x67   :  { %845 = vmatpush1.bf16.msra.mxu0 %v4105_v6  ;;  %886 = vmatpush1.bf16.msra.mxu1 %v4107_v7  ;;  %v106_v6 = vld [vmem:[#allocation5 + $0x818] sm:$0xff] }
  0x68   :  { %896 = vmatprep.subr.bf16.mxu0 %v3990_v8  ;;  %937 = vmatprep.subr.bf16.mxu1 %v3992_v9  ;;  %v110_v7 = vld [vmem:[#allocation5 + $0x898] sm:$0xff]  ;;  %v4045_v8 = vcombine.low %v97_v60, %v101_v61  ;;  %v4047_v9 = vcombine.low %v98_v62, %v102_v63  ;;  %v4102_v60 = vcombine.high %v153_v52, %v157_v54  ;;  %v161_v62 = vld [vmem:[#allocation5 + $0xf10] sm:$0xff] }
  0x69   :  { %v4056_v11 = vcombine.high %v106_v6, %v110_v7  ;;  %v165_v63 = vld [vmem:[#allocation5 + $0xf90] sm:$0xff] }
  0x6a   :  { %847 = vmatmul.mubr.bf16.vlgmr.msra.gmra.mrb[0].mxu0 %v4672_v12  ;;  %888 = vmatmul.mubr.bf16.vlgmr.msra.gmra.mrb[0].mxu1 %v4672_v12 }
  0x6b   :  { %897 = vmatpush1.bf16.msra.mxu0 %v3989_v15  ;;  %938 = vmatpush1.bf16.msra.mxu1 %v3991_v16  ;;  %v114_v15 = vld [vmem:[#allocation5 + $0x918] sm:$0xff] }
  0x6c   :  { %898 = vmatprep.subr.bf16.mxu0 %v3998_v17  ;;  %939 = vmatprep.subr.bf16.mxu1 %v4000_v18  ;;  %v118_v16 = vld [vmem:[#allocation5 + $0x998] sm:$0xff]  ;;  %v4053_v17 = vcombine.low %v105_v4, %v109_v5  ;;  %v4055_v18 = vcombine.low %v106_v6, %v110_v7  ;;  %v4110_v4 = vcombine.high %v161_v62, %v165_v63  ;;  %v1025_v6 = vld [vmem:[#allocation5 + $0x20] sm:$0xff] }
  0x6d   :  { %928 = vmatprep.mubr.bf16.mxu0 %v4666_v57  ;;  %969 = vmatprep.mubr.bf16.mxu1 %v4666_v57  ;;  %v4064_v20 = vcombine.high %v114_v15, %v118_v16  ;;  %v1029_v7 = vld [vmem:[#allocation5 + $0xa0] sm:$0xff] }
  0x6f   :  { %899 = vmatpush1.bf16.msra.mxu0 %v3997_v53  ;;  %940 = vmatpush1.bf16.msra.mxu1 %v3999_v23  ;;  %v122_v53 = vld [vmem:[#allocation5 + $0xa18] sm:$0xff] }
  0x70   :  { %900 = vmatprep.subr.bf16.mxu0 %v4006_v24  ;;  %941 = vmatprep.subr.bf16.mxu1 %v4008_v25  ;;  %v126_v23 = vld [vmem:[#allocation5 + $0xa98] sm:$0xff]  ;;  %v4061_v24 = vcombine.low %v113_v13, %v117_v14  ;;  %v4063_v25 = vcombine.low %v114_v15, %v118_v16  ;;  %v4114_v13 = vcombine.high %v1025_v6, %v1029_v7  ;;  %v1033_v15 = vld [vmem:[#allocation5 + $0x120] sm:$0xff] }
  0x71   :  { %v4072_v27 = vcombine.high %v122_v53, %v126_v23  ;;  %v1037_v16 = vld [vmem:[#allocation5 + $0x1a0] sm:$0xff] }
  0x73   :  { %901 = vmatpush1.bf16.msra.mxu0 %v4005_v30  ;;  %942 = vmatpush1.bf16.msra.mxu1 %v4007_v31  ;;  %v130_v30 = vld [vmem:[#allocation5 + $0xb18] sm:$0xff] }
  0x74   :  { %902 = vmatprep.subr.bf16.mxu0 %v4014_v32  ;;  %943 = vmatprep.subr.bf16.mxu1 %v4016_v33  ;;  %v134_v31 = vld [vmem:[#allocation5 + $0xb98] sm:$0xff]  ;;  %v4069_v32 = vcombine.low %v121_v21, %v125_v22  ;;  %v4071_v33 = vcombine.low %v122_v53, %v126_v23  ;;  %v4122_v21 = vcombine.high %v1033_v15, %v1037_v16  ;;  %v1041_v53 = vld [vmem:[#allocation5 + $0x220] sm:$0xff] }
  0x75   :  { %v4080_v35 = vcombine.high %v130_v30, %v134_v31  ;;  %v1045_v23 = vld [vmem:[#allocation5 + $0x2a0] sm:$0xff] }
  0x77   :  { %903 = vmatpush1.bf16.msra.mxu0 %v4013_v38  ;;  %944 = vmatpush1.bf16.msra.mxu1 %v4015_v39  ;;  %v138_v38 = vld [vmem:[#allocation5 + $0xc18] sm:$0xff] }
  0x78   :  { %904 = vmatprep.subr.bf16.mxu0 %v4022_v40  ;;  %945 = vmatprep.subr.bf16.mxu1 %v4024_v41  ;;  %v142_v39 = vld [vmem:[#allocation5 + $0xc98] sm:$0xff]  ;;  %v4077_v40 = vcombine.low %v129_v28, %v133_v29  ;;  %v4079_v41 = vcombine.low %v130_v30, %v134_v31  ;;  %v4130_v28 = vcombine.high %v1041_v53, %v1045_v23  ;;  %v1049_v30 = vld [vmem:[#allocation5 + $0x320] sm:$0xff] }
  0x79   :  { %v4088_v43 = vcombine.high %v138_v38, %v142_v39  ;;  %v1053_v31 = vld [vmem:[#allocation5 + $0x3a0] sm:$0xff] }
  0x7b   :  { %905 = vmatpush1.bf16.msra.mxu0 %v4021_v46  ;;  %946 = vmatpush1.bf16.msra.mxu1 %v4023_v47  ;;  %v146_v46 = vld [vmem:[#allocation5 + $0xd18] sm:$0xff] }
  0x7c   :  { %906 = vmatprep.subr.bf16.mxu0 %v4030_v48  ;;  %947 = vmatprep.subr.bf16.mxu1 %v4032_v49  ;;  %v150_v47 = vld [vmem:[#allocation5 + $0xd98] sm:$0xff]  ;;  %v4085_v48 = vcombine.low %v137_v36, %v141_v37  ;;  %v4087_v49 = vcombine.low %v138_v38, %v142_v39  ;;  %v4138_v36 = vcombine.high %v1049_v30, %v1053_v31  ;;  %v1057_v38 = vld [vmem:[#allocation5 + $0x420] sm:$0xff] }
  0x7d   :  { %v4096_v51 = vcombine.high %v146_v46, %v150_v47  ;;  %v1061_v39 = vld [vmem:[#allocation5 + $0x4a0] sm:$0xff] }
  0x7f   :  { %907 = vmatpush1.bf16.msra.mxu0 %v4029_v55  ;;  %948 = vmatpush1.bf16.msra.mxu1 %v4031_v56  ;;  %v154_v55 = vld [vmem:[#allocation5 + $0xe18] sm:$0xff] }
  0x80   :  { %908 = vmatprep.subr.bf16.mxu0 %v4038_v58  ;;  %949 = vmatprep.subr.bf16.mxu1 %v4040_v59  ;;  %v158_v56 = vld [vmem:[#allocation5 + $0xe98] sm:$0xff]  ;;  %v4093_v58 = vcombine.low %v145_v44, %v149_v45  ;;  %v4095_v59 = vcombine.low %v146_v46, %v150_v47  ;;  %v4146_v44 = vcombine.high %v1057_v38, %v1061_v39  ;;  %v1065_v46 = vld [vmem:[#allocation5 + $0x520] sm:$0xff] }
  0x81   :  { %v4104_v61 = vcombine.high %v154_v55, %v158_v56  ;;  %v1069_v47 = vld [vmem:[#allocation5 + $0x5a0] sm:$0xff] }
  0x83   :  { %909 = vmatpush1.bf16.msra.mxu0 %v4037_v0  ;;  %950 = vmatpush1.bf16.msra.mxu1 %v4039_v1  ;;  %v162_v0 = vld [vmem:[#allocation5 + $0xf18] sm:$0xff] }
  0x84   :  { %910 = vmatprep.subr.bf16.mxu0 %v4046_v2  ;;  %951 = vmatprep.subr.bf16.mxu1 %v4048_v3  ;;  %v166_v1 = vld [vmem:[#allocation5 + $0xf98] sm:$0xff]  ;;  %v4101_v2 = vcombine.low %v153_v52, %v157_v54  ;;  %v4103_v3 = vcombine.low %v154_v55, %v158_v56  ;;  %v4154_v52 = vcombine.high %v1065_v46, %v1069_v47  ;;  %v1073_v55 = vld [vmem:[#allocation5 + $0x620] sm:$0xff] }
  0x85   :  { %v4112_v5 = vcombine.high %v162_v0, %v166_v1  ;;  %v1077_v56 = vld [vmem:[#allocation5 + $0x6a0] sm:$0xff] }
  0x87   :  { %911 = vmatpush1.bf16.msra.mxu0 %v4045_v8  ;;  %952 = vmatpush1.bf16.msra.mxu1 %v4047_v9  ;;  %v1026_v8 = vld [vmem:[#allocation5 + $0x28] sm:$0xff] }
  0x88   :  { %912 = vmatprep.subr.bf16.mxu0 %v4054_v10  ;;  %953 = vmatprep.subr.bf16.mxu1 %v4056_v11  ;;  %v1030_v9 = vld [vmem:[#allocation5 + $0xa8] sm:$0xff]  ;;  %v4109_v10 = vcombine.low %v161_v62, %v165_v63  ;;  %v4111_v11 = vcombine.low %v162_v0, %v166_v1  ;;  %v4162_v62 = vcombine.high %v1073_v55, %v1077_v56  ;;  %v1081_v0 = vld [vmem:[#allocation5 + $0x720] sm:$0xff] }
  0x89   :  { %v4116_v14 = vcombine.high %v1026_v8, %v1030_v9  ;;  %v1085_v1 = vld [vmem:[#allocation5 + $0x7a0] sm:$0xff] }
  0x8b   :  { %913 = vmatpush1.bf16.msra.mxu0 %v4053_v17  ;;  %954 = vmatpush1.bf16.msra.mxu1 %v4055_v18  ;;  %v1034_v17 = vld [vmem:[#allocation5 + $0x128] sm:$0xff] }
  0x8c   :  { %914 = vmatprep.subr.bf16.mxu0 %v4062_v19  ;;  %955 = vmatprep.subr.bf16.mxu1 %v4064_v20  ;;  %v1038_v18 = vld [vmem:[#allocation5 + $0x1a8] sm:$0xff]  ;;  %v4113_v19 = vcombine.low %v1025_v6, %v1029_v7  ;;  %v4115_v20 = vcombine.low %v1026_v8, %v1030_v9  ;;  %v4170_v6 = vcombine.high %v1081_v0, %v1085_v1  ;;  %v1089_v8 = vld [vmem:[#allocation5 + $0x820] sm:$0xff] }
  0x8d   :  { %v4124_v22 = vcombine.high %v1034_v17, %v1038_v18  ;;  %v1093_v9 = vld [vmem:[#allocation5 + $0x8a0] sm:$0xff] }
  0x8f   :  { %915 = vmatpush1.bf16.msra.mxu0 %v4061_v24  ;;  %956 = vmatpush1.bf16.msra.mxu1 %v4063_v25  ;;  %v1042_v24 = vld [vmem:[#allocation5 + $0x228] sm:$0xff] }
  0x90   :  { %916 = vmatprep.subr.bf16.mxu0 %v4070_v26  ;;  %957 = vmatprep.subr.bf16.mxu1 %v4072_v27  ;;  %v1046_v25 = vld [vmem:[#allocation5 + $0x2a8] sm:$0xff]  ;;  %v4121_v26 = vcombine.low %v1033_v15, %v1037_v16  ;;  %v4123_v27 = vcombine.low %v1034_v17, %v1038_v18  ;;  %v4178_v15 = vcombine.high %v1089_v8, %v1093_v9  ;;  %v1097_v17 = vld [vmem:[#allocation5 + $0x920] sm:$0xff] }
  0x91   :  { %v4132_v29 = vcombine.high %v1042_v24, %v1046_v25  ;;  %v1101_v18 = vld [vmem:[#allocation5 + $0x9a0] sm:$0xff] }
  0x93   :  { %917 = vmatpush1.bf16.msra.mxu0 %v4069_v32  ;;  %958 = vmatpush1.bf16.msra.mxu1 %v4071_v33  ;;  %v1050_v32 = vld [vmem:[#allocation5 + $0x328] sm:$0xff] }
  0x94   :  { %918 = vmatprep.subr.bf16.mxu0 %v4078_v34  ;;  %959 = vmatprep.subr.bf16.mxu1 %v4080_v35  ;;  %v1054_v33 = vld [vmem:[#allocation5 + $0x3a8] sm:$0xff]  ;;  %v4129_v34 = vcombine.low %v1041_v53, %v1045_v23  ;;  %v4131_v35 = vcombine.low %v1042_v24, %v1046_v25  ;;  %v4186_v53 = vcombine.high %v1097_v17, %v1101_v18  ;;  %v1105_v24 = vld [vmem:[#allocation5 + $0xa20] sm:$0xff] }
  0x95   :  { %v4140_v37 = vcombine.high %v1050_v32, %v1054_v33  ;;  %v1109_v25 = vld [vmem:[#allocation5 + $0xaa0] sm:$0xff] }
  0x97   :  { %919 = vmatpush1.bf16.msra.mxu0 %v4077_v40  ;;  %960 = vmatpush1.bf16.msra.mxu1 %v4079_v41  ;;  %v1058_v40 = vld [vmem:[#allocation5 + $0x428] sm:$0xff] }
  0x98   :  { %920 = vmatprep.subr.bf16.mxu0 %v4086_v42  ;;  %961 = vmatprep.subr.bf16.mxu1 %v4088_v43  ;;  %v1062_v41 = vld [vmem:[#allocation5 + $0x4a8] sm:$0xff]  ;;  %v4137_v42 = vcombine.low %v1049_v30, %v1053_v31  ;;  %v4139_v43 = vcombine.low %v1050_v32, %v1054_v33  ;;  %v4194_v30 = vcombine.high %v1105_v24, %v1109_v25  ;;  %v1113_v32 = vld [vmem:[#allocation5 + $0xb20] sm:$0xff] }
  0x99   :  { %v4148_v45 = vcombine.high %v1058_v40, %v1062_v41  ;;  %v1117_v33 = vld [vmem:[#allocation5 + $0xba0] sm:$0xff] }
  0x9b   :  { %921 = vmatpush1.bf16.msra.mxu0 %v4085_v48  ;;  %962 = vmatpush1.bf16.msra.mxu1 %v4087_v49  ;;  %v1066_v48 = vld [vmem:[#allocation5 + $0x528] sm:$0xff] }
  0x9c   :  { %922 = vmatprep.subr.bf16.mxu0 %v4094_v50  ;;  %963 = vmatprep.subr.bf16.mxu1 %v4096_v51  ;;  %v1070_v49 = vld [vmem:[#allocation5 + $0x5a8] sm:$0xff]  ;;  %v4145_v50 = vcombine.low %v1057_v38, %v1061_v39  ;;  %v4147_v51 = vcombine.low %v1058_v40, %v1062_v41  ;;  %v4202_v38 = vcombine.high %v1113_v32, %v1117_v33  ;;  %v1121_v40 = vld [vmem:[#allocation5 + $0xc20] sm:$0xff] }
  0x9d   :  { %v4156_v54 = vcombine.high %v1066_v48, %v1070_v49  ;;  %v1125_v41 = vld [vmem:[#allocation5 + $0xca0] sm:$0xff] }
  0x9f   :  { %923 = vmatpush1.bf16.msra.mxu0 %v4093_v58  ;;  %964 = vmatpush1.bf16.msra.mxu1 %v4095_v59  ;;  %v1074_v58 = vld [vmem:[#allocation5 + $0x628] sm:$0xff] }
  0xa0   :  { %924 = vmatprep.subr.bf16.mxu0 %v4102_v60  ;;  %965 = vmatprep.subr.bf16.mxu1 %v4104_v61  ;;  %v1078_v59 = vld [vmem:[#allocation5 + $0x6a8] sm:$0xff]  ;;  %v4153_v60 = vcombine.low %v1065_v46, %v1069_v47  ;;  %v4155_v61 = vcombine.low %v1066_v48, %v1070_v49  ;;  %v4210_v46 = vcombine.high %v1121_v40, %v1125_v41  ;;  %v1129_v48 = vld [vmem:[#allocation5 + $0xd20] sm:$0xff] }
  0xa1   :  { %v4164_v63 = vcombine.high %v1074_v58, %v1078_v59  ;;  %v1133_v49 = vld [vmem:[#allocation5 + $0xda0] sm:$0xff] }
  0xa3   :  { %925 = vmatpush1.bf16.msra.mxu0 %v4101_v2  ;;  %966 = vmatpush1.bf16.msra.mxu1 %v4103_v3  ;;  %v1082_v2 = vld [vmem:[#allocation5 + $0x728] sm:$0xff] }
  0xa4   :  { %926 = vmatprep.subr.bf16.mxu0 %v4110_v4  ;;  %967 = vmatprep.subr.bf16.mxu1 %v4112_v5  ;;  %v1086_v3 = vld [vmem:[#allocation5 + $0x7a8] sm:$0xff]  ;;  %v4161_v4 = vcombine.low %v1073_v55, %v1077_v56  ;;  %v4163_v5 = vcombine.low %v1074_v58, %v1078_v59  ;;  %v4218_v55 = vcombine.high %v1129_v48, %v1133_v49  ;;  %v1137_v58 = vld [vmem:[#allocation5 + $0xe20] sm:$0xff] }
  0xa5   :  { %v4172_v7 = vcombine.high %v1082_v2, %v1086_v3  ;;  %v1141_v59 = vld [vmem:[#allocation5 + $0xea0] sm:$0xff] }
  0xa7   :  { %927 = vmatpush1.bf16.msra.mxu0 %v4109_v10  ;;  %968 = vmatpush1.bf16.msra.mxu1 %v4111_v11  ;;  %v1090_v10 = vld [vmem:[#allocation5 + $0x828] sm:$0xff] }
  0xa8   :  { %1793 = vmatprep.subr.bf16.mxu0 %v4114_v13  ;;  %1834 = vmatprep.subr.bf16.mxu1 %v4116_v14  ;;  %v1094_v11 = vld [vmem:[#allocation5 + $0x8a8] sm:$0xff]  ;;  %v4169_v13 = vcombine.low %v1081_v0, %v1085_v1  ;;  %v4171_v14 = vcombine.low %v1082_v2, %v1086_v3  ;;  %v4226_v0 = vcombine.high %v1137_v58, %v1141_v59  ;;  %v1145_v2 = vld [vmem:[#allocation5 + $0xf20] sm:$0xff] }
  0xa9   :  { %v4180_v16 = vcombine.high %v1090_v10, %v1094_v11  ;;  %v1149_v3 = vld [vmem:[#allocation5 + $0xfa0] sm:$0xff] }
  0xaa   :  { %929 = vmatmul.mubr.bf16.vlgmr.msra.gmra.mrb[4].mxu0 %v4672_v12  ;;  %970 = vmatmul.mubr.bf16.vlgmr.msra.gmra.mrb[4].mxu1 %v4672_v12 }
  0xab   :  { %1794 = vmatpush1.bf16.msra.mxu0 %v4113_v19  ;;  %1835 = vmatpush1.bf16.msra.mxu1 %v4115_v20  ;;  %v1098_v19 = vld [vmem:[#allocation5 + $0x928] sm:$0xff] }
  0xac   :  { %1795 = vmatprep.subr.bf16.mxu0 %v4122_v21  ;;  %1836 = vmatprep.subr.bf16.mxu1 %v4124_v22  ;;  %v1102_v20 = vld [vmem:[#allocation5 + $0x9a8] sm:$0xff]  ;;  %v4177_v21 = vcombine.low %v1089_v8, %v1093_v9  ;;  %v4179_v22 = vcombine.low %v1090_v10, %v1094_v11  ;;  %v4234_v8 = vcombine.high %v1145_v2, %v1149_v3  ;;  %v1027_v10 = vld [vmem:[#allocation5 + $0x30] sm:$0xff] }
  0xad   :  { %1825 = vmatprep.mubr.bf16.mxu0 %v4666_v57  ;;  %1866 = vmatprep.mubr.bf16.mxu1 %v4666_v57  ;;  %v4188_v23 = vcombine.high %v1098_v19, %v1102_v20  ;;  %v1031_v11 = vld [vmem:[#allocation5 + $0xb0] sm:$0xff] }
  0xaf   :  { %1796 = vmatpush1.bf16.msra.mxu0 %v4121_v26  ;;  %1837 = vmatpush1.bf16.msra.mxu1 %v4123_v27  ;;  %v1106_v26 = vld [vmem:[#allocation5 + $0xa28] sm:$0xff] }
  0xb0   :  { %1797 = vmatprep.subr.bf16.mxu0 %v4130_v28  ;;  %1838 = vmatprep.subr.bf16.mxu1 %v4132_v29  ;;  %v1110_v27 = vld [vmem:[#allocation5 + $0xaa8] sm:$0xff]  ;;  %v4185_v28 = vcombine.low %v1097_v17, %v1101_v18  ;;  %v4187_v29 = vcombine.low %v1098_v19, %v1102_v20  ;;  %v4118_v17 = vcombine.high %v1027_v10, %v1031_v11  ;;  %v1035_v19 = vld [vmem:[#allocation5 + $0x130] sm:$0xff] }
  0xb1   :  { %v4196_v31 = vcombine.high %v1106_v26, %v1110_v27  ;;  %v1039_v20 = vld [vmem:[#allocation5 + $0x1b0] sm:$0xff] }
  0xb3   :  { %1798 = vmatpush1.bf16.msra.mxu0 %v4129_v34  ;;  %1839 = vmatpush1.bf16.msra.mxu1 %v4131_v35  ;;  %v1114_v34 = vld [vmem:[#allocation5 + $0xb28] sm:$0xff] }
  0xb4   :  { %1799 = vmatprep.subr.bf16.mxu0 %v4138_v36  ;;  %1840 = vmatprep.subr.bf16.mxu1 %v4140_v37  ;;  %v1118_v35 = vld [vmem:[#allocation5 + $0xba8] sm:$0xff]  ;;  %v4193_v36 = vcombine.low %v1105_v24, %v1109_v25  ;;  %v4195_v37 = vcombine.low %v1106_v26, %v1110_v27  ;;  %v4126_v24 = vcombine.high %v1035_v19, %v1039_v20  ;;  %v1043_v26 = vld [vmem:[#allocation5 + $0x230] sm:$0xff] }
  0xb5   :  { %v4204_v39 = vcombine.high %v1114_v34, %v1118_v35  ;;  %v1047_v27 = vld [vmem:[#allocation5 + $0x2b0] sm:$0xff] }
  0xb7   :  { %1800 = vmatpush1.bf16.msra.mxu0 %v4137_v42  ;;  %1841 = vmatpush1.bf16.msra.mxu1 %v4139_v43  ;;  %v1122_v42 = vld [vmem:[#allocation5 + $0xc28] sm:$0xff] }
  0xb8   :  { %1801 = vmatprep.subr.bf16.mxu0 %v4146_v44  ;;  %1842 = vmatprep.subr.bf16.mxu1 %v4148_v45  ;;  %v1126_v43 = vld [vmem:[#allocation5 + $0xca8] sm:$0xff]  ;;  %v4201_v44 = vcombine.low %v1113_v32, %v1117_v33  ;;  %v4203_v45 = vcombine.low %v1114_v34, %v1118_v35  ;;  %v4134_v32 = vcombine.high %v1043_v26, %v1047_v27  ;;  %v1051_v34 = vld [vmem:[#allocation5 + $0x330] sm:$0xff] }
  0xb9   :  { %v4212_v47 = vcombine.high %v1122_v42, %v1126_v43  ;;  %v1055_v35 = vld [vmem:[#allocation5 + $0x3b0] sm:$0xff] }
  0xbb   :  { %1802 = vmatpush1.bf16.msra.mxu0 %v4145_v50  ;;  %1843 = vmatpush1.bf16.msra.mxu1 %v4147_v51  ;;  %v1130_v50 = vld [vmem:[#allocation5 + $0xd28] sm:$0xff] }
  0xbc   :  { %1803 = vmatprep.subr.bf16.mxu0 %v4154_v52  ;;  %1844 = vmatprep.subr.bf16.mxu1 %v4156_v54  ;;  %v1134_v51 = vld [vmem:[#allocation5 + $0xda8] sm:$0xff]  ;;  %v4209_v52 = vcombine.low %v1121_v40, %v1125_v41  ;;  %v4211_v54 = vcombine.low %v1122_v42, %v1126_v43  ;;  %v4142_v40 = vcombine.high %v1051_v34, %v1055_v35  ;;  %v1059_v42 = vld [vmem:[#allocation5 + $0x430] sm:$0xff] }
  0xbd   :  { %v4220_v56 = vcombine.high %v1130_v50, %v1134_v51  ;;  %v1063_v43 = vld [vmem:[#allocation5 + $0x4b0] sm:$0xff] }
  0xbf   :  { %1804 = vmatpush1.bf16.msra.mxu0 %v4153_v60  ;;  %1845 = vmatpush1.bf16.msra.mxu1 %v4155_v61  ;;  %v1138_v60 = vld [vmem:[#allocation5 + $0xe28] sm:$0xff] }
  0xc0   :  { %1805 = vmatprep.subr.bf16.mxu0 %v4162_v62  ;;  %1846 = vmatprep.subr.bf16.mxu1 %v4164_v63  ;;  %v1142_v61 = vld [vmem:[#allocation5 + $0xea8] sm:$0xff]  ;;  %v4217_v62 = vcombine.low %v1129_v48, %v1133_v49  ;;  %v4219_v63 = vcombine.low %v1130_v50, %v1134_v51  ;;  %v4150_v48 = vcombine.high %v1059_v42, %v1063_v43  ;;  %v1067_v50 = vld [vmem:[#allocation5 + $0x530] sm:$0xff] }
  0xc1   :  { %v4228_v1 = vcombine.high %v1138_v60, %v1142_v61  ;;  %v1071_v51 = vld [vmem:[#allocation5 + $0x5b0] sm:$0xff] }
  0xc3   :  { %1806 = vmatpush1.bf16.msra.mxu0 %v4161_v4  ;;  %1847 = vmatpush1.bf16.msra.mxu1 %v4163_v5  ;;  %v1146_v4 = vld [vmem:[#allocation5 + $0xf28] sm:$0xff] }
  0xc4   :  { %1807 = vmatprep.subr.bf16.mxu0 %v4170_v6  ;;  %1848 = vmatprep.subr.bf16.mxu1 %v4172_v7  ;;  %v1150_v5 = vld [vmem:[#allocation5 + $0xfa8] sm:$0xff]  ;;  %v4225_v6 = vcombine.low %v1137_v58, %v1141_v59  ;;  %v4227_v7 = vcombine.low %v1138_v60, %v1142_v61  ;;  %v4158_v58 = vcombine.high %v1067_v50, %v1071_v51  ;;  %v1075_v60 = vld [vmem:[#allocation5 + $0x630] sm:$0xff] }
  0xc5   :  { %v4236_v9 = vcombine.high %v1146_v4, %v1150_v5  ;;  %v1079_v61 = vld [vmem:[#allocation5 + $0x6b0] sm:$0xff] }
  0xc7   :  { %1808 = vmatpush1.bf16.msra.mxu0 %v4169_v13  ;;  %1849 = vmatpush1.bf16.msra.mxu1 %v4171_v14  ;;  %v1028_v13 = vld [vmem:[#allocation5 + $0x38] sm:$0xff] }
  0xc8   :  { %1809 = vmatprep.subr.bf16.mxu0 %v4178_v15  ;;  %1850 = vmatprep.subr.bf16.mxu1 %v4180_v16  ;;  %v1032_v14 = vld [vmem:[#allocation5 + $0xb8] sm:$0xff]  ;;  %v4233_v15 = vcombine.low %v1145_v2, %v1149_v3  ;;  %v4235_v16 = vcombine.low %v1146_v4, %v1150_v5  ;;  %v4166_v2 = vcombine.high %v1075_v60, %v1079_v61  ;;  %v1083_v4 = vld [vmem:[#allocation5 + $0x730] sm:$0xff] }
  0xc9   :  { %v4120_v18 = vcombine.high %v1028_v13, %v1032_v14  ;;  %v1087_v5 = vld [vmem:[#allocation5 + $0x7b0] sm:$0xff] }
  0xcb   :  { %1810 = vmatpush1.bf16.msra.mxu0 %v4177_v21  ;;  %1851 = vmatpush1.bf16.msra.mxu1 %v4179_v22  ;;  %v1036_v21 = vld [vmem:[#allocation5 + $0x138] sm:$0xff] }
  0xcc   :  { %1811 = vmatprep.subr.bf16.mxu0 %v4186_v53  ;;  %1852 = vmatprep.subr.bf16.mxu1 %v4188_v23  ;;  %v1040_v22 = vld [vmem:[#allocation5 + $0x1b8] sm:$0xff]  ;;  %v4117_v53 = vcombine.low %v1027_v10, %v1031_v11  ;;  %v4119_v23 = vcombine.low %v1028_v13, %v1032_v14  ;;  %v4174_v10 = vcombine.high %v1083_v4, %v1087_v5  ;;  %v1091_v13 = vld [vmem:[#allocation5 + $0x830] sm:$0xff] }
  0xcd   :  { %v4128_v25 = vcombine.high %v1036_v21, %v1040_v22  ;;  %v1095_v14 = vld [vmem:[#allocation5 + $0x8b0] sm:$0xff] }
  0xcf   :  { %1812 = vmatpush1.bf16.msra.mxu0 %v4185_v28  ;;  %1853 = vmatpush1.bf16.msra.mxu1 %v4187_v29  ;;  %v1044_v28 = vld [vmem:[#allocation5 + $0x238] sm:$0xff] }
  0xd0   :  { %1813 = vmatprep.subr.bf16.mxu0 %v4194_v30  ;;  %1854 = vmatprep.subr.bf16.mxu1 %v4196_v31  ;;  %v1048_v29 = vld [vmem:[#allocation5 + $0x2b8] sm:$0xff]  ;;  %v4125_v30 = vcombine.low %v1035_v19, %v1039_v20  ;;  %v4127_v31 = vcombine.low %v1036_v21, %v1040_v22  ;;  %v4182_v19 = vcombine.high %v1091_v13, %v1095_v14  ;;  %v1099_v21 = vld [vmem:[#allocation5 + $0x930] sm:$0xff] }
  0xd1   :  { %v4136_v33 = vcombine.high %v1044_v28, %v1048_v29  ;;  %v1103_v22 = vld [vmem:[#allocation5 + $0x9b0] sm:$0xff] }
  0xd3   :  { %1814 = vmatpush1.bf16.msra.mxu0 %v4193_v36  ;;  %1855 = vmatpush1.bf16.msra.mxu1 %v4195_v37  ;;  %v1052_v36 = vld [vmem:[#allocation5 + $0x338] sm:$0xff] }
  0xd4   :  { %1815 = vmatprep.subr.bf16.mxu0 %v4202_v38  ;;  %1856 = vmatprep.subr.bf16.mxu1 %v4204_v39  ;;  %v1056_v37 = vld [vmem:[#allocation5 + $0x3b8] sm:$0xff]  ;;  %v4133_v38 = vcombine.low %v1043_v26, %v1047_v27  ;;  %v4135_v39 = vcombine.low %v1044_v28, %v1048_v29  ;;  %v4190_v26 = vcombine.high %v1099_v21, %v1103_v22  ;;  %v1107_v28 = vld [vmem:[#allocation5 + $0xa30] sm:$0xff] }
  0xd5   :  { %v4144_v41 = vcombine.high %v1052_v36, %v1056_v37  ;;  %v1111_v29 = vld [vmem:[#allocation5 + $0xab0] sm:$0xff] }
  0xd7   :  { %1816 = vmatpush1.bf16.msra.mxu0 %v4201_v44  ;;  %1857 = vmatpush1.bf16.msra.mxu1 %v4203_v45  ;;  %v1060_v44 = vld [vmem:[#allocation5 + $0x438] sm:$0xff] }
  0xd8   :  { %1817 = vmatprep.subr.bf16.mxu0 %v4210_v46  ;;  %1858 = vmatprep.subr.bf16.mxu1 %v4212_v47  ;;  %v1064_v45 = vld [vmem:[#allocation5 + $0x4b8] sm:$0xff]  ;;  %v4141_v46 = vcombine.low %v1051_v34, %v1055_v35  ;;  %v4143_v47 = vcombine.low %v1052_v36, %v1056_v37  ;;  %v4198_v34 = vcombine.high %v1107_v28, %v1111_v29  ;;  %v1115_v36 = vld [vmem:[#allocation5 + $0xb30] sm:$0xff] }
  0xd9   :  { %v4152_v49 = vcombine.high %v1060_v44, %v1064_v45  ;;  %v1119_v37 = vld [vmem:[#allocation5 + $0xbb0] sm:$0xff] }
  0xdb   :  { %1818 = vmatpush1.bf16.msra.mxu0 %v4209_v52  ;;  %1859 = vmatpush1.bf16.msra.mxu1 %v4211_v54  ;;  %v1068_v52 = vld [vmem:[#allocation5 + $0x538] sm:$0xff] }
  0xdc   :  { %1819 = vmatprep.subr.bf16.mxu0 %v4218_v55  ;;  %1860 = vmatprep.subr.bf16.mxu1 %v4220_v56  ;;  %v1072_v54 = vld [vmem:[#allocation5 + $0x5b8] sm:$0xff]  ;;  %v4149_v55 = vcombine.low %v1059_v42, %v1063_v43  ;;  %v4151_v56 = vcombine.low %v1060_v44, %v1064_v45  ;;  %v4206_v42 = vcombine.high %v1115_v36, %v1119_v37  ;;  %v1123_v44 = vld [vmem:[#allocation5 + $0xc30] sm:$0xff] }
  0xdd   :  { %v4160_v59 = vcombine.high %v1068_v52, %v1072_v54  ;;  %v1127_v45 = vld [vmem:[#allocation5 + $0xcb0] sm:$0xff] }
  0xdf   :  { %1820 = vmatpush1.bf16.msra.mxu0 %v4217_v62  ;;  %1861 = vmatpush1.bf16.msra.mxu1 %v4219_v63  ;;  %v1076_v62 = vld [vmem:[#allocation5 + $0x638] sm:$0xff] }
  0xe0   :  { %1821 = vmatprep.subr.bf16.mxu0 %v4226_v0  ;;  %1862 = vmatprep.subr.bf16.mxu1 %v4228_v1  ;;  %v1080_v63 = vld [vmem:[#allocation5 + $0x6b8] sm:$0xff]  ;;  %v4157_v0 = vcombine.low %v1067_v50, %v1071_v51  ;;  %v4159_v1 = vcombine.low %v1068_v52, %v1072_v54  ;;  %v4214_v50 = vcombine.high %v1123_v44, %v1127_v45  ;;  %v1131_v52 = vld [vmem:[#allocation5 + $0xd30] sm:$0xff] }
  0xe1   :  { %v4168_v3 = vcombine.high %v1076_v62, %v1080_v63  ;;  %v1135_v54 = vld [vmem:[#allocation5 + $0xdb0] sm:$0xff] }
  0xe3   :  { %1822 = vmatpush1.bf16.msra.mxu0 %v4225_v6  ;;  %1863 = vmatpush1.bf16.msra.mxu1 %v4227_v7  ;;  %v1084_v6 = vld [vmem:[#allocation5 + $0x738] sm:$0xff] }
  0xe4   :  { %1823 = vmatprep.subr.bf16.mxu0 %v4234_v8  ;;  %1864 = vmatprep.subr.bf16.mxu1 %v4236_v9  ;;  %v1088_v7 = vld [vmem:[#allocation5 + $0x7b8] sm:$0xff]  ;;  %v4165_v8 = vcombine.low %v1075_v60, %v1079_v61  ;;  %v4167_v9 = vcombine.low %v1076_v62, %v1080_v63  ;;  %v4222_v60 = vcombine.high %v1131_v52, %v1135_v54  ;;  %v1139_v62 = vld [vmem:[#allocation5 + $0xe30] sm:$0xff] }
  0xe5   :  { %v4176_v11 = vcombine.high %v1084_v6, %v1088_v7  ;;  %v1143_v63 = vld [vmem:[#allocation5 + $0xeb0] sm:$0xff] }
  0xe7   :  { %1824 = vmatpush1.bf16.msra.mxu0 %v4233_v15  ;;  %1865 = vmatpush1.bf16.msra.mxu1 %v4235_v16  ;;  %v1092_v15 = vld [vmem:[#allocation5 + $0x838] sm:$0xff] }
  0xe8   :  { %1875 = vmatprep.subr.bf16.mxu0 %v4118_v17  ;;  %1916 = vmatprep.subr.bf16.mxu1 %v4120_v18  ;;  %v1096_v16 = vld [vmem:[#allocation5 + $0x8b8] sm:$0xff]  ;;  %v4173_v17 = vcombine.low %v1083_v4, %v1087_v5  ;;  %v4175_v18 = vcombine.low %v1084_v6, %v1088_v7  ;;  %v4230_v4 = vcombine.high %v1139_v62, %v1143_v63  ;;  %v1147_v6 = vld [vmem:[#allocation5 + $0xf30] sm:$0xff] }
  0xe9   :  { %v4184_v20 = vcombine.high %v1092_v15, %v1096_v16  ;;  %v1151_v7 = vld [vmem:[#allocation5 + $0xfb0] sm:$0xff] }
  0xea   :  { %1826 = vmatmul.mubr.bf16.vlgmr.msra.gmra.mrb[8].mxu0 %v4672_v12  ;;  %1867 = vmatmul.mubr.bf16.vlgmr.msra.gmra.mrb[8].mxu1 %v4672_v12 }
  0xeb   :  { %1876 = vmatpush1.bf16.msra.mxu0 %v4117_v53  ;;  %1917 = vmatpush1.bf16.msra.mxu1 %v4119_v23  ;;  %v1100_v53 = vld [vmem:[#allocation5 + $0x938] sm:$0xff] }
  0xec   :  { %1877 = vmatprep.subr.bf16.mxu0 %v4126_v24  ;;  %1918 = vmatprep.subr.bf16.mxu1 %v4128_v25  ;;  %v1104_v23 = vld [vmem:[#allocation5 + $0x9b8] sm:$0xff]  ;;  %v4181_v24 = vcombine.low %v1091_v13, %v1095_v14  ;;  %v4183_v25 = vcombine.low %v1092_v15, %v1096_v16  ;;  %v4238_v13 = vcombine.high %v1147_v6, %v1151_v7  ;;  %v2005_v15 = vld [vmem:[#allocation5 + $0x40] sm:$0xff] }
  0xed   :  { %1907 = vmatprep.mubr.bf16.mxu0 %v4666_v57  ;;  %1948 = vmatprep.mubr.bf16.mxu1 %v4666_v57  ;;  %v4192_v27 = vcombine.high %v1100_v53, %v1104_v23  ;;  %v2009_v16 = vld [vmem:[#allocation5 + $0xc0] sm:$0xff] }
  0xef   :  { %1878 = vmatpush1.bf16.msra.mxu0 %v4125_v30  ;;  %1919 = vmatpush1.bf16.msra.mxu1 %v4127_v31  ;;  %v1108_v30 = vld [vmem:[#allocation5 + $0xa38] sm:$0xff] }
  0xf0   :  { %1879 = vmatprep.subr.bf16.mxu0 %v4134_v32  ;;  %1920 = vmatprep.subr.bf16.mxu1 %v4136_v33  ;;  %v1112_v31 = vld [vmem:[#allocation5 + $0xab8] sm:$0xff]  ;;  %v4189_v32 = vcombine.low %v1099_v21, %v1103_v22  ;;  %v4191_v33 = vcombine.low %v1100_v53, %v1104_v23  ;;  %v4242_v21 = vcombine.high %v2005_v15, %v2009_v16  ;;  %v2013_v53 = vld [vmem:[#allocation5 + $0x140] sm:$0xff] }
  0xf1   :  { %v4200_v35 = vcombine.high %v1108_v30, %v1112_v31  ;;  %v2017_v23 = vld [vmem:[#allocation5 + $0x1c0] sm:$0xff] }
  0xf3   :  { %1880 = vmatpush1.bf16.msra.mxu0 %v4133_v38  ;;  %1921 = vmatpush1.bf16.msra.mxu1 %v4135_v39  ;;  %v1116_v38 = vld [vmem:[#allocation5 + $0xb38] sm:$0xff] }
  0xf4   :  { %1881 = vmatprep.subr.bf16.mxu0 %v4142_v40  ;;  %1922 = vmatprep.subr.bf16.mxu1 %v4144_v41  ;;  %v1120_v39 = vld [vmem:[#allocation5 + $0xbb8] sm:$0xff]  ;;  %v4197_v40 = vcombine.low %v1107_v28, %v1111_v29  ;;  %v4199_v41 = vcombine.low %v1108_v30, %v1112_v31  ;;  %v4250_v28 = vcombine.high %v2013_v53, %v2017_v23  ;;  %v2021_v30 = vld [vmem:[#allocation5 + $0x240] sm:$0xff] }
  0xf5   :  { %v4208_v43 = vcombine.high %v1116_v38, %v1120_v39  ;;  %v2025_v31 = vld [vmem:[#allocation5 + $0x2c0] sm:$0xff] }
  0xf7   :  { %1882 = vmatpush1.bf16.msra.mxu0 %v4141_v46  ;;  %1923 = vmatpush1.bf16.msra.mxu1 %v4143_v47  ;;  %v1124_v46 = vld [vmem:[#allocation5 + $0xc38] sm:$0xff] }
  0xf8   :  { %1883 = vmatprep.subr.bf16.mxu0 %v4150_v48  ;;  %1924 = vmatprep.subr.bf16.mxu1 %v4152_v49  ;;  %v1128_v47 = vld [vmem:[#allocation5 + $0xcb8] sm:$0xff]  ;;  %v4205_v48 = vcombine.low %v1115_v36, %v1119_v37  ;;  %v4207_v49 = vcombine.low %v1116_v38, %v1120_v39  ;;  %v4258_v36 = vcombine.high %v2021_v30, %v2025_v31  ;;  %v2029_v38 = vld [vmem:[#allocation5 + $0x340] sm:$0xff] }
  0xf9   :  { %v4216_v51 = vcombine.high %v1124_v46, %v1128_v47  ;;  %v2033_v39 = vld [vmem:[#allocation5 + $0x3c0] sm:$0xff] }
  0xfb   :  { %1884 = vmatpush1.bf16.msra.mxu0 %v4149_v55  ;;  %1925 = vmatpush1.bf16.msra.mxu1 %v4151_v56  ;;  %v1132_v55 = vld [vmem:[#allocation5 + $0xd38] sm:$0xff] }
  0xfc   :  { %1885 = vmatprep.subr.bf16.mxu0 %v4158_v58  ;;  %1926 = vmatprep.subr.bf16.mxu1 %v4160_v59  ;;  %v1136_v56 = vld [vmem:[#allocation5 + $0xdb8] sm:$0xff]  ;;  %v4213_v58 = vcombine.low %v1123_v44, %v1127_v45  ;;  %v4215_v59 = vcombine.low %v1124_v46, %v1128_v47  ;;  %v4266_v44 = vcombine.high %v2029_v38, %v2033_v39  ;;  %v2037_v46 = vld [vmem:[#allocation5 + $0x440] sm:$0xff] }
  0xfd   :  { %v4224_v61 = vcombine.high %v1132_v55, %v1136_v56  ;;  %v2041_v47 = vld [vmem:[#allocation5 + $0x4c0] sm:$0xff] }
  0xff   :  { %1886 = vmatpush1.bf16.msra.mxu0 %v4157_v0  ;;  %1927 = vmatpush1.bf16.msra.mxu1 %v4159_v1  ;;  %v1140_v0 = vld [vmem:[#allocation5 + $0xe38] sm:$0xff] }
 0x100   :  { %1887 = vmatprep.subr.bf16.mxu0 %v4166_v2  ;;  %1928 = vmatprep.subr.bf16.mxu1 %v4168_v3  ;;  %v1144_v1 = vld [vmem:[#allocation5 + $0xeb8] sm:$0xff]  ;;  %v4221_v2 = vcombine.low %v1131_v52, %v1135_v54  ;;  %v4223_v3 = vcombine.low %v1132_v55, %v1136_v56  ;;  %v4274_v52 = vcombine.high %v2037_v46, %v2041_v47  ;;  %v2045_v55 = vld [vmem:[#allocation5 + $0x540] sm:$0xff] }
 0x101   :  { %v4232_v5 = vcombine.high %v1140_v0, %v1144_v1  ;;  %v2049_v56 = vld [vmem:[#allocation5 + $0x5c0] sm:$0xff] }
 0x103   :  { %1888 = vmatpush1.bf16.msra.mxu0 %v4165_v8  ;;  %1929 = vmatpush1.bf16.msra.mxu1 %v4167_v9  ;;  %v1148_v8 = vld [vmem:[#allocation5 + $0xf38] sm:$0xff] }
 0x104   :  { %1889 = vmatprep.subr.bf16.mxu0 %v4174_v10  ;;  %1930 = vmatprep.subr.bf16.mxu1 %v4176_v11  ;;  %v1152_v9 = vld [vmem:[#allocation5 + $0xfb8] sm:$0xff]  ;;  %v4229_v10 = vcombine.low %v1139_v62, %v1143_v63  ;;  %v4231_v11 = vcombine.low %v1140_v0, %v1144_v1  ;;  %v4282_v62 = vcombine.high %v2045_v55, %v2049_v56  ;;  %v2053_v0 = vld [vmem:[#allocation5 + $0x640] sm:$0xff] }
 0x105   :  { %v4240_v14 = vcombine.high %v1148_v8, %v1152_v9  ;;  %v2057_v1 = vld [vmem:[#allocation5 + $0x6c0] sm:$0xff] }
 0x107   :  { %1890 = vmatpush1.bf16.msra.mxu0 %v4173_v17  ;;  %1931 = vmatpush1.bf16.msra.mxu1 %v4175_v18  ;;  %v2006_v17 = vld [vmem:[#allocation5 + $0x48] sm:$0xff] }
 0x108   :  { %1891 = vmatprep.subr.bf16.mxu0 %v4182_v19  ;;  %1932 = vmatprep.subr.bf16.mxu1 %v4184_v20  ;;  %v2010_v18 = vld [vmem:[#allocation5 + $0xc8] sm:$0xff]  ;;  %v4237_v19 = vcombine.low %v1147_v6, %v1151_v7  ;;  %v4239_v20 = vcombine.low %v1148_v8, %v1152_v9  ;;  %v4290_v6 = vcombine.high %v2053_v0, %v2057_v1  ;;  %v2061_v9 = vld [vmem:[#allocation5 + $0x740] sm:$0xff] }
 0x109   :  { %v4244_v22 = vcombine.high %v2006_v17, %v2010_v18 }
 0x10b   :  { %1892 = vmatpush1.bf16.msra.mxu0 %v4181_v24  ;;  %1933 = vmatpush1.bf16.msra.mxu1 %v4183_v25  ;;  %v2014_v24 = vld [vmem:[#allocation5 + $0x148] sm:$0xff] }
 0x10c   :  { %1893 = vmatprep.subr.bf16.mxu0 %v4190_v26  ;;  %1934 = vmatprep.subr.bf16.mxu1 %v4192_v27  ;;  %v2018_v25 = vld [vmem:[#allocation5 + $0x1c8] sm:$0xff]  ;;  %v4241_v26 = vcombine.low %v2005_v15, %v2009_v16  ;;  %v4243_v27 = vcombine.low %v2006_v17, %v2010_v18 }
 0x10d   :  { %v4252_v29 = vcombine.high %v2014_v24, %v2018_v25  ;;  %v2062_v15 = vld [vmem:[#allocation5 + $0x748] sm:$0xff] }
 0x10e   :  { %v2066_v16 = vld [vmem:[#allocation5 + $0x7c8] sm:$0xff] }
 0x10f   :  { %1894 = vmatpush1.bf16.msra.mxu0 %v4189_v32  ;;  %1935 = vmatpush1.bf16.msra.mxu1 %v4191_v33  ;;  %v2022_v32 = vld [vmem:[#allocation5 + $0x248] sm:$0xff] }
 0x110   :  { %1895 = vmatprep.subr.bf16.mxu0 %v4198_v34  ;;  %1936 = vmatprep.subr.bf16.mxu1 %v4200_v35  ;;  %v2026_v33 = vld [vmem:[#allocation5 + $0x2c8] sm:$0xff]  ;;  %v4249_v34 = vcombine.low %v2013_v53, %v2017_v23  ;;  %v4251_v35 = vcombine.low %v2014_v24, %v2018_v25 }
 0x111   :  { %v4260_v37 = vcombine.high %v2022_v32, %v2026_v33 }
 0x113   :  { %1896 = vmatpush1.bf16.msra.mxu0 %v4197_v40  ;;  %1937 = vmatpush1.bf16.msra.mxu1 %v4199_v41  ;;  %v2030_v40 = vld [vmem:[#allocation5 + $0x348] sm:$0xff] }
 0x114   :  { %1897 = vmatprep.subr.bf16.mxu0 %v4206_v42  ;;  %1938 = vmatprep.subr.bf16.mxu1 %v4208_v43  ;;  %v2034_v41 = vld [vmem:[#allocation5 + $0x3c8] sm:$0xff]  ;;  %v4257_v42 = vcombine.low %v2021_v30, %v2025_v31  ;;  %v4259_v43 = vcombine.low %v2022_v32, %v2026_v33  ;;  %v2073_v30 = vld [vmem:[#allocation5 + $0x8c0] sm:$0xff] }
 0x115   :  { %v4268_v45 = vcombine.high %v2030_v40, %v2034_v41  ;;  %v2070_v32 = vld [vmem:[#allocation5 + $0x848] sm:$0xff] }
 0x116   :  { %v2074_v33 = vld [vmem:[#allocation5 + $0x8c8] sm:$0xff] }
 0x117   :  { %1898 = vmatpush1.bf16.msra.mxu0 %v4205_v48  ;;  %1939 = vmatpush1.bf16.msra.mxu1 %v4207_v49  ;;  %v2038_v48 = vld [vmem:[#allocation5 + $0x448] sm:$0xff] }
 0x118   :  { %1899 = vmatprep.subr.bf16.mxu0 %v4214_v50  ;;  %1940 = vmatprep.subr.bf16.mxu1 %v4216_v51  ;;  %v2042_v49 = vld [vmem:[#allocation5 + $0x4c8] sm:$0xff]  ;;  %v4265_v50 = vcombine.low %v2029_v38, %v2033_v39  ;;  %v4267_v51 = vcombine.low %v2030_v40, %v2034_v41  ;;  %v2077_v38 = vld [vmem:[#allocation5 + $0x940] sm:$0xff] }
 0x119   :  { %v4276_v54 = vcombine.high %v2038_v48, %v2042_v49  ;;  %v2081_v39 = vld [vmem:[#allocation5 + $0x9c0] sm:$0xff]  ;;  %v2078_v40 = vld [vmem:[#allocation5 + $0x948] sm:$0xff] }
 0x11a   :  { %v2082_v41 = vld [vmem:[#allocation5 + $0x9c8] sm:$0xff] }
 0x11b   :  { %1900 = vmatpush1.bf16.msra.mxu0 %v4213_v58  ;;  %1941 = vmatpush1.bf16.msra.mxu1 %v4215_v59  ;;  %v2046_v58 = vld [vmem:[#allocation5 + $0x548] sm:$0xff] }
 0x11c   :  { %1901 = vmatprep.subr.bf16.mxu0 %v4222_v60  ;;  %1942 = vmatprep.subr.bf16.mxu1 %v4224_v61  ;;  %v2050_v59 = vld [vmem:[#allocation5 + $0x5c8] sm:$0xff]  ;;  %v4273_v60 = vcombine.low %v2037_v46, %v2041_v47  ;;  %v4275_v61 = vcombine.low %v2038_v48, %v2042_v49  ;;  %v2085_v46 = vld [vmem:[#allocation5 + $0xa40] sm:$0xff] }
 0x11d   :  { %v4284_v63 = vcombine.high %v2046_v58, %v2050_v59  ;;  %v2089_v47 = vld [vmem:[#allocation5 + $0xac0] sm:$0xff]  ;;  %v2086_v48 = vld [vmem:[#allocation5 + $0xa48] sm:$0xff] }
 0x11e   :  { %v2090_v49 = vld [vmem:[#allocation5 + $0xac8] sm:$0xff] }
 0x11f   :  { %1902 = vmatpush1.bf16.msra.mxu0 %v4221_v2  ;;  %1943 = vmatpush1.bf16.msra.mxu1 %v4223_v3  ;;  %v2054_v2 = vld [vmem:[#allocation5 + $0x648] sm:$0xff] }
 0x120   :  { %1903 = vmatprep.subr.bf16.mxu0 %v4230_v4  ;;  %1944 = vmatprep.subr.bf16.mxu1 %v4232_v5  ;;  %v2058_v3 = vld [vmem:[#allocation5 + $0x6c8] sm:$0xff]  ;;  %v4281_v4 = vcombine.low %v2045_v55, %v2049_v56  ;;  %v4283_v5 = vcombine.low %v2046_v58, %v2050_v59  ;;  %v2097_v55 = vld [vmem:[#allocation5 + $0xbc0] sm:$0xff]  ;;  %v4324_v58 = vcombine.high %v2086_v48, %v2090_v49 }
 0x121   :  { %v4292_v8 = vcombine.high %v2054_v2, %v2058_v3  ;;  %v4291_v24 = vcombine.low %v2054_v2, %v2058_v3 }
 0x123   :  { %1904 = vmatpush1.bf16.msra.mxu0 %v4229_v10  ;;  %1945 = vmatpush1.bf16.msra.mxu1 %v4231_v11  ;;  %v2065_v10 = vld [vmem:[#allocation5 + $0x7c0] sm:$0xff] }
 0x124   :  { %1905 = vmatprep.subr.bf16.mxu0 %v4238_v13  ;;  %1946 = vmatprep.subr.bf16.mxu1 %v4240_v14  ;;  %v4298_v25 = vcombine.high %v2061_v9, %v2065_v10 }
 0x127   :  { %1906 = vmatpush1.bf16.msra.mxu0 %v4237_v19  ;;  %1947 = vmatpush1.bf16.msra.mxu1 %v4239_v20 }
 0x128   :  { %2773 = vmatprep.subr.bf16.mxu0 %v4242_v21  ;;  %2814 = vmatprep.subr.bf16.mxu1 %v4244_v22  ;;  %v4289_v21 = vcombine.low %v2053_v0, %v2057_v1  ;;  %v2098_v0 = vld [vmem:[#allocation5 + $0xbc8] sm:$0xff] }
 0x12a   :  { %1908 = vmatmul.mubr.bf16.vlgmr.msra.gmra.mrb[12].mxu0 %v4672_v12  ;;  %1949 = vmatmul.mubr.bf16.vlgmr.msra.gmra.mrb[12].mxu1 %v4672_v12 }
 0x12b   :  { %2774 = vmatpush1.bf16.msra.mxu0 %v4241_v26  ;;  %2815 = vmatpush1.bf16.msra.mxu1 %v4243_v27 }
 0x12c   :  { %2775 = vmatprep.subr.bf16.mxu0 %v4250_v28  ;;  %2816 = vmatprep.subr.bf16.mxu1 %v4252_v29  ;;  %v4300_v28 = vcombine.high %v2062_v15, %v2066_v16  ;;  %v2069_v29 = vld [vmem:[#allocation5 + $0x840] sm:$0xff] }
 0x12d   :  { %2805 = vmatprep.mubr.bf16.mxu0 %v4666_v57  ;;  %2846 = vmatprep.mubr.bf16.mxu1 %v4666_v57 }
 0x12f   :  { %2776 = vmatpush1.bf16.msra.mxu0 %v4249_v34  ;;  %2817 = vmatpush1.bf16.msra.mxu1 %v4251_v35  ;;  %v4297_v34 = vcombine.low %v2061_v9, %v2065_v10  ;;  %v4299_v35 = vcombine.low %v2062_v15, %v2066_v16  ;;  %v2101_v9 = vld [vmem:[#allocation5 + $0xc40] sm:$0xff] }
 0x130   :  { %2777 = vmatprep.subr.bf16.mxu0 %v4258_v36  ;;  %2818 = vmatprep.subr.bf16.mxu1 %v4260_v37  ;;  %v4306_v36 = vcombine.high %v2069_v29, %v2073_v30  ;;  %v4308_v37 = vcombine.high %v2070_v32, %v2074_v33  ;;  %v2105_v10 = vld [vmem:[#allocation5 + $0xcc0] sm:$0xff] }
 0x133   :  { %2778 = vmatpush1.bf16.msra.mxu0 %v4257_v42  ;;  %2819 = vmatpush1.bf16.msra.mxu1 %v4259_v43  ;;  %v4305_v42 = vcombine.low %v2069_v29, %v2073_v30  ;;  %v4307_v43 = vcombine.low %v2070_v32, %v2074_v33  ;;  %v2122_v29 = vld [vmem:[#allocation5 + $0xec8] sm:$0xff] }
 0x134   :  { %2779 = vmatprep.subr.bf16.mxu0 %v4266_v44  ;;  %2820 = vmatprep.subr.bf16.mxu1 %v4268_v45  ;;  %v4314_v44 = vcombine.high %v2077_v38, %v2081_v39  ;;  %v4316_v45 = vcombine.high %v2078_v40, %v2082_v41 }
 0x137   :  { %2780 = vmatpush1.bf16.msra.mxu0 %v4265_v50  ;;  %2821 = vmatpush1.bf16.msra.mxu1 %v4267_v51  ;;  %v4313_v50 = vcombine.low %v2077_v38, %v2081_v39  ;;  %v4315_v51 = vcombine.low %v2078_v40, %v2082_v41 }
 0x138   :  { %2781 = vmatprep.subr.bf16.mxu0 %v4274_v52  ;;  %2822 = vmatprep.subr.bf16.mxu1 %v4276_v54  ;;  %v4322_v52 = vcombine.high %v2085_v46, %v2089_v47  ;;  %v2093_v54 = vld [vmem:[#allocation5 + $0xb40] sm:$0xff] }
 0x139   :  { %v4330_v3 = vcombine.high %v2093_v54, %v2097_v55  ;;  %v4329_v15 = vcombine.low %v2093_v54, %v2097_v55  ;;  %v2020_v54 = vld [vmem:[#allocation5 + $0x1d8] sm:$0xff] }
 0x13b   :  { %2782 = vmatpush1.bf16.msra.mxu0 %v4273_v60  ;;  %2823 = vmatpush1.bf16.msra.mxu1 %v4275_v61  ;;  %v4321_v61 = vcombine.low %v2085_v46, %v2089_v47 }
 0x13c   :  { %2783 = vmatprep.subr.bf16.mxu0 %v4282_v62  ;;  %2824 = vmatprep.subr.bf16.mxu1 %v4284_v63  ;;  %v4323_v62 = vcombine.low %v2086_v48, %v2090_v49  ;;  %v2094_v63 = vld [vmem:[#allocation5 + $0xb48] sm:$0xff] }
 0x13d   :  { %v848_v7 = vpop.f32.mrb[0].mxu0  ;;  %v889_v13 = vpop.f32.mrb[0].mxu1  ;;  %v4331_v16 = vcombine.low %v2094_v63, %v2098_v0 }
 0x13e   :  { %v978_v11 = vmul.f32 %v848_v7, %v848_v7  ;;  %v850_v14 = vpop.f32.mrb[1].mxu0  ;;  %v989_v17 = vmul.f32 %v889_v13, %v889_v13  ;;  %v891_v19 = vpop.f32.mrb[1].mxu1  ;;  %v2102_v13 = vld [vmem:[#allocation5 + $0xc48] sm:$0xff] }
 0x13f   :  { %v979_v18 = vmul.f32 %v850_v14, %v850_v14  ;;  %v852_v20 = vpop.f32.mrb[2].mxu0  ;;  %2784 = vmatpush1.bf16.msra.mxu0 %v4281_v4  ;;  %v990_v22 = vmul.f32 %v891_v19, %v891_v19  ;;  %v893_v53 = vpop.f32.mrb[2].mxu1  ;;  %2825 = vmatpush1.bf16.msra.mxu1 %v4283_v5  ;;  %v2106_v14 = vld [vmem:[#allocation5 + $0xcc8] sm:$0xff]  ;;  %v2109_v19 = vld [vmem:[#allocation5 + $0xd40] sm:$0xff] }
 0x140   :  { %v853_v23 = vpop.f32.mrb[3].mxu0  ;;  %2785 = vmatprep.subr.bf16.mxu0 %v4290_v6  ;;  %v894_v27 = vpop.f32.mrb[3].mxu1  ;;  %2826 = vmatprep.subr.bf16.mxu1 %v4292_v8  ;;  %v4332_v8 = vcombine.high %v2094_v63, %v2098_v0  ;;  %v2113_v20 = vld [vmem:[#allocation5 + $0xdc0] sm:$0xff]  ;;  %v4337_v53 = vcombine.low %v2101_v9, %v2105_v10  ;;  %v2028_v63 = vld [vmem:[#allocation5 + $0x2d8] sm:$0xff] }
 0x141   :  { %v4690_v26 = vadd.f32 %v979_v18, %v978_v11  ;;  %v4692_v31 = vadd.f32 %v990_v22, %v989_v17  ;;  %v4338_v17 = vcombine.high %v2101_v9, %v2105_v10  ;;  %v4340_v18 = vcombine.high %v2102_v13, %v2106_v14  ;;  %v2114_v22 = vld [vmem:[#allocation5 + $0xdc8] sm:$0xff]  ;;  %v2121_v27 = vld [vmem:[#allocation5 + $0xec0] sm:$0xff] }
 0x142   :  { %v4339_v23 = vcombine.low %v2102_v13, %v2106_v14  ;;  %v4345_v30 = vcombine.low %v2109_v19, %v2113_v20  ;;  %v2039_v13 = vld [vmem:[#allocation5 + $0x450] sm:$0xff] }
 0x143   :  { %4505 = vrsqrt.f32 %v4690_v26  ;;  %2786 = vmatpush1.bf16.msra.mxu0 %v4289_v21  ;;  %2827 = vmatpush1.bf16.msra.mxu1 %v4291_v24  ;;  %vm983_vm0 = vcmp.eq.f32.partialorder %v4690_v26, inf  ;;  %v986_v1 = vand.u32 2147483648, %v4690_v26  ;;  %vm985_vm1 = vcmp.eq.f32.partialorder %v4690_v26, 0.0  ;;  %v2110_v21 = vld [vmem:[#allocation5 + $0xd48] sm:$0xff]  ;;  %v2043_v14 = vld [vmem:[#allocation5 + $0x4d0] sm:$0xff] }
 0x144   :  { %4507 = vrsqrt.f32 %v4692_v31  ;;  %2787 = vmatprep.subr.bf16.mxu0 %v4298_v25  ;;  %2828 = vmatprep.subr.bf16.mxu1 %v4300_v28  ;;  %vm994_vm2 = vcmp.eq.f32.partialorder %v4692_v31, inf  ;;  %v997_v5 = vand.u32 2147483648, %v4692_v31  ;;  %vm996_vm3 = vcmp.eq.f32.partialorder %v4692_v31, 0.0  ;;  %v2118_v28 = vld [vmem:[#allocation5 + $0xe48] sm:$0xff] }
 0x145   :  { %v4346_v24 = vcombine.high %v2109_v19, %v2113_v20  ;;  %v4348_v25 = vcombine.high %v2110_v21, %v2114_v22  ;;  %v4356_v33 = vcombine.high %v2118_v28, %v2122_v29  ;;  %v4355_v39 = vcombine.low %v2118_v28, %v2122_v29  ;;  %v2055_v28 = vld [vmem:[#allocation5 + $0x650] sm:$0xff] }
 0x146   :  { %v4278_v19 = vcombine.high %v2039_v13, %v2043_v14  ;;  %v2059_v29 = vld [vmem:[#allocation5 + $0x6d0] sm:$0xff] }
 0x147   :  { %2788 = vmatpush1.bf16.msra.mxu0 %v4297_v34  ;;  %2829 = vmatpush1.bf16.msra.mxu1 %v4299_v35  ;;  %v2125_v34 = vld [vmem:[#allocation5 + $0xf40] sm:$0xff] }
 0x148   :  { %2789 = vmatprep.subr.bf16.mxu0 %v4306_v36  ;;  %2830 = vmatprep.subr.bf16.mxu1 %v4308_v37  ;;  %v2129_v35 = vld [vmem:[#allocation5 + $0xfc0] sm:$0xff]  ;;  %v2126_v36 = vld [vmem:[#allocation5 + $0xf48] sm:$0xff] }
 0x149   :  { %v2130_v37 = vld [vmem:[#allocation5 + $0xfc8] sm:$0xff]  ;;  %v4362_v40 = vcombine.high %v2125_v34, %v2129_v35  ;;  %v4361_v46 = vcombine.low %v2125_v34, %v2129_v35  ;;  %v4294_v34 = vcombine.high %v2055_v28, %v2059_v29 }
 0x14a   :  { %v4364_v41 = vcombine.high %v2126_v36, %v2130_v37  ;;  %v4363_v47 = vcombine.low %v2126_v36, %v2130_v37  ;;  %v2063_v37 = vld [vmem:[#allocation5 + $0x750] sm:$0xff] }
 0x14b   :  { %2790 = vmatpush1.bf16.msra.mxu0 %v4305_v42  ;;  %2831 = vmatpush1.bf16.msra.mxu1 %v4307_v43  ;;  %v2007_v42 = vld [vmem:[#allocation5 + $0x50] sm:$0xff] }
 0x14c   :  { %2791 = vmatprep.subr.bf16.mxu0 %v4314_v44  ;;  %2832 = vmatprep.subr.bf16.mxu1 %v4316_v45  ;;  %v2011_v43 = vld [vmem:[#allocation5 + $0xd0] sm:$0xff]  ;;  %v2008_v44 = vld [vmem:[#allocation5 + $0x58] sm:$0xff] }
 0x14d   :  { %v4506_v56 = vpop.eup %4505  ;;  %v2012_v45 = vld [vmem:[#allocation5 + $0xd8] sm:$0xff]  ;;  %v4246_v48 = vcombine.high %v2007_v42, %v2011_v43  ;;  %v4245_v55 = vcombine.low %v2007_v42, %v2011_v43 }
 0x14e   :  { %v4508_v59 = vpop.eup %4507  ;;  %v982_v60 = vmul.f32 %v4506_v56, %v4690_v26  ;;  %v4248_v49 = vcombine.high %v2008_v44, %v2012_v45  ;;  %v4247_v56 = vcombine.low %v2008_v44, %v2012_v45  ;;  %v2064_v42 = vld [vmem:[#allocation5 + $0x758] sm:$0xff] }
 0x14f   :  { %v993_v2 = vmul.f32 %v4508_v59, %v4692_v31  ;;  %2792 = vmatpush1.bf16.msra.mxu0 %v4313_v50  ;;  %2833 = vmatpush1.bf16.msra.mxu1 %v4315_v51  ;;  %v2015_v50 = vld [vmem:[#allocation5 + $0x150] sm:$0xff]  ;;  %v2068_v43 = vld [vmem:[#allocation5 + $0x7d8] sm:$0xff] }
 0x150   :  { %v984_v4 = vsel %vm983_vm0, %v4690_v26, %v982_v60  ;;  %2793 = vmatprep.subr.bf16.mxu0 %v4322_v52  ;;  %2834 = vmatprep.subr.bf16.mxu1 %v4324_v58  ;;  %v2117_v26 = vld [vmem:[#allocation5 + $0xe40] sm:$0xff]  ;;  %v2019_v51 = vld [vmem:[#allocation5 + $0x1d0] sm:$0xff]  ;;  %v2016_v52 = vld [vmem:[#allocation5 + $0x158] sm:$0xff] }
 0x151   :  { %v987_v6 = vsel %vm985_vm1, %v986_v1, %v984_v4  ;;  %v995_v7 = vsel %vm994_vm2, %v4692_v31, %v993_v2  ;;  %v4347_v31 = vcombine.low %v2110_v21, %v2114_v22  ;;  %v4354_v32 = vcombine.high %v2117_v26, %v2121_v27  ;;  %v2023_v60 = vld [vmem:[#allocation5 + $0x250] sm:$0xff] }
 0x152   :  { %988 = vst [vmem:[#allocation7] sm:$0xff] %v987_v6  ;;  %v998_v11 = vsel %vm996_vm3, %v997_v5, %v995_v7  ;;  %v4353_v38 = vcombine.low %v2117_v26, %v2121_v27  ;;  %v4254_v58 = vcombine.high %v2015_v50, %v2019_v51  ;;  %v4256_v59 = vcombine.high %v2016_v52, %v2020_v54  ;;  %v2031_v4 = vld [vmem:[#allocation5 + $0x350] sm:$0xff]  ;;  %v2032_v6 = vld [vmem:[#allocation5 + $0x358] sm:$0xff] }
 0x153   :  { %1000 = vst [vmem:[#allocation7 + $0x8] sm:$0xff] %v998_v11  ;;  %2794 = vmatpush1.bf16.msra.mxu0 %v4321_v61  ;;  %2835 = vmatpush1.bf16.msra.mxu1 %v4323_v62  ;;  %v2027_v61 = vld [vmem:[#allocation5 + $0x2d0] sm:$0xff]  ;;  %v2024_v62 = vld [vmem:[#allocation5 + $0x258] sm:$0xff]  ;;  %v4253_v0 = vcombine.low %v2015_v50, %v2019_v51  ;;  %v4255_v1 = vcombine.low %v2016_v52, %v2020_v54 }
 0x154   :  { %2795 = vmatprep.subr.bf16.mxu0 %v4330_v3  ;;  %2836 = vmatprep.subr.bf16.mxu1 %v4332_v8  ;;  %v4262_v2 = vcombine.high %v2023_v60, %v2027_v61  ;;  %v4264_v3 = vcombine.high %v2024_v62, %v2028_v63  ;;  %v2035_v5 = vld [vmem:[#allocation5 + $0x3d0] sm:$0xff]  ;;  %v2036_v7 = vld [vmem:[#allocation5 + $0x3d8] sm:$0xff]  ;;  %v4261_v8 = vcombine.low %v2023_v60, %v2027_v61 }
 0x155   :  { %v4263_v9 = vcombine.low %v2024_v62, %v2028_v63  ;;  %v4270_v10 = vcombine.high %v2031_v4, %v2035_v5  ;;  %v4272_v11 = vcombine.high %v2032_v6, %v2036_v7  ;;  %v2047_v21 = vld [vmem:[#allocation5 + $0x550] sm:$0xff]  ;;  %v2072_v62 = vld [vmem:[#allocation5 + $0x858] sm:$0xff] }
 0x156   :  { %v2051_v22 = vld [vmem:[#allocation5 + $0x5d0] sm:$0xff]  ;;  %v2076_v63 = vld [vmem:[#allocation5 + $0x8d8] sm:$0xff] }
 0x157   :  { %2796 = vmatpush1.bf16.msra.mxu0 %v4329_v15  ;;  %2837 = vmatpush1.bf16.msra.mxu1 %v4331_v16  ;;  %v2040_v15 = vld [vmem:[#allocation5 + $0x458] sm:$0xff]  ;;  %v4286_v26 = vcombine.high %v2047_v21, %v2051_v22  ;;  %v2075_v60 = vld [vmem:[#allocation5 + $0x8d0] sm:$0xff] }
 0x158   :  { %2797 = vmatprep.subr.bf16.mxu0 %v4338_v17  ;;  %2838 = vmatprep.subr.bf16.mxu1 %v4340_v18  ;;  %v2044_v16 = vld [vmem:[#allocation5 + $0x4d8] sm:$0xff]  ;;  %v4269_v17 = vcombine.low %v2031_v4, %v2035_v5  ;;  %v4271_v18 = vcombine.low %v2032_v6, %v2036_v7  ;;  %v2079_v4 = vld [vmem:[#allocation5 + $0x950] sm:$0xff] }
 0x159   :  { %v4280_v20 = vcombine.high %v2040_v15, %v2044_v16  ;;  %v2083_v5 = vld [vmem:[#allocation5 + $0x9d0] sm:$0xff]  ;;  %v2080_v6 = vld [vmem:[#allocation5 + $0x958] sm:$0xff] }
 0x15a   :  { %v2084_v7 = vld [vmem:[#allocation5 + $0x9d8] sm:$0xff] }
 0x15b   :  { %2798 = vmatpush1.bf16.msra.mxu0 %v4337_v53  ;;  %2839 = vmatpush1.bf16.msra.mxu1 %v4339_v23  ;;  %v2048_v53 = vld [vmem:[#allocation5 + $0x558] sm:$0xff] }
 0x15c   :  { %2799 = vmatprep.subr.bf16.mxu0 %v4346_v24  ;;  %2840 = vmatprep.subr.bf16.mxu1 %v4348_v25  ;;  %v2052_v23 = vld [vmem:[#allocation5 + $0x5d8] sm:$0xff]  ;;  %v4277_v24 = vcombine.low %v2039_v13, %v2043_v14  ;;  %v4279_v25 = vcombine.low %v2040_v15, %v2044_v16  ;;  %v2087_v13 = vld [vmem:[#allocation5 + $0xa50] sm:$0xff] }
 0x15d   :  { %v4288_v27 = vcombine.high %v2048_v53, %v2052_v23  ;;  %v2091_v14 = vld [vmem:[#allocation5 + $0xad0] sm:$0xff]  ;;  %v2088_v15 = vld [vmem:[#allocation5 + $0xa58] sm:$0xff] }
 0x15e   :  { %v2092_v16 = vld [vmem:[#allocation5 + $0xad8] sm:$0xff] }
 0x15f   :  { %2800 = vmatpush1.bf16.msra.mxu0 %v4345_v30  ;;  %2841 = vmatpush1.bf16.msra.mxu1 %v4347_v31  ;;  %v2056_v30 = vld [vmem:[#allocation5 + $0x658] sm:$0xff] }
 0x160   :  { %2801 = vmatprep.subr.bf16.mxu0 %v4354_v32  ;;  %2842 = vmatprep.subr.bf16.mxu1 %v4356_v33  ;;  %v2060_v31 = vld [vmem:[#allocation5 + $0x6d8] sm:$0xff]  ;;  %v4285_v32 = vcombine.low %v2047_v21, %v2051_v22  ;;  %v4287_v33 = vcombine.low %v2048_v53, %v2052_v23  ;;  %v2099_v21 = vld [vmem:[#allocation5 + $0xbd0] sm:$0xff]  ;;  %v4328_v53 = vcombine.high %v2088_v15, %v2092_v16 }
 0x161   :  { %v4296_v36 = vcombine.high %v2056_v30, %v2060_v31  ;;  %v4295_v52 = vcombine.low %v2056_v30, %v2060_v31 }
 0x163   :  { %2802 = vmatpush1.bf16.msra.mxu0 %v4353_v38  ;;  %2843 = vmatpush1.bf16.msra.mxu1 %v4355_v39  ;;  %v2067_v38 = vld [vmem:[#allocation5 + $0x7d0] sm:$0xff] }
 0x164   :  { %2803 = vmatprep.subr.bf16.mxu0 %v4362_v40  ;;  %2844 = vmatprep.subr.bf16.mxu1 %v4364_v41  ;;  %v4302_v54 = vcombine.high %v2063_v37, %v2067_v38 }
 0x167   :  { %2804 = vmatpush1.bf16.msra.mxu0 %v4361_v46  ;;  %2845 = vmatpush1.bf16.msra.mxu1 %v4363_v47 }
 0x168   :  { %2855 = vmatprep.subr.bf16.mxu0 %v4246_v48  ;;  %2896 = vmatprep.subr.bf16.mxu1 %v4248_v49  ;;  %v4293_v48 = vcombine.low %v2055_v28, %v2059_v29  ;;  %v2100_v28 = vld [vmem:[#allocation5 + $0xbd8] sm:$0xff] }
 0x16a   :  { %2806 = vmatmul.mubr.bf16.vlgmr.msra.gmra.mrb[16].mxu0 %v4672_v12  ;;  %2847 = vmatmul.mubr.bf16.vlgmr.msra.gmra.mrb[16].mxu1 %v4672_v12 }
 0x16b   :  { %2856 = vmatpush1.bf16.msra.mxu0 %v4245_v55  ;;  %2897 = vmatpush1.bf16.msra.mxu1 %v4247_v56 }
 0x16c   :  { %2857 = vmatprep.subr.bf16.mxu0 %v4254_v58  ;;  %2898 = vmatprep.subr.bf16.mxu1 %v4256_v59  ;;  %v4304_v58 = vcombine.high %v2064_v42, %v2068_v43  ;;  %v2071_v59 = vld [vmem:[#allocation5 + $0x850] sm:$0xff] }
 0x16d   :  { %2887 = vmatprep.mubr.bf16.mxu0 %v4666_v57  ;;  %2928 = vmatprep.mubr.bf16.mxu1 %v4666_v57 }
 0x16f   :  { %2858 = vmatpush1.bf16.msra.mxu0 %v4253_v0  ;;  %2899 = vmatpush1.bf16.msra.mxu1 %v4255_v1  ;;  %v4301_v0 = vcombine.low %v2063_v37, %v2067_v38  ;;  %v4303_v1 = vcombine.low %v2064_v42, %v2068_v43  ;;  %v2103_v37 = vld [vmem:[#allocation5 + $0xc50] sm:$0xff] }
 0x170   :  { %2859 = vmatprep.subr.bf16.mxu0 %v4262_v2  ;;  %2900 = vmatprep.subr.bf16.mxu1 %v4264_v3  ;;  %v4310_v2 = vcombine.high %v2071_v59, %v2075_v60  ;;  %v4312_v3 = vcombine.high %v2072_v62, %v2076_v63  ;;  %v2107_v38 = vld [vmem:[#allocation5 + $0xcd0] sm:$0xff] }
 0x173   :  { %2860 = vmatpush1.bf16.msra.mxu0 %v4261_v8  ;;  %2901 = vmatpush1.bf16.msra.mxu1 %v4263_v9  ;;  %v4309_v8 = vcombine.low %v2071_v59, %v2075_v60  ;;  %v4311_v9 = vcombine.low %v2072_v62, %v2076_v63  ;;  %v2124_v59 = vld [vmem:[#allocation5 + $0xed8] sm:$0xff] }
 0x174   :  { %2861 = vmatprep.subr.bf16.mxu0 %v4270_v10  ;;  %2902 = vmatprep.subr.bf16.mxu1 %v4272_v11  ;;  %v4318_v10 = vcombine.high %v2079_v4, %v2083_v5  ;;  %v4320_v11 = vcombine.high %v2080_v6, %v2084_v7 }
 0x177   :  { %2862 = vmatpush1.bf16.msra.mxu0 %v4269_v17  ;;  %2903 = vmatpush1.bf16.msra.mxu1 %v4271_v18  ;;  %v4317_v17 = vcombine.low %v2079_v4, %v2083_v5  ;;  %v4319_v18 = vcombine.low %v2080_v6, %v2084_v7 }
 0x178   :  { %2863 = vmatprep.subr.bf16.mxu0 %v4278_v19  ;;  %2904 = vmatprep.subr.bf16.mxu1 %v4280_v20  ;;  %v4326_v19 = vcombine.high %v2087_v13, %v2091_v14  ;;  %v2095_v20 = vld [vmem:[#allocation5 + $0xb50] sm:$0xff] }
 0x179   :  { %v4334_v31 = vcombine.high %v2095_v20, %v2099_v21  ;;  %v4333_v42 = vcombine.low %v2095_v20, %v2099_v21  ;;  %v2998_v20 = vld [vmem:[#allocation5 + $0x1e8] sm:$0xff] }
 0x17b   :  { %2864 = vmatpush1.bf16.msra.mxu0 %v4277_v24  ;;  %2905 = vmatpush1.bf16.msra.mxu1 %v4279_v25  ;;  %v4325_v25 = vcombine.low %v2087_v13, %v2091_v14 }
 0x17c   :  { %2865 = vmatprep.subr.bf16.mxu0 %v4286_v26  ;;  %2906 = vmatprep.subr.bf16.mxu1 %v4288_v27  ;;  %v4327_v26 = vcombine.low %v2088_v15, %v2092_v16  ;;  %v2096_v27 = vld [vmem:[#allocation5 + $0xb58] sm:$0xff] }
 0x17d   :  { %v930_v35 = vpop.f32.mrb[4].mxu0  ;;  %v971_v40 = vpop.f32.mrb[4].mxu1  ;;  %v4335_v43 = vcombine.low %v2096_v27, %v2100_v28 }
 0x17e   :  { %v1001_v39 = vmul.f32 %v930_v35, %v930_v35  ;;  %v932_v41 = vpop.f32.mrb[5].mxu0  ;;  %v1013_v44 = vmul.f32 %v971_v40, %v971_v40  ;;  %v973_v46 = vpop.f32.mrb[5].mxu1  ;;  %v2104_v40 = vld [vmem:[#allocation5 + $0xc58] sm:$0xff] }
 0x17f   :  { %v1002_v45 = vmul.f32 %v932_v41, %v932_v41  ;;  %v934_v47 = vpop.f32.mrb[6].mxu0  ;;  %2866 = vmatpush1.bf16.msra.mxu0 %v4285_v32  ;;  %v1014_v49 = vmul.f32 %v973_v46, %v973_v46  ;;  %v975_v50 = vpop.f32.mrb[6].mxu1  ;;  %2907 = vmatpush1.bf16.msra.mxu1 %v4287_v33  ;;  %v2108_v41 = vld [vmem:[#allocation5 + $0xcd8] sm:$0xff]  ;;  %v2111_v46 = vld [vmem:[#allocation5 + $0xd50] sm:$0xff] }
 0x180   :  { %v935_v51 = vpop.f32.mrb[7].mxu0  ;;  %2867 = vmatprep.subr.bf16.mxu0 %v4294_v34  ;;  %v976_v56 = vpop.f32.mrb[7].mxu1  ;;  %2908 = vmatprep.subr.bf16.mxu1 %v4296_v36  ;;  %v4336_v36 = vcombine.high %v2096_v27, %v2100_v28  ;;  %v2115_v47 = vld [vmem:[#allocation5 + $0xdd0] sm:$0xff]  ;;  %v4341_v50 = vcombine.low %v2103_v37, %v2107_v38  ;;  %v3006_v27 = vld [vmem:[#allocation5 + $0x2e8] sm:$0xff] }
 0x181   :  { %v4710_v55 = vadd.f32 %v1002_v45, %v1001_v39  ;;  %v4712_v61 = vadd.f32 %v1014_v49, %v1013_v44  ;;  %v4342_v44 = vcombine.high %v2103_v37, %v2107_v38  ;;  %v4344_v45 = vcombine.high %v2104_v40, %v2108_v41  ;;  %v2116_v49 = vld [vmem:[#allocation5 + $0xdd8] sm:$0xff]  ;;  %v2123_v56 = vld [vmem:[#allocation5 + $0xed0] sm:$0xff] }
 0x182   :  { %v4343_v51 = vcombine.low %v2104_v40, %v2108_v41  ;;  %v4349_v60 = vcombine.low %v2111_v46, %v2115_v47  ;;  %v3017_v40 = vld [vmem:[#allocation5 + $0x460] sm:$0xff] }
 0x183   :  { %4509 = vrsqrt.f32 %v4710_v55  ;;  %2868 = vmatpush1.bf16.msra.mxu0 %v4293_v48  ;;  %2909 = vmatpush1.bf16.msra.mxu1 %v4295_v52  ;;  %vm1006_vm4 = vcmp.eq.f32.partialorder %v4710_v55, inf  ;;  %v1009_v29 = vand.u32 2147483648, %v4710_v55  ;;  %vm1008_vm5 = vcmp.eq.f32.partialorder %v4710_v55, 0.0  ;;  %v2112_v48 = vld [vmem:[#allocation5 + $0xd58] sm:$0xff]  ;;  %v3021_v41 = vld [vmem:[#allocation5 + $0x4e0] sm:$0xff] }
 0x184   :  { %4511 = vrsqrt.f32 %v4712_v61  ;;  %2869 = vmatprep.subr.bf16.mxu0 %v4302_v54  ;;  %2910 = vmatprep.subr.bf16.mxu1 %v4304_v58  ;;  %vm1018_vm6 = vcmp.eq.f32.partialorder %v4712_v61, inf  ;;  %v1021_v33 = vand.u32 2147483648, %v4712_v61  ;;  %vm1020_vm7 = vcmp.eq.f32.partialorder %v4712_v61, 0.0  ;;  %v2120_v58 = vld [vmem:[#allocation5 + $0xe58] sm:$0xff] }
 0x185   :  { %v4350_v52 = vcombine.high %v2111_v46, %v2115_v47  ;;  %v4352_v54 = vcombine.high %v2112_v48, %v2116_v49  ;;  %v4360_v63 = vcombine.high %v2120_v58, %v2124_v59  ;;  %v4359_v5 = vcombine.low %v2120_v58, %v2124_v59  ;;  %v3033_v58 = vld [vmem:[#allocation5 + $0x660] sm:$0xff] }
 0x186   :  { %v4402_v46 = vcombine.high %v3017_v40, %v3021_v41  ;;  %v3037_v59 = vld [vmem:[#allocation5 + $0x6e0] sm:$0xff] }
 0x187   :  { %2870 = vmatpush1.bf16.msra.mxu0 %v4301_v0  ;;  %2911 = vmatpush1.bf16.msra.mxu1 %v4303_v1  ;;  %v2127_v0 = vld [vmem:[#allocation5 + $0xf50] sm:$0xff] }
 0x188   :  { %2871 = vmatprep.subr.bf16.mxu0 %v4310_v2  ;;  %2912 = vmatprep.subr.bf16.mxu1 %v4312_v3  ;;  %v2131_v1 = vld [vmem:[#allocation5 + $0xfd0] sm:$0xff]  ;;  %v2128_v2 = vld [vmem:[#allocation5 + $0xf58] sm:$0xff] }
 0x189   :  { %v2132_v3 = vld [vmem:[#allocation5 + $0xfd8] sm:$0xff]  ;;  %v4366_v6 = vcombine.high %v2127_v0, %v2131_v1  ;;  %v4365_v13 = vcombine.low %v2127_v0, %v2131_v1  ;;  %v4418_v0 = vcombine.high %v3033_v58, %v3037_v59 }
 0x18a   :  { %v4368_v7 = vcombine.high %v2128_v2, %v2132_v3  ;;  %v4367_v14 = vcombine.low %v2128_v2, %v2132_v3  ;;  %v3041_v3 = vld [vmem:[#allocation5 + $0x760] sm:$0xff] }
 0x18b   :  { %2872 = vmatpush1.bf16.msra.mxu0 %v4309_v8  ;;  %2913 = vmatpush1.bf16.msra.mxu1 %v4311_v9  ;;  %v2985_v8 = vld [vmem:[#allocation5 + $0x60] sm:$0xff] }
 0x18c   :  { %2873 = vmatprep.subr.bf16.mxu0 %v4318_v10  ;;  %2914 = vmatprep.subr.bf16.mxu1 %v4320_v11  ;;  %v2989_v9 = vld [vmem:[#allocation5 + $0xe0] sm:$0xff]  ;;  %v2986_v10 = vld [vmem:[#allocation5 + $0x68] sm:$0xff] }
 0x18d   :  { %v4510_v22 = vpop.eup %4509  ;;  %v2990_v11 = vld [vmem:[#allocation5 + $0xe8] sm:$0xff]  ;;  %v4370_v15 = vcombine.high %v2985_v8, %v2989_v9  ;;  %v4369_v21 = vcombine.low %v2985_v8, %v2989_v9 }
 0x18e   :  { %v4512_v23 = vpop.eup %4511  ;;  %v1005_v24 = vmul.f32 %v4510_v22, %v4710_v55  ;;  %v4372_v16 = vcombine.high %v2986_v10, %v2990_v11  ;;  %v4371_v22 = vcombine.low %v2986_v10, %v2990_v11  ;;  %v3042_v8 = vld [vmem:[#allocation5 + $0x768] sm:$0xff] }
 0x18f   :  { %v1017_v30 = vmul.f32 %v4512_v23, %v4712_v61  ;;  %2874 = vmatpush1.bf16.msra.mxu0 %v4317_v17  ;;  %2915 = vmatpush1.bf16.msra.mxu1 %v4319_v18  ;;  %v2993_v17 = vld [vmem:[#allocation5 + $0x160] sm:$0xff]  ;;  %v3046_v9 = vld [vmem:[#allocation5 + $0x7e8] sm:$0xff] }
 0x190   :  { %v1007_v32 = vsel %vm1006_vm4, %v4710_v55, %v1005_v24  ;;  %2875 = vmatprep.subr.bf16.mxu0 %v4326_v19  ;;  %2916 = vmatprep.subr.bf16.mxu1 %v4328_v53  ;;  %v2119_v55 = vld [vmem:[#allocation5 + $0xe50] sm:$0xff]  ;;  %v2997_v18 = vld [vmem:[#allocation5 + $0x1e0] sm:$0xff]  ;;  %v2994_v19 = vld [vmem:[#allocation5 + $0x168] sm:$0xff] }
 0x191   :  { %v1010_v34 = vsel %vm1008_vm5, %v1009_v29, %v1007_v32  ;;  %v1019_v35 = vsel %vm1018_vm6, %v4712_v61, %v1017_v30  ;;  %v4351_v61 = vcombine.low %v2112_v48, %v2116_v49  ;;  %v4358_v62 = vcombine.high %v2119_v55, %v2123_v56  ;;  %v3001_v24 = vld [vmem:[#allocation5 + $0x260] sm:$0xff] }
 0x192   :  { %1012 = vst [vmem:[#allocation7 + $0x10] sm:$0xff] %v1010_v34  ;;  %v1022_v39 = vsel %vm1020_vm7, %v1021_v33, %v1019_v35  ;;  %v4357_v4 = vcombine.low %v2119_v55, %v2123_v56  ;;  %v4378_v53 = vcombine.high %v2993_v17, %v2997_v18  ;;  %v4380_v23 = vcombine.high %v2994_v19, %v2998_v20  ;;  %v3009_v32 = vld [vmem:[#allocation5 + $0x360] sm:$0xff]  ;;  %v3010_v34 = vld [vmem:[#allocation5 + $0x368] sm:$0xff] }
 0x193   :  { %1024 = vst [vmem:[#allocation7 + $0x18] sm:$0xff] %v1022_v39  ;;  %2876 = vmatpush1.bf16.msra.mxu0 %v4325_v25  ;;  %2917 = vmatpush1.bf16.msra.mxu1 %v4327_v26  ;;  %v3005_v25 = vld [vmem:[#allocation5 + $0x2e0] sm:$0xff]  ;;  %v3002_v26 = vld [vmem:[#allocation5 + $0x268] sm:$0xff]  ;;  %v4377_v28 = vcombine.low %v2993_v17, %v2997_v18  ;;  %v4379_v29 = vcombine.low %v2994_v19, %v2998_v20 }
 0x194   :  { %2877 = vmatprep.subr.bf16.mxu0 %v4334_v31  ;;  %2918 = vmatprep.subr.bf16.mxu1 %v4336_v36  ;;  %v4386_v30 = vcombine.high %v3001_v24, %v3005_v25  ;;  %v4388_v31 = vcombine.high %v3002_v26, %v3006_v27  ;;  %v3013_v33 = vld [vmem:[#allocation5 + $0x3e0] sm:$0xff]  ;;  %v3014_v35 = vld [vmem:[#allocation5 + $0x3e8] sm:$0xff]  ;;  %v4385_v36 = vcombine.low %v3001_v24, %v3005_v25 }
 0x195   :  { %v4387_v37 = vcombine.low %v3002_v26, %v3006_v27  ;;  %v4394_v38 = vcombine.high %v3009_v32, %v3013_v33  ;;  %v4396_v39 = vcombine.high %v3010_v34, %v3014_v35  ;;  %v3025_v48 = vld [vmem:[#allocation5 + $0x560] sm:$0xff]  ;;  %v3050_v26 = vld [vmem:[#allocation5 + $0x868] sm:$0xff] }
 0x196   :  { %v3029_v49 = vld [vmem:[#allocation5 + $0x5e0] sm:$0xff]  ;;  %v3054_v27 = vld [vmem:[#allocation5 + $0x8e8] sm:$0xff] }
 0x197   :  { %2878 = vmatpush1.bf16.msra.mxu0 %v4333_v42  ;;  %2919 = vmatpush1.bf16.msra.mxu1 %v4335_v43  ;;  %v3018_v42 = vld [vmem:[#allocation5 + $0x468] sm:$0xff]  ;;  %v4410_v55 = vcombine.high %v3025_v48, %v3029_v49  ;;  %v3053_v24 = vld [vmem:[#allocation5 + $0x8e0] sm:$0xff] }
 0x198   :  { %2879 = vmatprep.subr.bf16.mxu0 %v4342_v44  ;;  %2920 = vmatprep.subr.bf16.mxu1 %v4344_v45  ;;  %v3022_v43 = vld [vmem:[#allocation5 + $0x4e8] sm:$0xff]  ;;  %v4393_v44 = vcombine.low %v3009_v32, %v3013_v33  ;;  %v4395_v45 = vcombine.low %v3010_v34, %v3014_v35  ;;  %v3057_v32 = vld [vmem:[#allocation5 + $0x960] sm:$0xff] }
 0x199   :  { %v4404_v47 = vcombine.high %v3018_v42, %v3022_v43  ;;  %v3061_v33 = vld [vmem:[#allocation5 + $0x9e0] sm:$0xff]  ;;  %v3058_v34 = vld [vmem:[#allocation5 + $0x968] sm:$0xff] }
 0x19a   :  { %v3062_v35 = vld [vmem:[#allocation5 + $0x9e8] sm:$0xff] }
 0x19b   :  { %2880 = vmatpush1.bf16.msra.mxu0 %v4341_v50  ;;  %2921 = vmatpush1.bf16.msra.mxu1 %v4343_v51  ;;  %v3026_v50 = vld [vmem:[#allocation5 + $0x568] sm:$0xff] }
 0x19c   :  { %2881 = vmatprep.subr.bf16.mxu0 %v4350_v52  ;;  %2922 = vmatprep.subr.bf16.mxu1 %v4352_v54  ;;  %v3030_v51 = vld [vmem:[#allocation5 + $0x5e8] sm:$0xff]  ;;  %v4401_v52 = vcombine.low %v3017_v40, %v3021_v41  ;;  %v4403_v54 = vcombine.low %v3018_v42, %v3022_v43  ;;  %v3065_v40 = vld [vmem:[#allocation5 + $0xa60] sm:$0xff] }
 0x19d   :  { %v4412_v56 = vcombine.high %v3026_v50, %v3030_v51  ;;  %v3069_v41 = vld [vmem:[#allocation5 + $0xae0] sm:$0xff]  ;;  %v3066_v42 = vld [vmem:[#allocation5 + $0xa68] sm:$0xff] }
 0x19e   :  { %v3070_v43 = vld [vmem:[#allocation5 + $0xae8] sm:$0xff] }
 0x19f   :  { %2882 = vmatpush1.bf16.msra.mxu0 %v4349_v60  ;;  %2923 = vmatpush1.bf16.msra.mxu1 %v4351_v61  ;;  %v3034_v60 = vld [vmem:[#allocation5 + $0x668] sm:$0xff] }
 0x1a0   :  { %2883 = vmatprep.subr.bf16.mxu0 %v4358_v62  ;;  %2924 = vmatprep.subr.bf16.mxu1 %v4360_v63  ;;  %v3038_v61 = vld [vmem:[#allocation5 + $0x6e8] sm:$0xff]  ;;  %v4409_v62 = vcombine.low %v3025_v48, %v3029_v49  ;;  %v4411_v63 = vcombine.low %v3026_v50, %v3030_v51  ;;  %v3077_v48 = vld [vmem:[#allocation5 + $0xbe0] sm:$0xff]  ;;  %v4452_v50 = vcombine.high %v3066_v42, %v3070_v43 }
 0x1a1   :  { %v4420_v2 = vcombine.high %v3034_v60, %v3038_v61  ;;  %v4419_v19 = vcombine.low %v3034_v60, %v3038_v61 }
 0x1a3   :  { %2884 = vmatpush1.bf16.msra.mxu0 %v4357_v4  ;;  %2925 = vmatpush1.bf16.msra.mxu1 %v4359_v5  ;;  %v3045_v4 = vld [vmem:[#allocation5 + $0x7e0] sm:$0xff] }
 0x1a4   :  { %2885 = vmatprep.subr.bf16.mxu0 %v4366_v6  ;;  %2926 = vmatprep.subr.bf16.mxu1 %v4368_v7  ;;  %v4426_v20 = vcombine.high %v3041_v3, %v3045_v4 }
 0x1a7   :  { %2886 = vmatpush1.bf16.msra.mxu0 %v4365_v13  ;;  %2927 = vmatpush1.bf16.msra.mxu1 %v4367_v14 }
 0x1a8   :  { %3753 = vmatprep.subr.bf16.mxu0 %v4370_v15  ;;  %3794 = vmatprep.subr.bf16.mxu1 %v4372_v16  ;;  %v4417_v15 = vcombine.low %v3033_v58, %v3037_v59  ;;  %v3078_v58 = vld [vmem:[#allocation5 + $0xbe8] sm:$0xff] }
 0x1aa   :  { %2888 = vmatmul.mubr.bf16.vlgmr.msra.gmra.mrb[20].mxu0 %v4672_v12  ;;  %2929 = vmatmul.mubr.bf16.vlgmr.msra.gmra.mrb[20].mxu1 %v4672_v12 }
 0x1ab   :  { %3754 = vmatpush1.bf16.msra.mxu0 %v4369_v21  ;;  %3795 = vmatpush1.bf16.msra.mxu1 %v4371_v22 }
 0x1ac   :  { %3755 = vmatprep.subr.bf16.mxu0 %v4378_v53  ;;  %3796 = vmatprep.subr.bf16.mxu1 %v4380_v23  ;;  %v4428_v53 = vcombine.high %v3042_v8, %v3046_v9  ;;  %v3049_v23 = vld [vmem:[#allocation5 + $0x860] sm:$0xff] }
 0x1ad   :  { %3785 = vmatprep.mubr.bf16.mxu0 %v4666_v57  ;;  %3826 = vmatprep.mubr.bf16.mxu1 %v4666_v57 }
 0x1af   :  { %3756 = vmatpush1.bf16.msra.mxu0 %v4377_v28  ;;  %3797 = vmatpush1.bf16.msra.mxu1 %v4379_v29  ;;  %v4425_v28 = vcombine.low %v3041_v3, %v3045_v4  ;;  %v4427_v29 = vcombine.low %v3042_v8, %v3046_v9  ;;  %v3081_v3 = vld [vmem:[#allocation5 + $0xc60] sm:$0xff] }
 0x1b0   :  { %3757 = vmatprep.subr.bf16.mxu0 %v4386_v30  ;;  %3798 = vmatprep.subr.bf16.mxu1 %v4388_v31  ;;  %v4434_v30 = vcombine.high %v3049_v23, %v3053_v24  ;;  %v4436_v31 = vcombine.high %v3050_v26, %v3054_v27  ;;  %v3085_v4 = vld [vmem:[#allocation5 + $0xce0] sm:$0xff] }
 0x1b3   :  { %3758 = vmatpush1.bf16.msra.mxu0 %v4385_v36  ;;  %3799 = vmatpush1.bf16.msra.mxu1 %v4387_v37  ;;  %v4433_v36 = vcombine.low %v3049_v23, %v3053_v24  ;;  %v4435_v37 = vcombine.low %v3050_v26, %v3054_v27  ;;  %v3102_v23 = vld [vmem:[#allocation5 + $0xee8] sm:$0xff] }
 0x1b4   :  { %3759 = vmatprep.subr.bf16.mxu0 %v4394_v38  ;;  %3800 = vmatprep.subr.bf16.mxu1 %v4396_v39  ;;  %v4442_v38 = vcombine.high %v3057_v32, %v3061_v33  ;;  %v4444_v39 = vcombine.high %v3058_v34, %v3062_v35 }
 0x1b7   :  { %3760 = vmatpush1.bf16.msra.mxu0 %v4393_v44  ;;  %3801 = vmatpush1.bf16.msra.mxu1 %v4395_v45  ;;  %v4441_v44 = vcombine.low %v3057_v32, %v3061_v33  ;;  %v4443_v45 = vcombine.low %v3058_v34, %v3062_v35 }
 0x1b8   :  { %3761 = vmatprep.subr.bf16.mxu0 %v4402_v46  ;;  %3802 = vmatprep.subr.bf16.mxu1 %v4404_v47  ;;  %v4450_v46 = vcombine.high %v3065_v40, %v3069_v41  ;;  %v3073_v47 = vld [vmem:[#allocation5 + $0xb60] sm:$0xff] }
 0x1b9   :  { %v4458_v61 = vcombine.high %v3073_v47, %v3077_v48  ;;  %v4457_v8 = vcombine.low %v3073_v47, %v3077_v48  ;;  %v3000_v47 = vld [vmem:[#allocation5 + $0x1f8] sm:$0xff] }
 0x1bb   :  { %3762 = vmatpush1.bf16.msra.mxu0 %v4401_v52  ;;  %3803 = vmatpush1.bf16.msra.mxu1 %v4403_v54  ;;  %v4449_v54 = vcombine.low %v3065_v40, %v3069_v41 }
 0x1bc   :  { %3763 = vmatprep.subr.bf16.mxu0 %v4410_v55  ;;  %3804 = vmatprep.subr.bf16.mxu1 %v4412_v56  ;;  %v4451_v55 = vcombine.low %v3066_v42, %v3070_v43  ;;  %v3074_v56 = vld [vmem:[#allocation5 + $0xb68] sm:$0xff] }
 0x1bd   :  { %v1827_v1 = vpop.f32.mrb[8].mxu0  ;;  %v1868_v6 = vpop.f32.mrb[8].mxu1  ;;  %v4459_v9 = vcombine.low %v3074_v56, %v3078_v58 }
 0x1be   :  { %v1957_v5 = vmul.f32 %v1827_v1, %v1827_v1  ;;  %v1829_v7 = vpop.f32.mrb[9].mxu0  ;;  %v1969_v10 = vmul.f32 %v1868_v6, %v1868_v6  ;;  %v1870_v13 = vpop.f32.mrb[9].mxu1  ;;  %v3082_v6 = vld [vmem:[#allocation5 + $0xc68] sm:$0xff] }
 0x1bf   :  { %v1958_v11 = vmul.f32 %v1829_v7, %v1829_v7  ;;  %v1831_v14 = vpop.f32.mrb[10].mxu0  ;;  %3764 = vmatpush1.bf16.msra.mxu0 %v4409_v62  ;;  %v1970_v16 = vmul.f32 %v1870_v13, %v1870_v13  ;;  %v1872_v17 = vpop.f32.mrb[10].mxu1  ;;  %3805 = vmatpush1.bf16.msra.mxu1 %v4411_v63  ;;  %v3086_v7 = vld [vmem:[#allocation5 + $0xce8] sm:$0xff]  ;;  %v3089_v13 = vld [vmem:[#allocation5 + $0xd60] sm:$0xff] }
 0x1c0   :  { %v1832_v18 = vpop.f32.mrb[11].mxu0  ;;  %3765 = vmatprep.subr.bf16.mxu0 %v4418_v0  ;;  %v1873_v22 = vpop.f32.mrb[11].mxu1  ;;  %3806 = vmatprep.subr.bf16.mxu1 %v4420_v2  ;;  %v4460_v2 = vcombine.high %v3074_v56, %v3078_v58  ;;  %v3093_v14 = vld [vmem:[#allocation5 + $0xde0] sm:$0xff]  ;;  %v4465_v17 = vcombine.low %v3081_v3, %v3085_v4  ;;  %v3008_v56 = vld [vmem:[#allocation5 + $0x2f8] sm:$0xff] }
 0x1c1   :  { %v4730_v21 = vadd.f32 %v1958_v11, %v1957_v5  ;;  %v4732_v25 = vadd.f32 %v1970_v16, %v1969_v10  ;;  %v4466_v10 = vcombine.high %v3081_v3, %v3085_v4  ;;  %v4468_v11 = vcombine.high %v3082_v6, %v3086_v7  ;;  %v3094_v16 = vld [vmem:[#allocation5 + $0xde8] sm:$0xff]  ;;  %v3101_v22 = vld [vmem:[#allocation5 + $0xee0] sm:$0xff] }
 0x1c2   :  { %v4467_v18 = vcombine.low %v3082_v6, %v3086_v7  ;;  %v4473_v24 = vcombine.low %v3089_v13, %v3093_v14  ;;  %v3019_v6 = vld [vmem:[#allocation5 + $0x470] sm:$0xff] }
 0x1c3   :  { %4513 = vrsqrt.f32 %v4730_v21  ;;  %3766 = vmatpush1.bf16.msra.mxu0 %v4417_v15  ;;  %3807 = vmatpush1.bf16.msra.mxu1 %v4419_v19  ;;  %vm1962_vm8 = vcmp.eq.f32.partialorder %v4730_v21, inf  ;;  %v1965_v59 = vand.u32 2147483648, %v4730_v21  ;;  %vm1964_vm9 = vcmp.eq.f32.partialorder %v4730_v21, 0.0  ;;  %v3090_v15 = vld [vmem:[#allocation5 + $0xd68] sm:$0xff]  ;;  %v3023_v7 = vld [vmem:[#allocation5 + $0x4f0] sm:$0xff] }
 0x1c4   :  { %4515 = vrsqrt.f32 %v4732_v25  ;;  %3767 = vmatprep.subr.bf16.mxu0 %v4426_v20  ;;  %3808 = vmatprep.subr.bf16.mxu1 %v4428_v53  ;;  %vm1974_vm10 = vcmp.eq.f32.partialorder %v4732_v25, inf  ;;  %v1977_v63 = vand.u32 2147483648, %v4732_v25  ;;  %vm1976_vm11 = vcmp.eq.f32.partialorder %v4732_v25, 0.0  ;;  %v3098_v53 = vld [vmem:[#allocation5 + $0xe68] sm:$0xff] }
 0x1c5   :  { %v4474_v19 = vcombine.high %v3089_v13, %v3093_v14  ;;  %v4476_v20 = vcombine.high %v3090_v15, %v3094_v16  ;;  %v4484_v27 = vcombine.high %v3098_v53, %v3102_v23  ;;  %v4483_v33 = vcombine.low %v3098_v53, %v3102_v23  ;;  %v3027_v14 = vld [vmem:[#allocation5 + $0x570] sm:$0xff]  ;;  %v3036_v23 = vld [vmem:[#allocation5 + $0x678] sm:$0xff] }
 0x1c6   :  { %v4406_v13 = vcombine.high %v3019_v6, %v3023_v7  ;;  %v3039_v53 = vld [vmem:[#allocation5 + $0x6f0] sm:$0xff] }
 0x1c7   :  { %3768 = vmatpush1.bf16.msra.mxu0 %v4425_v28  ;;  %3809 = vmatpush1.bf16.msra.mxu1 %v4427_v29  ;;  %v3105_v28 = vld [vmem:[#allocation5 + $0xf60] sm:$0xff] }
 0x1c8   :  { %3769 = vmatprep.subr.bf16.mxu0 %v4434_v30  ;;  %3810 = vmatprep.subr.bf16.mxu1 %v4436_v31  ;;  %v3109_v29 = vld [vmem:[#allocation5 + $0xfe0] sm:$0xff]  ;;  %v3106_v30 = vld [vmem:[#allocation5 + $0xf68] sm:$0xff] }
 0x1c9   :  { %v3110_v31 = vld [vmem:[#allocation5 + $0xfe8] sm:$0xff]  ;;  %v4490_v34 = vcombine.high %v3105_v28, %v3109_v29  ;;  %v4489_v40 = vcombine.low %v3105_v28, %v3109_v29 }
 0x1ca   :  { %v4492_v35 = vcombine.high %v3106_v30, %v3110_v31  ;;  %v4491_v41 = vcombine.low %v3106_v30, %v3110_v31  ;;  %v3043_v30 = vld [vmem:[#allocation5 + $0x770] sm:$0xff] }
 0x1cb   :  { %3770 = vmatpush1.bf16.msra.mxu0 %v4433_v36  ;;  %3811 = vmatpush1.bf16.msra.mxu1 %v4435_v37  ;;  %v2987_v36 = vld [vmem:[#allocation5 + $0x70] sm:$0xff] }
 0x1cc   :  { %3771 = vmatprep.subr.bf16.mxu0 %v4442_v38  ;;  %3812 = vmatprep.subr.bf16.mxu1 %v4444_v39  ;;  %v2991_v37 = vld [vmem:[#allocation5 + $0xf0] sm:$0xff]  ;;  %v2988_v38 = vld [vmem:[#allocation5 + $0x78] sm:$0xff] }
 0x1cd   :  { %v4514_v49 = vpop.eup %4513  ;;  %v2992_v39 = vld [vmem:[#allocation5 + $0xf8] sm:$0xff]  ;;  %v4374_v42 = vcombine.high %v2987_v36, %v2991_v37  ;;  %v4373_v48 = vcombine.low %v2987_v36, %v2991_v37  ;;  %v3047_v31 = vld [vmem:[#allocation5 + $0x7f0] sm:$0xff] }
 0x1ce   :  { %v4516_v51 = vpop.eup %4515  ;;  %v1961_v52 = vmul.f32 %v4514_v49, %v4730_v21  ;;  %v4376_v43 = vcombine.high %v2988_v38, %v2992_v39  ;;  %v4375_v49 = vcombine.low %v2988_v38, %v2992_v39  ;;  %v3048_v36 = vld [vmem:[#allocation5 + $0x7f8] sm:$0xff] }
 0x1cf   :  { %v1973_v60 = vmul.f32 %v4516_v51, %v4732_v25  ;;  %3772 = vmatpush1.bf16.msra.mxu0 %v4441_v44  ;;  %3813 = vmatpush1.bf16.msra.mxu1 %v4443_v45  ;;  %v2995_v44 = vld [vmem:[#allocation5 + $0x170] sm:$0xff] }
 0x1d0   :  { %v1963_v62 = vsel %vm1962_vm8, %v4730_v21, %v1961_v52  ;;  %3773 = vmatprep.subr.bf16.mxu0 %v4450_v46  ;;  %3814 = vmatprep.subr.bf16.mxu1 %v4452_v50  ;;  %v3097_v21 = vld [vmem:[#allocation5 + $0xe60] sm:$0xff]  ;;  %v2999_v45 = vld [vmem:[#allocation5 + $0x1f0] sm:$0xff]  ;;  %v2996_v46 = vld [vmem:[#allocation5 + $0x178] sm:$0xff] }
 0x1d1   :  { %v1966_v0 = vsel %vm1964_vm9, %v1965_v59, %v1963_v62  ;;  %v1975_v1 = vsel %vm1974_vm10, %v4732_v25, %v1973_v60  ;;  %v4475_v25 = vcombine.low %v3090_v15, %v3094_v16  ;;  %v4482_v26 = vcombine.high %v3097_v21, %v3101_v22  ;;  %v3003_v52 = vld [vmem:[#allocation5 + $0x270] sm:$0xff]  ;;  %v3028_v16 = vld [vmem:[#allocation5 + $0x578] sm:$0xff] }
 0x1d2   :  { %1968 = vst [vmem:[#allocation7 + $0x20] sm:$0xff] %v1966_v0  ;;  %v1978_v5 = vsel %vm1976_vm11, %v1977_v63, %v1975_v1  ;;  %v4481_v32 = vcombine.low %v3097_v21, %v3101_v22  ;;  %v4382_v50 = vcombine.high %v2995_v44, %v2999_v45  ;;  %v4384_v51 = vcombine.high %v2996_v46, %v3000_v47  ;;  %v3011_v62 = vld [vmem:[#allocation5 + $0x370] sm:$0xff]  ;;  %v3012_v0 = vld [vmem:[#allocation5 + $0x378] sm:$0xff] }
 0x1d3   :  { %1980 = vst [vmem:[#allocation7 + $0x28] sm:$0xff] %v1978_v5  ;;  %3774 = vmatpush1.bf16.msra.mxu0 %v4449_v54  ;;  %3815 = vmatpush1.bf16.msra.mxu1 %v4451_v55  ;;  %v3007_v54 = vld [vmem:[#allocation5 + $0x2f0] sm:$0xff]  ;;  %v3004_v55 = vld [vmem:[#allocation5 + $0x278] sm:$0xff]  ;;  %v4381_v58 = vcombine.low %v2995_v44, %v2999_v45  ;;  %v4383_v59 = vcombine.low %v2996_v46, %v3000_v47 }
 0x1d4   :  { %3775 = vmatprep.subr.bf16.mxu0 %v4458_v61  ;;  %3816 = vmatprep.subr.bf16.mxu1 %v4460_v2  ;;  %v4390_v60 = vcombine.high %v3003_v52, %v3007_v54  ;;  %v4392_v61 = vcombine.high %v3004_v55, %v3008_v56  ;;  %v3015_v63 = vld [vmem:[#allocation5 + $0x3f0] sm:$0xff]  ;;  %v3016_v1 = vld [vmem:[#allocation5 + $0x3f8] sm:$0xff]  ;;  %v4389_v2 = vcombine.low %v3003_v52, %v3007_v54 }
 0x1d5   :  { %v4391_v3 = vcombine.low %v3004_v55, %v3008_v56  ;;  %v4398_v4 = vcombine.high %v3011_v62, %v3015_v63  ;;  %v4400_v5 = vcombine.high %v3012_v0, %v3016_v1  ;;  %v3031_v15 = vld [vmem:[#allocation5 + $0x5f0] sm:$0xff]  ;;  %v4430_v46 = vcombine.high %v3043_v30, %v3047_v31  ;;  %v3052_v54 = vld [vmem:[#allocation5 + $0x878] sm:$0xff] }
 0x1d6   :  { %v3035_v22 = vld [vmem:[#allocation5 + $0x670] sm:$0xff]  ;;  %v3056_v55 = vld [vmem:[#allocation5 + $0x8f8] sm:$0xff]  ;;  %v4429_v56 = vcombine.low %v3043_v30, %v3047_v31 }
 0x1d7   :  { %3776 = vmatpush1.bf16.msra.mxu0 %v4457_v8  ;;  %3817 = vmatpush1.bf16.msra.mxu1 %v4459_v9  ;;  %v3020_v8 = vld [vmem:[#allocation5 + $0x478] sm:$0xff]  ;;  %v3087_v30 = vld [vmem:[#allocation5 + $0xcf0] sm:$0xff] }
 0x1d8   :  { %3777 = vmatprep.subr.bf16.mxu0 %v4466_v10  ;;  %3818 = vmatprep.subr.bf16.mxu1 %v4468_v11  ;;  %v3024_v9 = vld [vmem:[#allocation5 + $0x4f8] sm:$0xff]  ;;  %v4397_v10 = vcombine.low %v3011_v62, %v3015_v63  ;;  %v4399_v11 = vcombine.low %v3012_v0, %v3016_v1  ;;  %v3063_v62 = vld [vmem:[#allocation5 + $0x9f0] sm:$0xff] }
 0x1d9   :  { %v3060_v63 = vld [vmem:[#allocation5 + $0x978] sm:$0xff] }
 0x1da   :  { %v3064_v0 = vld [vmem:[#allocation5 + $0x9f8] sm:$0xff] }
 0x1db   :  { %3778 = vmatpush1.bf16.msra.mxu0 %v4465_v17  ;;  %3819 = vmatpush1.bf16.msra.mxu1 %v4467_v18  ;;  %v3032_v17 = vld [vmem:[#allocation5 + $0x5f8] sm:$0xff]  ;;  %v4405_v18 = vcombine.low %v3019_v6, %v3023_v7  ;;  %v3071_v6 = vld [vmem:[#allocation5 + $0xaf0] sm:$0xff] }
 0x1dc   :  { %3779 = vmatprep.subr.bf16.mxu0 %v4474_v19  ;;  %3820 = vmatprep.subr.bf16.mxu1 %v4476_v20  ;;  %v4407_v19 = vcombine.low %v3020_v8, %v3024_v9  ;;  %v4414_v20 = vcombine.high %v3027_v14, %v3031_v15  ;;  %v4416_v21 = vcombine.high %v3028_v16, %v3032_v17  ;;  %v3068_v7 = vld [vmem:[#allocation5 + $0xa78] sm:$0xff] }
 0x1df   :  { %3780 = vmatpush1.bf16.msra.mxu0 %v4473_v24  ;;  %3821 = vmatpush1.bf16.msra.mxu1 %v4475_v25  ;;  %v3040_v24 = vld [vmem:[#allocation5 + $0x6f8] sm:$0xff]  ;;  %v4413_v25 = vcombine.low %v3027_v14, %v3031_v15 }
 0x1e0   :  { %3781 = vmatprep.subr.bf16.mxu0 %v4482_v26  ;;  %3822 = vmatprep.subr.bf16.mxu1 %v4484_v27  ;;  %v4415_v26 = vcombine.low %v3028_v16, %v3032_v17  ;;  %v4422_v27 = vcombine.high %v3035_v22, %v3039_v53  ;;  %v4424_v29 = vcombine.high %v3036_v23, %v3040_v24 }
 0x1e1   :  { %v4423_v45 = vcombine.low %v3036_v23, %v3040_v24 }
 0x1e3   :  { %3782 = vmatpush1.bf16.msra.mxu0 %v4481_v32  ;;  %3823 = vmatpush1.bf16.msra.mxu1 %v4483_v33 }
 0x1e4   :  { %3783 = vmatprep.subr.bf16.mxu0 %v4490_v34  ;;  %3824 = vmatprep.subr.bf16.mxu1 %v4492_v35  ;;  %v3044_v35 = vld [vmem:[#allocation5 + $0x778] sm:$0xff] }
 0x1e7   :  { %3784 = vmatpush1.bf16.msra.mxu0 %v4489_v40  ;;  %3825 = vmatpush1.bf16.msra.mxu1 %v4491_v41  ;;  %v4421_v41 = vcombine.low %v3035_v22, %v3039_v53 }
 0x1e8   :  { %3835 = vmatprep.subr.bf16.mxu0 %v4374_v42  ;;  %3876 = vmatprep.subr.bf16.mxu1 %v4376_v43 }
 0x1ea   :  { %3786 = vmatmul.mubr.bf16.vlgmr.msra.gmra.mrb[24].mxu0 %v4672_v12  ;;  %3827 = vmatmul.mubr.bf16.vlgmr.msra.gmra.mrb[24].mxu1 %v4672_v12 }
 0x1eb   :  { %3836 = vmatpush1.bf16.msra.mxu0 %v4373_v48  ;;  %3877 = vmatpush1.bf16.msra.mxu1 %v4375_v49  ;;  %v4432_v49 = vcombine.high %v3044_v35, %v3048_v36 }
 0x1ec   :  { %3837 = vmatprep.subr.bf16.mxu0 %v4382_v50  ;;  %3878 = vmatprep.subr.bf16.mxu1 %v4384_v51  ;;  %v3051_v50 = vld [vmem:[#allocation5 + $0x870] sm:$0xff] }
 0x1ed   :  { %3867 = vmatprep.mubr.bf16.mxu0 %v4666_v57  ;;  %3908 = vmatprep.mubr.bf16.mxu1 %v4666_v57  ;;  %v4408_v57 = vcombine.high %v3020_v8, %v3024_v9  ;;  %v3055_v51 = vld [vmem:[#allocation5 + $0x8f0] sm:$0xff]  ;;  %v3072_v8 = vld [vmem:[#allocation5 + $0xaf8] sm:$0xff] }
 0x1ee   :  { %v4437_v1 = vcombine.low %v3051_v50, %v3055_v51  ;;  %v4456_v15 = vcombine.high %v3068_v7, %v3072_v8 }
 0x1ef   :  { %3838 = vmatpush1.bf16.msra.mxu0 %v4381_v58  ;;  %3879 = vmatpush1.bf16.msra.mxu1 %v4383_v59  ;;  %v4431_v58 = vcombine.low %v3044_v35, %v3048_v36  ;;  %v4438_v59 = vcombine.high %v3051_v50, %v3055_v51 }
 0x1f0   :  { %3839 = vmatprep.subr.bf16.mxu0 %v4390_v60  ;;  %3880 = vmatprep.subr.bf16.mxu1 %v4392_v61  ;;  %v4440_v60 = vcombine.high %v3052_v54, %v3056_v55  ;;  %v3059_v61 = vld [vmem:[#allocation5 + $0x970] sm:$0xff] }
 0x1f1   :  { %v4445_v9 = vcombine.low %v3059_v61, %v3063_v62 }
 0x1f3   :  { %3840 = vmatpush1.bf16.msra.mxu0 %v4389_v2  ;;  %3881 = vmatpush1.bf16.msra.mxu1 %v4391_v3  ;;  %v4439_v2 = vcombine.low %v3052_v54, %v3056_v55  ;;  %v4446_v3 = vcombine.high %v3059_v61, %v3063_v62  ;;  %v3107_v55 = vld [vmem:[#allocation5 + $0xf70] sm:$0xff] }
 0x1f4   :  { %3841 = vmatprep.subr.bf16.mxu0 %v4398_v4  ;;  %3882 = vmatprep.subr.bf16.mxu1 %v4400_v5  ;;  %v4448_v4 = vcombine.high %v3060_v63, %v3064_v0  ;;  %v3067_v5 = vld [vmem:[#allocation5 + $0xa70] sm:$0xff] }
 0x1f7   :  { %3842 = vmatpush1.bf16.msra.mxu0 %v4397_v10  ;;  %3883 = vmatpush1.bf16.msra.mxu1 %v4399_v11  ;;  %v4447_v10 = vcombine.low %v3060_v63, %v3064_v0  ;;  %v4454_v11 = vcombine.high %v3067_v5, %v3071_v6 }
 0x1f8   :  { %3843 = vmatprep.subr.bf16.mxu0 %v4406_v13  ;;  %3884 = vmatprep.subr.bf16.mxu1 %v4408_v57  ;;  %v3075_v13 = vld [vmem:[#allocation5 + $0xb70] sm:$0xff] }
 0x1f9   :  { %v3079_v57 = vld [vmem:[#allocation5 + $0xbf0] sm:$0xff] }
 0x1fa   :  { %v4462_v23 = vcombine.high %v3075_v13, %v3079_v57 }
 0x1fb   :  { %3844 = vmatpush1.bf16.msra.mxu0 %v4405_v18  ;;  %3885 = vmatpush1.bf16.msra.mxu1 %v4407_v19  ;;  %v4453_v18 = vcombine.low %v3067_v5, %v3071_v6  ;;  %v4455_v19 = vcombine.low %v3068_v7, %v3072_v8 }
 0x1fc   :  { %3845 = vmatprep.subr.bf16.mxu0 %v4414_v20  ;;  %3886 = vmatprep.subr.bf16.mxu1 %v4416_v21  ;;  %v3076_v20 = vld [vmem:[#allocation5 + $0xb78] sm:$0xff] }
 0x1fd   :  { %v1909_v28 = vpop.f32.mrb[12].mxu0  ;;  %v1950_v33 = vpop.f32.mrb[12].mxu1  ;;  %v3080_v21 = vld [vmem:[#allocation5 + $0xbf8] sm:$0xff] }
 0x1fe   :  { %v1981_v32 = vmul.f32 %v1909_v28, %v1909_v28  ;;  %v1911_v34 = vpop.f32.mrb[13].mxu0  ;;  %v1993_v37 = vmul.f32 %v1950_v33, %v1950_v33  ;;  %v1952_v39 = vpop.f32.mrb[13].mxu1  ;;  %v4464_v28 = vcombine.high %v3076_v20, %v3080_v21  ;;  %v3088_v33 = vld [vmem:[#allocation5 + $0xcf8] sm:$0xff]  ;;  %v4463_v35 = vcombine.low %v3076_v20, %v3080_v21 }
 0x1ff   :  { %v1982_v38 = vmul.f32 %v1911_v34, %v1911_v34  ;;  %v1913_v40 = vpop.f32.mrb[14].mxu0  ;;  %3846 = vmatpush1.bf16.msra.mxu0 %v4413_v25  ;;  %v1994_v42 = vmul.f32 %v1952_v39, %v1952_v39  ;;  %v1954_v43 = vpop.f32.mrb[14].mxu1  ;;  %3887 = vmatpush1.bf16.msra.mxu1 %v4415_v26  ;;  %v4461_v34 = vcombine.low %v3075_v13, %v3079_v57  ;;  %v3095_v39 = vld [vmem:[#allocation5 + $0xdf0] sm:$0xff] }
 0x200   :  { %v1914_v44 = vpop.f32.mrb[15].mxu0  ;;  %3847 = vmatprep.subr.bf16.mxu0 %v4422_v27  ;;  %v1955_v48 = vpop.f32.mrb[15].mxu1  ;;  %3888 = vmatprep.subr.bf16.mxu1 %v4424_v29  ;;  %v3083_v29 = vld [vmem:[#allocation5 + $0xc70] sm:$0xff]  ;;  %v3092_v40 = vld [vmem:[#allocation5 + $0xd78] sm:$0xff] }
 0x201   :  { %v4750_v47 = vadd.f32 %v1982_v38, %v1981_v32  ;;  %v4752_v52 = vadd.f32 %v1994_v42, %v1993_v37  ;;  %v3084_v32 = vld [vmem:[#allocation5 + $0xc78] sm:$0xff]  ;;  %v4470_v36 = vcombine.high %v3083_v29, %v3087_v30  ;;  %v3091_v38 = vld [vmem:[#allocation5 + $0xd70] sm:$0xff]  ;;  %v4469_v42 = vcombine.low %v3083_v29, %v3087_v30 }
 0x202   :  { %v4472_v37 = vcombine.high %v3084_v32, %v3088_v33  ;;  %v4471_v43 = vcombine.low %v3084_v32, %v3088_v33  ;;  %v4478_v44 = vcombine.high %v3091_v38, %v3095_v39  ;;  %v3100_v48 = vld [vmem:[#allocation5 + $0xe78] sm:$0xff]  ;;  %v4477_v50 = vcombine.low %v3091_v38, %v3095_v39 }
 0x203   :  { %4517 = vrsqrt.f32 %v4750_v47  ;;  %3848 = vmatpush1.bf16.msra.mxu0 %v4421_v41  ;;  %3889 = vmatpush1.bf16.msra.mxu1 %v4423_v45  ;;  %vm1986_vm12 = vcmp.eq.f32.partialorder %v4750_v47, inf  ;;  %v1989_v22 = vand.u32 2147483648, %v4750_v47  ;;  %vm1988_vm13 = vcmp.eq.f32.partialorder %v4750_v47, 0.0  ;;  %v3096_v41 = vld [vmem:[#allocation5 + $0xdf8] sm:$0xff] }
 0x204   :  { %4519 = vrsqrt.f32 %v4752_v52  ;;  %3849 = vmatprep.subr.bf16.mxu0 %v4430_v46  ;;  %3890 = vmatprep.subr.bf16.mxu1 %v4432_v49  ;;  %vm1998_vm14 = vcmp.eq.f32.partialorder %v4752_v52, inf  ;;  %v2001_v25 = vand.u32 2147483648, %v4752_v52  ;;  %vm2000_vm15 = vcmp.eq.f32.partialorder %v4752_v52, 0.0  ;;  %v3099_v46 = vld [vmem:[#allocation5 + $0xe70] sm:$0xff]  ;;  %v3104_v49 = vld [vmem:[#allocation5 + $0xef8] sm:$0xff] }
 0x205   :  { %v4480_v45 = vcombine.high %v3092_v40, %v3096_v41  ;;  %v4479_v51 = vcombine.low %v3092_v40, %v3096_v41  ;;  %v4488_v54 = vcombine.high %v3100_v48, %v3104_v49  ;;  %v4487_v61 = vcombine.low %v3100_v48, %v3104_v49 }
 0x207   :  { %3850 = vmatpush1.bf16.msra.mxu0 %v4429_v56  ;;  %3891 = vmatpush1.bf16.msra.mxu1 %v4431_v58  ;;  %v3111_v56 = vld [vmem:[#allocation5 + $0xff0] sm:$0xff]  ;;  %v3108_v58 = vld [vmem:[#allocation5 + $0xf78] sm:$0xff] }
 0x208   :  { %3851 = vmatprep.subr.bf16.mxu0 %v4438_v59  ;;  %3892 = vmatprep.subr.bf16.mxu1 %v4440_v60  ;;  %v3112_v59 = vld [vmem:[#allocation5 + $0xff8] sm:$0xff]  ;;  %v4494_v62 = vcombine.high %v3107_v55, %v3111_v56  ;;  %v4493_v0 = vcombine.low %v3107_v55, %v3111_v56 }
 0x209   :  { %v4496_v63 = vcombine.high %v3108_v58, %v3112_v59 }
 0x20b   :  { %3852 = vmatpush1.bf16.msra.mxu0 %v4437_v1  ;;  %3893 = vmatpush1.bf16.msra.mxu1 %v4439_v2  ;;  %v4495_v1 = vcombine.low %v3108_v58, %v3112_v59 }
 0x20c   :  { %3853 = vmatprep.subr.bf16.mxu0 %v4446_v3  ;;  %3894 = vmatprep.subr.bf16.mxu1 %v4448_v4 }
 0x20d   :  { %v4518_v14 = vpop.eup %4517 }
 0x20e   :  { %v4520_v16 = vpop.eup %4519  ;;  %v1985_v17 = vmul.f32 %v4518_v14, %v4750_v47 }
 0x20f   :  { %v1997_v53 = vmul.f32 %v4520_v16, %v4752_v52  ;;  %3854 = vmatpush1.bf16.msra.mxu0 %v4445_v9  ;;  %3895 = vmatpush1.bf16.msra.mxu1 %v4447_v10 }
 0x210   :  { %v1987_v24 = vsel %vm1986_vm12, %v4750_v47, %v1985_v17  ;;  %3855 = vmatprep.subr.bf16.mxu0 %v4454_v11  ;;  %3896 = vmatprep.subr.bf16.mxu1 %v4456_v15  ;;  %v3103_v47 = vld [vmem:[#allocation5 + $0xef0] sm:$0xff] }
 0x211   :  { %v1990_v26 = vsel %vm1988_vm13, %v1989_v22, %v1987_v24  ;;  %v1999_v27 = vsel %vm1998_vm14, %v4752_v52, %v1997_v53  ;;  %v4486_v52 = vcombine.high %v3099_v46, %v3103_v47  ;;  %v4485_v60 = vcombine.low %v3099_v46, %v3103_v47 }
 0x212   :  { %1992 = vst [vmem:[#allocation7 + $0x30] sm:$0xff] %v1990_v26  ;;  %v2002_v31 = vsel %vm2000_vm15, %v2001_v25, %v1999_v27 }
 0x213   :  { %2004 = vst [vmem:[#allocation7 + $0x38] sm:$0xff] %v2002_v31  ;;  %3856 = vmatpush1.bf16.msra.mxu0 %v4453_v18  ;;  %3897 = vmatpush1.bf16.msra.mxu1 %v4455_v19 }
 0x214   :  { %3857 = vmatprep.subr.bf16.mxu0 %v4462_v23  ;;  %3898 = vmatprep.subr.bf16.mxu1 %v4464_v28 }
 0x217   :  { %3858 = vmatpush1.bf16.msra.mxu0 %v4461_v34  ;;  %3899 = vmatpush1.bf16.msra.mxu1 %v4463_v35 }
 0x218   :  { %3859 = vmatprep.subr.bf16.mxu0 %v4470_v36  ;;  %3900 = vmatprep.subr.bf16.mxu1 %v4472_v37 }
 0x21b   :  { %3860 = vmatpush1.bf16.msra.mxu0 %v4469_v42  ;;  %3901 = vmatpush1.bf16.msra.mxu1 %v4471_v43 }
 0x21c   :  { %3861 = vmatprep.subr.bf16.mxu0 %v4478_v44  ;;  %3902 = vmatprep.subr.bf16.mxu1 %v4480_v45 }
 0x21f   :  { %3862 = vmatpush1.bf16.msra.mxu0 %v4477_v50  ;;  %3903 = vmatpush1.bf16.msra.mxu1 %v4479_v51 }
 0x220   :  { %3863 = vmatprep.subr.bf16.mxu0 %v4486_v52  ;;  %3904 = vmatprep.subr.bf16.mxu1 %v4488_v54 }
 0x223   :  { %3864 = vmatpush1.bf16.msra.mxu0 %v4485_v60  ;;  %3905 = vmatpush1.bf16.msra.mxu1 %v4487_v61 }
 0x224   :  { %3865 = vmatprep.subr.bf16.mxu0 %v4494_v62  ;;  %3906 = vmatprep.subr.bf16.mxu1 %v4496_v63 }
 0x227   :  { %3866 = vmatpush1.bf16.msra.mxu0 %v4493_v0  ;;  %3907 = vmatpush1.bf16.msra.mxu1 %v4495_v1 }
 0x22a   :  { %3868 = vmatmul.mubr.bf16.vlgmr.msra.gmra.mrb[28].mxu0 %v4672_v12  ;;  %3909 = vmatmul.mubr.bf16.vlgmr.msra.gmra.mrb[28].mxu1 %v4672_v12 }
 0x23d   :  { %v2807_v2 = vpop.f32.mrb[16].mxu0  ;;  %v2848_v4 = vpop.f32.mrb[16].mxu1 }
 0x23e   :  { %v2937_v3 = vmul.f32 %v2807_v2, %v2807_v2  ;;  %v2809_v5 = vpop.f32.mrb[17].mxu0  ;;  %v2949_v6 = vmul.f32 %v2848_v4, %v2848_v4  ;;  %v2850_v8 = vpop.f32.mrb[17].mxu1 }
 0x23f   :  { %v2938_v7 = vmul.f32 %v2809_v5, %v2809_v5  ;;  %v2811_v9 = vpop.f32.mrb[18].mxu0  ;;  %v2950_v10 = vmul.f32 %v2850_v8, %v2850_v8  ;;  %v2852_v11 = vpop.f32.mrb[18].mxu1 }
 0x240   :  { %v2812_v13 = vpop.f32.mrb[19].mxu0  ;;  %v2853_v14 = vpop.f32.mrb[19].mxu1 }
 0x241   :  { %v2939_v57 = vadd.f32 %v2938_v7, %v2937_v3  ;;  %v2951_v15 = vadd.f32 %v2950_v10, %v2949_v6 }
 0x243   :  { %4521 = vrsqrt.f32 %v2939_v57  ;;  %vm2942_vm0 = vcmp.eq.f32.partialorder %v2939_v57, inf  ;;  %v2945_v12 = vand.u32 2147483648, %v2939_v57  ;;  %vm2944_vm1 = vcmp.eq.f32.partialorder %v2939_v57, 0.0 }
 0x244   :  { %4523 = vrsqrt.f32 %v2951_v15  ;;  %vm2954_vm2 = vcmp.eq.f32.partialorder %v2951_v15, inf  ;;  %v2957_v21 = vand.u32 2147483648, %v2951_v15  ;;  %vm2956_vm3 = vcmp.eq.f32.partialorder %v2951_v15, 0.0 }
 0x24d   :  { %v4522_v16 = vpop.eup %4521 }
 0x24e   :  { %v4524_v17 = vpop.eup %4523  ;;  %v2941_v18 = vmul.f32 %v4522_v16, %v2939_v57 }
 0x24f   :  { %v2953_v19 = vmul.f32 %v4524_v17, %v2951_v15 }
 0x250   :  { %v2943_v20 = vsel %vm2942_vm0, %v2939_v57, %v2941_v18 }
 0x251   :  { %v2946_v22 = vsel %vm2944_vm1, %v2945_v12, %v2943_v20  ;;  %v2955_v53 = vsel %vm2954_vm2, %v2951_v15, %v2953_v19 }
 0x252   :  { %2948 = vst [vmem:[#allocation7 + $0x40] sm:$0xff] %v2946_v22  ;;  %v2958_v23 = vsel %vm2956_vm3, %v2957_v21, %v2955_v53 }
 0x253   :  { %2960 = vst [vmem:[#allocation7 + $0x48] sm:$0xff] %v2958_v23 }
 0x27d   :  { %v2889_v24 = vpop.f32.mrb[20].mxu0  ;;  %v2930_v26 = vpop.f32.mrb[20].mxu1 }
 0x27e   :  { %v2961_v25 = vmul.f32 %v2889_v24, %v2889_v24  ;;  %v2891_v27 = vpop.f32.mrb[21].mxu0  ;;  %v2973_v28 = vmul.f32 %v2930_v26, %v2930_v26  ;;  %v2932_v30 = vpop.f32.mrb[21].mxu1 }
 0x27f   :  { %v2962_v29 = vmul.f32 %v2891_v27, %v2891_v27  ;;  %v2893_v31 = vpop.f32.mrb[22].mxu0  ;;  %v2974_v32 = vmul.f32 %v2932_v30, %v2932_v30  ;;  %v2934_v33 = vpop.f32.mrb[22].mxu1 }
 0x280   :  { %v2894_v34 = vpop.f32.mrb[23].mxu0  ;;  %v2935_v36 = vpop.f32.mrb[23].mxu1 }
 0x281   :  { %v2963_v35 = vadd.f32 %v2962_v29, %v2961_v25  ;;  %v2975_v37 = vadd.f32 %v2974_v32, %v2973_v28 }
 0x283   :  { %4525 = vrsqrt.f32 %v2963_v35  ;;  %vm2966_vm4 = vcmp.eq.f32.partialorder %v2963_v35, inf  ;;  %v2969_v41 = vand.u32 2147483648, %v2963_v35  ;;  %vm2968_vm5 = vcmp.eq.f32.partialorder %v2963_v35, 0.0 }
 0x284   :  { %4527 = vrsqrt.f32 %v2975_v37  ;;  %vm2978_vm6 = vcmp.eq.f32.partialorder %v2975_v37, inf  ;;  %v2981_v44 = vand.u32 2147483648, %v2975_v37  ;;  %vm2980_vm7 = vcmp.eq.f32.partialorder %v2975_v37, 0.0 }
 0x28d   :  { %v4526_v38 = vpop.eup %4525 }
 0x28e   :  { %v4528_v39 = vpop.eup %4527  ;;  %v2965_v40 = vmul.f32 %v4526_v38, %v2963_v35 }
 0x28f   :  { %v2977_v42 = vmul.f32 %v4528_v39, %v2975_v37 }
 0x290   :  { %v2967_v43 = vsel %vm2966_vm4, %v2963_v35, %v2965_v40 }
 0x291   :  { %v2970_v45 = vsel %vm2968_vm5, %v2969_v41, %v2967_v43  ;;  %v2979_v46 = vsel %vm2978_vm6, %v2975_v37, %v2977_v42 }
 0x292   :  { %2972 = vst [vmem:[#allocation7 + $0x50] sm:$0xff] %v2970_v45  ;;  %v2982_v47 = vsel %vm2980_vm7, %v2981_v44, %v2979_v46 }
 0x293   :  { %2984 = vst [vmem:[#allocation7 + $0x58] sm:$0xff] %v2982_v47 }
 0x2bd   :  { %v3787_v48 = vpop.f32.mrb[24].mxu0  ;;  %v3828_v50 = vpop.f32.mrb[24].mxu1 }
 0x2be   :  { %v3917_v49 = vmul.f32 %v3787_v48, %v3787_v48  ;;  %v3789_v51 = vpop.f32.mrb[25].mxu0  ;;  %v3929_v52 = vmul.f32 %v3828_v50, %v3828_v50  ;;  %v3830_v55 = vpop.f32.mrb[25].mxu1 }
 0x2bf   :  { %v3918_v54 = vmul.f32 %v3789_v51, %v3789_v51  ;;  %v3791_v56 = vpop.f32.mrb[26].mxu0  ;;  %v3930_v58 = vmul.f32 %v3830_v55, %v3830_v55  ;;  %v3832_v59 = vpop.f32.mrb[26].mxu1 }
 0x2c0   :  { %v3792_v60 = vpop.f32.mrb[27].mxu0  ;;  %v3833_v62 = vpop.f32.mrb[27].mxu1 }
 0x2c1   :  { %v3919_v61 = vadd.f32 %v3918_v54, %v3917_v49  ;;  %v3931_v63 = vadd.f32 %v3930_v58, %v3929_v52 }
 0x2c3   :  { %4529 = vrsqrt.f32 %v3919_v61  ;;  %vm3922_vm8 = vcmp.eq.f32.partialorder %v3919_v61, inf  ;;  %v3925_v3 = vand.u32 2147483648, %v3919_v61  ;;  %vm3924_vm9 = vcmp.eq.f32.partialorder %v3919_v61, 0.0 }
 0x2c4   :  { %4531 = vrsqrt.f32 %v3931_v63  ;;  %vm3934_vm10 = vcmp.eq.f32.partialorder %v3931_v63, inf  ;;  %v3937_v6 = vand.u32 2147483648, %v3931_v63  ;;  %vm3936_vm11 = vcmp.eq.f32.partialorder %v3931_v63, 0.0 }
 0x2cd   :  { %v4530_v0 = vpop.eup %4529 }
 0x2ce   :  { %v4532_v1 = vpop.eup %4531  ;;  %v3921_v2 = vmul.f32 %v4530_v0, %v3919_v61 }
 0x2cf   :  { %v3933_v4 = vmul.f32 %v4532_v1, %v3931_v63 }
 0x2d0   :  { %v3923_v5 = vsel %vm3922_vm8, %v3919_v61, %v3921_v2 }
 0x2d1   :  { %v3926_v7 = vsel %vm3924_vm9, %v3925_v3, %v3923_v5  ;;  %v3935_v8 = vsel %vm3934_vm10, %v3931_v63, %v3933_v4 }
 0x2d2   :  { %3928 = vst [vmem:[#allocation7 + $0x60] sm:$0xff] %v3926_v7  ;;  %v3938_v9 = vsel %vm3936_vm11, %v3937_v6, %v3935_v8 }
 0x2d3   :  { %3940 = vst [vmem:[#allocation7 + $0x68] sm:$0xff] %v3938_v9 }
 0x2fd   :  { %v3869_v10 = vpop.f32.mrb[28].mxu0  ;;  %v3910_v13 = vpop.f32.mrb[28].mxu1 }
 0x2fe   :  { %v3941_v11 = vmul.f32 %v3869_v10, %v3869_v10  ;;  %v3871_v57 = vpop.f32.mrb[29].mxu0  ;;  %v3953_v14 = vmul.f32 %v3910_v13, %v3910_v13  ;;  %v3912_v16 = vpop.f32.mrb[29].mxu1 }
 0x2ff   :  { %v3942_v15 = vmul.f32 %v3871_v57, %v3871_v57  ;;  %v3873_v17 = vpop.f32.mrb[30].mxu0  ;;  %v3954_v18 = vmul.f32 %v3912_v16, %v3912_v16  ;;  %v3914_v12 = vpop.f32.mrb[30].mxu1 }
 0x300   :  { %v3874_v19 = vpop.f32.mrb[31].mxu0  ;;  %v3915_v21 = vpop.f32.mrb[31].mxu1 }
 0x301   :  { %v3943_v20 = vadd.f32 %v3942_v15, %v3941_v11  ;;  %v3955_v22 = vadd.f32 %v3954_v18, %v3953_v14 }
 0x303   :  { %4533 = vrsqrt.f32 %v3943_v20  ;;  %vm3946_vm12 = vcmp.eq.f32.partialorder %v3943_v20, inf  ;;  %v3949_v25 = vand.u32 2147483648, %v3943_v20  ;;  %vm3948_vm13 = vcmp.eq.f32.partialorder %v3943_v20, 0.0 }
 0x304   :  { %4535 = vrsqrt.f32 %v3955_v22  ;;  %vm3958_vm14 = vcmp.eq.f32.partialorder %v3955_v22, inf  ;;  %v3961_v28 = vand.u32 2147483648, %v3955_v22  ;;  %vm3960_vm15 = vcmp.eq.f32.partialorder %v3955_v22, 0.0 }
 0x30d   :  { %v4534_v53 = vpop.eup %4533 }
 0x30e   :  { %v4536_v23 = vpop.eup %4535  ;;  %v3945_v24 = vmul.f32 %v4534_v53, %v3943_v20 }
 0x30f   :  { %v3957_v26 = vmul.f32 %v4536_v23, %v3955_v22 }
 0x310   :  { %v3947_v27 = vsel %vm3946_vm12, %v3943_v20, %v3945_v24 }
 0x311   :  { %v3950_v29 = vsel %vm3948_vm13, %v3949_v25, %v3947_v27  ;;  %v3959_v30 = vsel %vm3958_vm14, %v3955_v22, %v3957_v26 }
 0x312   :  { %3952 = vst [vmem:[#allocation7 + $0x70] sm:$0xff] %v3950_v29  ;;  %v3962_v31 = vsel %vm3960_vm15, %v3961_v28, %v3959_v30 }
 0x313   :  { %3964 = vst [vmem:[#allocation7 + $0x78] sm:$0xff] %v3962_v31 }
 0x314   :  { %4592 = shalt.err (!%p4589_p6)
}
 0x315   :  { %s4593_s10 = scalar_lea.hbm %s4784_s2, 2048 }
 0x316   :  { %p4594_p7 = scmp.ne.s32.totalorder %s4784_s2, %s4593_s10  ;;  %p4597_p8 = scmp.lt.u32.totalorder %s4593_s10, %s4784_s2 }
 0x318   :  { %p4599_p9 = pnand %p4597_p8, %p4594_p7 }
 0x31a   :  { %4602 = shalt.err (!%p4599_p9)
}
 0x31b   :  { %s4614_s15 = smov 8  }
 0x31c   :  { %3976 = dma.vmem_to_hbm [thread:$0]  %s3971_s6, 2048, %s4784_s2, [#allocation4], %s4612_s3, %s4612_s3, %s4614_s15  }
 0x31d   :  { %4607 = dma.done.wait [#allocation4], 2048  }
 0x31e   :  { %4608 = vsyncadd [#allocation4], 4294965248 }
 0x31f   :  { %3980 = vsyncpa [#allocation3], 1 }
 0x320   :  { %3981 = vsyncpa [#allocation6], 1 }
 0x321   :  { %3982 = vsyncpa [#allocation4], 1 }

</bundles_post_ra>
